<compile_context>
chip_gen: v7x
topology: tpu7x:2x2x1
jax: 0.10.0
libtpu: 0.0.40
codegen_flags: <defaults>
</compile_context>

<pallas_src>
import jax
import jax.numpy as jnp
from jax.experimental import pallas as pl
from jax.experimental.pallas import tpu as pltpu

# ----------------------------- static geometry ---------------------------- #
B = 2                        # batch size (fixed for this script)
H0, W0 = 7, 9                # input spatial size; (H0-3)*(W0-3) == 24 features
R = H0 * W0                  # grid rows per image in the full-grid layout (63)
RT = B * R                   # total "real" input rows (126)
SHIFTS = (0, 1, W0, W0 + 1)  # row offsets of the 4 taps of a 2x2 kernel

# Row counts shrink by >= 10 (= max tap shift) per 2x2 conv so every shifted
# read is an in-bounds static slice; all are multiples of 8 sublanes.
RC1 = 136                    # conv1 output rows computed (>= RT, >= RC2+10)
RC2 = 120                    # conv2 output rows computed (>= RC3+10)
RC3 = 104                    # conv3/4/5 output rows computed (> max valid row 95)
XP = 152                     # zero-padded input rows in VMEM scratch (>= RC1+10)

# Row-validity invariants (review correctness concern #2): every shifted read
# stays in bounds and every *valid* output row only ever reads valid rows.
assert XP >= RC1 + SHIFTS[-1]
assert RC1 >= RC2 + SHIFTS[-1]
assert RC2 >= RC3 + SHIFTS[-1]
assert RC1 >= RT
assert RC3 > (B - 1) * R + 3 * W0 + 5          # last valid conv3/4/5 row == 95

# --------------------- packed-parameter VMEM layout ------------------------ #
NARROW_W = 128               # lane width of the "narrow" packed buffer (pkn)
WIDE_W = 216                 # lane width of the "wide" packed buffer   (pkw)

_NB_NAMES = ("c1_b", "c3_b", "c4_b", "c5_b", "l1_b", "l3_b", "l4_b", "l5_b")
_NB_COLS = (66, 66, 6, 1, 66, 66, 6, 1)
_WB_NAMES = ("c2_b", "l2_b")
_WB_COLS = (216, 216)


def _rup8(n):
    return -(-n // 8) * 8


# (name, rows, cols) in placement order; row offsets are 8-aligned.
_NARROW_BLOCKS = (
    ("c1_w", 4, 66),               # conv1 taps                      (4, 66)
    ("c3_w", 4 * 216, 66),         # conv3 K-concat weight           (864, 66)
    ("w1t", RC3, 66),              # fused flatten+Linear(24,66) scatter
    ("l3_w", 216, 66),
    ("c4_w", 66, 6),
    ("l4_w", 66, 6),
    ("c5_w", 6, 1),
    ("l5_w", 6, 1),
    ("selb", B, RC3),              # per-image row-sum selector      (B, 104)
    ("nbias", len(_NB_NAMES), NARROW_W),   # one bias per row
)
_WIDE_BLOCKS = (
    ("c2_w", 4 * 66, 216),         # conv2 K-concat weight           (264, 216)
    ("l2_w", 66, 216),
    ("wbias", len(_WB_NAMES), WIDE_W),     # one bias per row
)


def _layout(blocks):
    offs, r = {}, 0
    for name, rows, cols in blocks:
        offs[name] = (r, rows, cols)
        r += _rup8(rows)
    return offs, _rup8(r)


NOFF, N_ROWS = _layout(_NARROW_BLOCKS)
WOFF, W_ROWS = _layout(_WIDE_BLOCKS)
NBIAS_POS = {n: (NOFF["nbias"][0] + i, c)
             for i, (n, c) in enumerate(zip(_NB_NAMES, _NB_COLS))}
WBIAS_POS = {n: (WOFF["wbias"][0] + i, c)
             for i, (n, c) in enumerate(zip(_WB_NAMES, _WB_COLS))}

# Advisory cost for XLA's scheduler (tiny compute, tiny bytes).
FLOPS = 2 * (RC1 * 4 * 66 + RC2 * (4 * 66) * 216 + RC3 * (4 * 216) * 66
             + RC3 * 66 * 6 + RC3 * 6 * 1 + B * RC3 * 66
             + B * (66 * 216 + 216 * 66 + 66 * 6 + 6 * 1))
BYTES = 4 * (RT * 1 + N_ROWS * NARROW_W + W_ROWS * WIDE_W + B * 1)


# ------------------------------ Pallas kernel ------------------------------ #
def _lenet_kernel(x_ref, pkn_ref, pkw_ref, o_ref, xpad_ref):
    f32 = jnp.float32

    def _blk(ref, off):
        r0, rows, cols = off
        return ref[r0:r0 + rows, 0:cols]

    def nblk(name):
        return _blk(pkn_ref, NOFF[name])

    def wblk(name):
        return _blk(pkw_ref, WOFF[name])

    def nbias(name):
        row, cols = NBIAS_POS[name]
        return pkn_ref[row:row + 1, 0:cols]

    def wbias(name):
        row, cols = WBIAS_POS[name]
        return pkw_ref[row:row + 1, 0:cols]

    # ---- in-kernel input padding (replaces the old XLA pad+stack glue) ---- #
    xpad_ref[...] = jnp.zeros_like(xpad_ref)
    xpad_ref[0:RT, :] = x_ref[...]

    # ---- conv1 (2x2, Cin=1): 4 lane-broadcast multiply-adds, no matmul ---- #
    c1w = nblk("c1_w")                                        # (4, 66)
    h = xpad_ref[0:RC1, :] * c1w[0:1, :]
    h = h + xpad_ref[1:1 + RC1, :] * c1w[1:2, :]
    h = h + xpad_ref[W0:W0 + RC1, :] * c1w[2:3, :]
    h = h + xpad_ref[W0 + 1:W0 + 1 + RC1, :] * c1w[3:4, :]
    h = jnp.maximum(h + nbias("c1_b"), 0.0)                   # (136, 66)

    # ---- conv2 (2x2): ONE long-K matmul over lane-concatenated taps ------- #
    hcat = jnp.concatenate([h[s:s + RC2, :] for s in SHIFTS], axis=1)  # (120, 264)
    h = jnp.dot(hcat, wblk("c2_w"), preferred_element_type=f32)
    h = jnp.maximum(h + wbias("c2_b"), 0.0)                   # (120, 216)

    # ---- conv3 (2x2): ONE long-K matmul ----------------------------------- #
    hcat = jnp.concatenate([h[s:s + RC3, :] for s in SHIFTS], axis=1)  # (104, 864)
    h = jnp.dot(hcat, nblk("c3_w"), preferred_element_type=f32)
    h = jnp.maximum(h + nbias("c3_b"), 0.0)                   # (104, 66)

    # ---- conv4 / conv5 (1x1 convs == per-row linears) ---------------------- #
    h = jnp.maximum(jnp.dot(h, nblk("c4_w"), preferred_element_type=f32)
                    + nbias("c4_b"), 0.0)                     # (104, 6)
    h = (jnp.dot(h, nblk("c5_w"), preferred_element_type=f32)
         + nbias("c5_b"))                                     # (104, 1)

    # ---- flatten + Linear(24, 66) fused: w1t has l1_w.T rows scattered onto
    # the 24 valid grid rows per image (zeros elsewhere also kill garbage
    # rows); selb sums the rows belonging to each image. ---------------------#
    z = jnp.dot(nblk("selb"), h * nblk("w1t"), preferred_element_type=f32)
    z = jnp.maximum(z + nbias("l1_b"), 0.0)                   # (B, 66)

    # ---- remaining classifier linears (ReLU after each, then Sigmoid) ----- #
    z = jnp.maximum(jnp.dot(z, wblk("l2_w"), preferred_element_type=f32)
                    + wbias("l2_b"), 0.0)                     # (B, 216)
    z = jnp.maximum(jnp.dot(z, nblk("l3_w"), preferred_element_type=f32)
                    + nbias("l3_b"), 0.0)                     # (B, 66)
    z = jnp.maximum(jnp.dot(z, nblk("l4_w"), preferred_element_type=f32)
                    + nbias("l4_b"), 0.0)                     # (B, 6)
    z = jnp.maximum(jnp.dot(z, nblk("l5_w"), preferred_element_type=f32)
                    + nbias("l5_b"), 0.0)                     # (B, 1)
    o_ref[...] = jax.nn.sigmoid(z).astype(o_ref.dtype)


# ------------------------- one-time weight preparation ---------------------- #
def prepare_params(p):
    """Pack PyTorch-layout params into the two kernel VMEM buffers. Run once."""
    f32 = jnp.float32

    def conv_cat(w):                       # (Cout, Cin, 2, 2) -> (4*Cin, Cout)
        cout, cin = w.shape[0], w.shape[1]
        return jnp.transpose(w, (2, 3, 1, 0)).reshape(4 * cin, cout).astype(f32)

    blocks_n = {
        "c1_w": p["c1_w"].reshape(66, 4).T.astype(f32),       # tap t = kh*2+kw
        "c3_w": conv_cat(p["c3_w"]),
        "l3_w": p["l3_w"].T.astype(f32),
        "c4_w": p["c4_w"].reshape(6, 66).T.astype(f32),
        "l4_w": p["l4_w"].T.astype(f32),
        "c5_w": p["c5_w"].reshape(1, 6).T.astype(f32),
        "l5_w": p["l5_w"].T.astype(f32),
    }
    # Fused flatten + Linear(24, 66): scatter rows of l1_w.T onto the valid
    # full-grid rows (i < 4, j < 6) of each image; zeros elsewhere.
    w1 = p["l1_w"].T.astype(f32)                               # (24, 66)
    ii, jj = jnp.meshgrid(jnp.arange(4), jnp.arange(6), indexing="ij")
    m = (ii * 6 + jj).reshape(-1)                              # PyTorch flatten idx
    pos = (ii * W0 + jj).reshape(-1)                           # full-grid row offset
    rows = jnp.concatenate([pos + b * R for b in range(B)])
    vals = jnp.concatenate([w1[m]] * B, axis=0)
    blocks_n["w1t"] = jnp.zeros((RC3, 66), f32).at[rows].set(vals)
    r = jnp.arange(RC3)
    starts = jnp.arange(B) * R
    blocks_n["selb"] = ((r[None, :] >= starts[:, None]) &
                        (r[None, :] < (starts + R)[:, None])).astype(f32)

    blocks_w = {
        "c2_w": conv_cat(p["c2_w"]),
        "l2_w": p["l2_w"].T.astype(f32),
    }

    pkn = jnp.zeros((N_ROWS, NARROW_W), f32)
    for name, (r0, rows_, cols_) in NOFF.items():
        if name == "nbias":
            continue
        v = blocks_n[name]
        assert v.shape == (rows_, cols_), (name, v.shape, (rows_, cols_))
        pkn = pkn.at[r0:r0 + rows_, 0:cols_].set(v)
    for name, cols_ in zip(_NB_NAMES, _NB_COLS):
        row = NBIAS_POS[name][0]
        pkn = pkn.at[row, 0:cols_].set(p[name].astype(f32))

    pkw = jnp.zeros((W_ROWS, WIDE_W), f32)
    for name, (r0, rows_, cols_) in WOFF.items():
        if name == "wbias":
            continue
        v = blocks_w[name]
        assert v.shape == (rows_, cols_), (name, v.shape, (rows_, cols_))
        pkw = pkw.at[r0:r0 + rows_, 0:cols_].set(v)
    for name, cols_ in zip(_WB_NAMES, _WB_COLS):
        row = WBIAS_POS[name][0]
        pkw = pkw.at[row, 0:cols_].set(p[name].astype(f32))
    return pkn, pkw


# ------------------------------ fused forward ------------------------------ #
@jax.jit
def lenet_forward(x, pkn, pkw):
    assert x.shape == (B, 1, H0, W0)
    # Pure bitcast reshape (contiguous, row-major) -> no per-forward XLA glue.
    xcol = x.reshape(RT, 1)
    # No grid: everything (~1.1 MiB of weights + tiny activations) lives in a
    # single VMEM-resident block; only the (B, 1) result goes back to HBM.
    return pl.pallas_call(
        _lenet_kernel,
        out_shape=jax.ShapeDtypeStruct((B, 1), jnp.float32),
        scratch_shapes=[pltpu.VMEM((XP, 1), jnp.float32)],
        cost_estimate=pl.CostEstimate(flops=FLOPS, transcendentals=B,
                                      bytes_accessed=BYTES),
    )(xcol, pkn, pkw)


# ---------------------------- plain-JAX reference --------------------------- #
def lenet_reference(x, p):
    prec = jax.lax.Precision.HIGHEST
    h = x
    for name, act in (("c1", True), ("c2", True), ("c3", True),
                      ("c4", True), ("c5", False)):
        h = jax.lax.conv_general_dilated(
            h, p[f"{name}_w"], window_strides=(1, 1), padding="VALID",
            dimension_numbers=("NCHW", "OIHW", "NCHW"), precision=prec)
        h = h + p[f"{name}_b"].reshape(1, -1, 1, 1)
        if act:
            h = jnp.maximum(h, 0.0)
    z = h.reshape(h.shape[0], -1)
    for name in ("l1", "l2", "l3", "l4", "l5"):
        z = jnp.maximum(jnp.dot(z, p[f"{name}_w"].T, precision=prec)
                        + p[f"{name}_b"], 0.0)
    return jax.nn.sigmoid(z)


# -------------------------------- param init -------------------------------- #
def init_params(key):
    """PyTorch-layout params, U(-1/sqrt(fan_in), 1/sqrt(fan_in)) like nn defaults."""
    def u(k, shape, fan_in):
        bound = 1.0 / float(fan_in) ** 0.5
        return jax.random.uniform(k, shape, jnp.float32, -bound, bound)

    keys = jax.random.split(key, 20)
    p = {}
    conv_cfg = [("c1", 66, 1, 2), ("c2", 216, 66, 2), ("c3", 66, 216, 2),
                ("c4", 6, 66, 1), ("c5", 1, 6, 1)]
    ki = 0
    for name, cout, cin, k in conv_cfg:
        fan_in = cin * k * k
        p[f"{name}_w"] = u(keys[ki], (cout, cin, k, k), fan_in); ki += 1
        p[f"{name}_b"] = u(keys[ki], (cout,), fan_in); ki += 1
    lin_cfg = [("l1", 66, 24), ("l2", 216, 66), ("l3", 66, 216),
               ("l4", 6, 66), ("l5", 1, 6)]
    for name, out, inp in lin_cfg:
        p[f"{name}_w"] = u(keys[ki], (out, inp), inp); ki += 1
        p[f"{name}_b"] = u(keys[ki], (out,), inp); ki += 1
    return p


# ----------------------------------- main ----------------------------------- #
if __name__ == "__main__":
    key = jax.random.PRNGKey(0)
    pkey, xkey = jax.random.split(key)
    params = init_params(pkey)
    pkn, pkw = prepare_params(params)          # one-time packing / layout

    # (H-3)*(W-3) must equal 24 (classifier input width): H=7, W=9, Cin=1.
    x = jax.random.normal(xkey, (B, 1, H0, W0), dtype=jnp.float32)

    out = jax.block_until_ready(lenet_forward(x, pkn, pkw))
    assert out.shape == (B, 1)

    ref = jax.block_until_ready(lenet_reference(x, params))
    assert jnp.allclose(out, ref, atol=1e-3, rtol=1e-3), (out, ref)
    print("KERNEL_OK")
</pallas_src>

<mosaic_0001>
module attributes {stable_mosaic.version = 11 : i64} {
  func.func @_lenet_kernel(%arg0: memref<126x1xf32, #tpu.memory_space<vmem>>, %arg1: memref<1368x128xf32, #tpu.memory_space<vmem>>, %arg2: memref<344x216xf32, #tpu.memory_space<vmem>>, %arg3: memref<2x1xf32, #tpu.memory_space<vmem>>, %arg4: memref<152x1xf32, #tpu.memory_space<vmem>>) attributes {dimension_semantics = [], scalar_prefetch = 0 : i64, scratch_operands = 1 : i64, tpu.core_type = #tpu.core_type<tc>} {
    %cst = arith.constant 0.000000e+00 : f32
    %0 = vector.broadcast %cst : f32 to vector<152x1xf32>
    %c0 = arith.constant 0 : index
    %c0_0 = arith.constant 0 : index
    %1 = vector.load %arg4[%c0, %c0_0] : memref<152x1xf32, #tpu.memory_space<vmem>>, vector<152x1xf32>
    tpu.vector_store %arg4[%c0, %c0_0], %0 {strides = array<i32>} : memref<152x1xf32, #tpu.memory_space<vmem>>, vector<152x1xf32>,
    %c0_1 = arith.constant 0 : index
    %c0_2 = arith.constant 0 : index
    %2 = vector.load %arg0[%c0_1, %c0_2] : memref<126x1xf32, #tpu.memory_space<vmem>>, vector<126x1xf32>
    %c0_3 = arith.constant 0 : index
    %c0_4 = arith.constant 0 : index
    %3 = vector.load %arg4[%c0_3, %c0_4] : memref<152x1xf32, #tpu.memory_space<vmem>>, vector<126x1xf32>
    tpu.vector_store %arg4[%c0_3, %c0_4], %2 {strides = array<i32>} : memref<152x1xf32, #tpu.memory_space<vmem>>, vector<126x1xf32>,
    %c0_5 = arith.constant 0 : index
    %c0_6 = arith.constant 0 : index
    %4 = vector.load %arg1[%c0_5, %c0_6] : memref<1368x128xf32, #tpu.memory_space<vmem>>, vector<4x66xf32>
    %c0_7 = arith.constant 0 : index
    %c0_8 = arith.constant 0 : index
    %5 = vector.load %arg4[%c0_7, %c0_8] : memref<152x1xf32, #tpu.memory_space<vmem>>, vector<136x1xf32>
    %6 = vector.extract_strided_slice %4 {offsets = [0, 0], sizes = [1, 66], strides = [1, 1]} : vector<4x66xf32> to vector<1x66xf32>
    %7 = vector.broadcast %5 : vector<136x1xf32> to vector<136x66xf32>
    %8 = vector.broadcast %6 : vector<1x66xf32> to vector<136x66xf32>
    %9 = arith.mulf %7, %8 : vector<136x66xf32>
    %c1 = arith.constant 1 : index
    %c0_9 = arith.constant 0 : index
    %10 = vector.load %arg4[%c1, %c0_9] : memref<152x1xf32, #tpu.memory_space<vmem>>, vector<136x1xf32>
    %11 = vector.extract_strided_slice %4 {offsets = [1, 0], sizes = [1, 66], strides = [1, 1]} : vector<4x66xf32> to vector<1x66xf32>
    %12 = vector.broadcast %10 : vector<136x1xf32> to vector<136x66xf32>
    %13 = vector.broadcast %11 : vector<1x66xf32> to vector<136x66xf32>
    %14 = arith.mulf %12, %13 : vector<136x66xf32>
    %15 = arith.addf %9, %14 : vector<136x66xf32>
    %c9 = arith.constant 9 : index
    %c0_10 = arith.constant 0 : index
    %16 = vector.load %arg4[%c9, %c0_10] : memref<152x1xf32, #tpu.memory_space<vmem>>, vector<136x1xf32>
    %17 = vector.extract_strided_slice %4 {offsets = [2, 0], sizes = [1, 66], strides = [1, 1]} : vector<4x66xf32> to vector<1x66xf32>
    %18 = vector.broadcast %16 : vector<136x1xf32> to vector<136x66xf32>
    %19 = vector.broadcast %17 : vector<1x66xf32> to vector<136x66xf32>
    %20 = arith.mulf %18, %19 : vector<136x66xf32>
    %21 = arith.addf %15, %20 : vector<136x66xf32>
    %c10 = arith.constant 10 : index
    %c0_11 = arith.constant 0 : index
    %22 = vector.load %arg4[%c10, %c0_11] : memref<152x1xf32, #tpu.memory_space<vmem>>, vector<136x1xf32>
    %23 = vector.extract_strided_slice %4 {offsets = [3, 0], sizes = [1, 66], strides = [1, 1]} : vector<4x66xf32> to vector<1x66xf32>
    %24 = vector.broadcast %22 : vector<136x1xf32> to vector<136x66xf32>
    %25 = vector.broadcast %23 : vector<1x66xf32> to vector<136x66xf32>
    %26 = arith.mulf %24, %25 : vector<136x66xf32>
    %27 = arith.addf %21, %26 : vector<136x66xf32>
    %c1360 = arith.constant 1360 : index
    %c0_12 = arith.constant 0 : index
    %28 = vector.load %arg1[%c1360, %c0_12] : memref<1368x128xf32, #tpu.memory_space<vmem>>, vector<1x66xf32>
    %29 = vector.broadcast %28 : vector<1x66xf32> to vector<136x66xf32>
    %30 = arith.addf %27, %29 : vector<136x66xf32>
    %cst_13 = arith.constant 0.000000e+00 : f32
    %31 = vector.broadcast %cst_13 : f32 to vector<136x66xf32>
    %32 = arith.maximumf %30, %31 : vector<136x66xf32>
    %33 = vector.extract_strided_slice %32 {offsets = [0, 0], sizes = [120, 66], strides = [1, 1]} : vector<136x66xf32> to vector<120x66xf32>
    %34 = vector.extract_strided_slice %32 {offsets = [1, 0], sizes = [120, 66], strides = [1, 1]} : vector<136x66xf32> to vector<120x66xf32>
    %35 = vector.extract_strided_slice %32 {offsets = [9, 0], sizes = [120, 66], strides = [1, 1]} : vector<136x66xf32> to vector<120x66xf32>
    %36 = vector.extract_strided_slice %32 {offsets = [10, 0], sizes = [120, 66], strides = [1, 1]} : vector<136x66xf32> to vector<120x66xf32>
    %37 = tpu.concatenate %33, %34, %35, %36 in 1 : vector<120x66xf32>, vector<120x66xf32>, vector<120x66xf32>, vector<120x66xf32> -> vector<120x264xf32>
    %c0_14 = arith.constant 0 : index
    %c0_15 = arith.constant 0 : index
    %38 = vector.load %arg2[%c0_14, %c0_15] : memref<344x216xf32, #tpu.memory_space<vmem>>, vector<264x216xf32>
    %cst_16 = arith.constant dense<0.000000e+00> : vector<120x216xf32>
    %39 = tpu.matmul %37, %38, %cst_16 {dimension_numbers = #tpu.dot_dimension_numbers<[1], [0], [0], [1], [0, 0, 1, 1], [], []>} : vector<120x264xf32>, vector<264x216xf32>, vector<120x216xf32> -> vector<120x216xf32>
    %c336 = arith.constant 336 : index
    %c0_17 = arith.constant 0 : index
    %40 = vector.load %arg2[%c336, %c0_17] : memref<344x216xf32, #tpu.memory_space<vmem>>, vector<1x216xf32>
    %41 = vector.broadcast %40 : vector<1x216xf32> to vector<120x216xf32>
    %42 = arith.addf %39, %41 : vector<120x216xf32>
    %cst_18 = arith.constant 0.000000e+00 : f32
    %43 = vector.broadcast %cst_18 : f32 to vector<120x216xf32>
    %44 = arith.maximumf %42, %43 : vector<120x216xf32>
    %45 = vector.extract_strided_slice %44 {offsets = [0, 0], sizes = [104, 216], strides = [1, 1]} : vector<120x216xf32> to vector<104x216xf32>
    %46 = vector.extract_strided_slice %44 {offsets = [1, 0], sizes = [104, 216], strides = [1, 1]} : vector<120x216xf32> to vector<104x216xf32>
    %47 = vector.extract_strided_slice %44 {offsets = [9, 0], sizes = [104, 216], strides = [1, 1]} : vector<120x216xf32> to vector<104x216xf32>
    %48 = vector.extract_strided_slice %44 {offsets = [10, 0], sizes = [104, 216], strides = [1, 1]} : vector<120x216xf32> to vector<104x216xf32>
    %49 = tpu.concatenate %45, %46, %47, %48 in 1 : vector<104x216xf32>, vector<104x216xf32>, vector<104x216xf32>, vector<104x216xf32> -> vector<104x864xf32>
    %c8 = arith.constant 8 : index
    %c0_19 = arith.constant 0 : index
    %50 = vector.load %arg1[%c8, %c0_19] : memref<1368x128xf32, #tpu.memory_space<vmem>>, vector<864x66xf32>
    %cst_20 = arith.constant dense<0.000000e+00> : vector<104x66xf32>
    %51 = tpu.matmul %49, %50, %cst_20 {dimension_numbers = #tpu.dot_dimension_numbers<[1], [0], [0], [1], [0, 0, 1, 1], [], []>} : vector<104x864xf32>, vector<864x66xf32>, vector<104x66xf32> -> vector<104x66xf32>
    %c1361 = arith.constant 1361 : index
    %c0_21 = arith.constant 0 : index
    %52 = vector.load %arg1[%c1361, %c0_21] : memref<1368x128xf32, #tpu.memory_space<vmem>>, vector<1x66xf32>
    %53 = vector.broadcast %52 : vector<1x66xf32> to vector<104x66xf32>
    %54 = arith.addf %51, %53 : vector<104x66xf32>
    %cst_22 = arith.constant 0.000000e+00 : f32
    %55 = vector.broadcast %cst_22 : f32 to vector<104x66xf32>
    %56 = arith.maximumf %54, %55 : vector<104x66xf32>
    %c1192 = arith.constant 1192 : index
    %c0_23 = arith.constant 0 : index
    %57 = vector.load %arg1[%c1192, %c0_23] : memref<1368x128xf32, #tpu.memory_space<vmem>>, vector<66x6xf32>
    %cst_24 = arith.constant dense<0.000000e+00> : vector<104x6xf32>
    %58 = tpu.matmul %56, %57, %cst_24 {dimension_numbers = #tpu.dot_dimension_numbers<[1], [0], [0], [1], [0, 0, 1, 1], [], []>} : vector<104x66xf32>, vector<66x6xf32>, vector<104x6xf32> -> vector<104x6xf32>
    %c1362 = arith.constant 1362 : index
    %c0_25 = arith.constant 0 : index
    %59 = vector.load %arg1[%c1362, %c0_25] : memref<1368x128xf32, #tpu.memory_space<vmem>>, vector<1x6xf32>
    %60 = vector.broadcast %59 : vector<1x6xf32> to vector<104x6xf32>
    %61 = arith.addf %58, %60 : vector<104x6xf32>
    %cst_26 = arith.constant 0.000000e+00 : f32
    %62 = vector.broadcast %cst_26 : f32 to vector<104x6xf32>
    %63 = arith.maximumf %61, %62 : vector<104x6xf32>
    %c1336 = arith.constant 1336 : index
    %c0_27 = arith.constant 0 : index
    %64 = vector.load %arg1[%c1336, %c0_27] : memref<1368x128xf32, #tpu.memory_space<vmem>>, vector<6x1xf32>
    %cst_28 = arith.constant dense<0.000000e+00> : vector<104x1xf32>
    %65 = tpu.matmul %63, %64, %cst_28 {dimension_numbers = #tpu.dot_dimension_numbers<[1], [0], [0], [1], [0, 0, 1, 1], [], []>} : vector<104x6xf32>, vector<6x1xf32>, vector<104x1xf32> -> vector<104x1xf32>
    %c1363 = arith.constant 1363 : index
    %c0_29 = arith.constant 0 : index
    %66 = vector.load %arg1[%c1363, %c0_29] : memref<1368x128xf32, #tpu.memory_space<vmem>>, vector<1x1xf32>
    %67 = vector.broadcast %66 : vector<1x1xf32> to vector<104x1xf32>
    %68 = arith.addf %65, %67 : vector<104x1xf32>
    %c1352 = arith.constant 1352 : index
    %c0_30 = arith.constant 0 : index
    %69 = vector.load %arg1[%c1352, %c0_30] : memref<1368x128xf32, #tpu.memory_space<vmem>>, vector<2x104xf32>
    %c872 = arith.constant 872 : index
    %c0_31 = arith.constant 0 : index
    %70 = vector.load %arg1[%c872, %c0_31] : memref<1368x128xf32, #tpu.memory_space<vmem>>, vector<104x66xf32>
    %71 = vector.broadcast %68 : vector<104x1xf32> to vector<104x66xf32>
    %72 = arith.mulf %71, %70 : vector<104x66xf32>
    %cst_32 = arith.constant dense<0.000000e+00> : vector<2x66xf32>
    %73 = tpu.matmul %69, %72, %cst_32 {dimension_numbers = #tpu.dot_dimension_numbers<[1], [0], [0], [1], [0, 0, 1, 1], [], []>} : vector<2x104xf32>, vector<104x66xf32>, vector<2x66xf32> -> vector<2x66xf32>
    %c1364 = arith.constant 1364 : index
    %c0_33 = arith.constant 0 : index
    %74 = vector.load %arg1[%c1364, %c0_33] : memref<1368x128xf32, #tpu.memory_space<vmem>>, vector<1x66xf32>
    %75 = vector.broadcast %74 : vector<1x66xf32> to vector<2x66xf32>
    %76 = arith.addf %73, %75 : vector<2x66xf32>
    %cst_34 = arith.constant 0.000000e+00 : f32
    %77 = vector.broadcast %cst_34 : f32 to vector<2x66xf32>
    %78 = arith.maximumf %76, %77 : vector<2x66xf32>
    %c264 = arith.constant 264 : index
    %c0_35 = arith.constant 0 : index
    %79 = vector.load %arg2[%c264, %c0_35] : memref<344x216xf32, #tpu.memory_space<vmem>>, vector<66x216xf32>
    %cst_36 = arith.constant dense<0.000000e+00> : vector<2x216xf32>
    %80 = tpu.matmul %78, %79, %cst_36 {dimension_numbers = #tpu.dot_dimension_numbers<[1], [0], [0], [1], [0, 0, 1, 1], [], []>} : vector<2x66xf32>, vector<66x216xf32>, vector<2x216xf32> -> vector<2x216xf32>
    %c337 = arith.constant 337 : index
    %c0_37 = arith.constant 0 : index
    %81 = vector.load %arg2[%c337, %c0_37] : memref<344x216xf32, #tpu.memory_space<vmem>>, vector<1x216xf32>
    %82 = vector.broadcast %81 : vector<1x216xf32> to vector<2x216xf32>
    %83 = arith.addf %80, %82 : vector<2x216xf32>
    %cst_38 = arith.constant 0.000000e+00 : f32
    %84 = vector.broadcast %cst_38 : f32 to vector<2x216xf32>
    %85 = arith.maximumf %83, %84 : vector<2x216xf32>
    %c976 = arith.constant 976 : index
    %c0_39 = arith.constant 0 : index
    %86 = vector.load %arg1[%c976, %c0_39] : memref<1368x128xf32, #tpu.memory_space<vmem>>, vector<216x66xf32>
    %cst_40 = arith.constant dense<0.000000e+00> : vector<2x66xf32>
    %87 = tpu.matmul %85, %86, %cst_40 {dimension_numbers = #tpu.dot_dimension_numbers<[1], [0], [0], [1], [0, 0, 1, 1], [], []>} : vector<2x216xf32>, vector<216x66xf32>, vector<2x66xf32> -> vector<2x66xf32>
    %c1365 = arith.constant 1365 : index
    %c0_41 = arith.constant 0 : index
    %88 = vector.load %arg1[%c1365, %c0_41] : memref<1368x128xf32, #tpu.memory_space<vmem>>, vector<1x66xf32>
    %89 = vector.broadcast %88 : vector<1x66xf32> to vector<2x66xf32>
    %90 = arith.addf %87, %89 : vector<2x66xf32>
    %cst_42 = arith.constant 0.000000e+00 : f32
    %91 = vector.broadcast %cst_42 : f32 to vector<2x66xf32>
    %92 = arith.maximumf %90, %91 : vector<2x66xf32>
    %c1264 = arith.constant 1264 : index
    %c0_43 = arith.constant 0 : index
    %93 = vector.load %arg1[%c1264, %c0_43] : memref<1368x128xf32, #tpu.memory_space<vmem>>, vector<66x6xf32>
    %cst_44 = arith.constant dense<0.000000e+00> : vector<2x6xf32>
    %94 = tpu.matmul %92, %93, %cst_44 {dimension_numbers = #tpu.dot_dimension_numbers<[1], [0], [0], [1], [0, 0, 1, 1], [], []>} : vector<2x66xf32>, vector<66x6xf32>, vector<2x6xf32> -> vector<2x6xf32>
    %c1366 = arith.constant 1366 : index
    %c0_45 = arith.constant 0 : index
    %95 = vector.load %arg1[%c1366, %c0_45] : memref<1368x128xf32, #tpu.memory_space<vmem>>, vector<1x6xf32>
    %96 = vector.broadcast %95 : vector<1x6xf32> to vector<2x6xf32>
    %97 = arith.addf %94, %96 : vector<2x6xf32>
    %cst_46 = arith.constant 0.000000e+00 : f32
    %98 = vector.broadcast %cst_46 : f32 to vector<2x6xf32>
    %99 = arith.maximumf %97, %98 : vector<2x6xf32>
    %c1344 = arith.constant 1344 : index
    %c0_47 = arith.constant 0 : index
    %100 = vector.load %arg1[%c1344, %c0_47] : memref<1368x128xf32, #tpu.memory_space<vmem>>, vector<6x1xf32>
    %cst_48 = arith.constant dense<0.000000e+00> : vector<2x1xf32>
    %101 = tpu.matmul %99, %100, %cst_48 {dimension_numbers = #tpu.dot_dimension_numbers<[1], [0], [0], [1], [0, 0, 1, 1], [], []>} : vector<2x6xf32>, vector<6x1xf32>, vector<2x1xf32> -> vector<2x1xf32>
    %c1367 = arith.constant 1367 : index
    %c0_49 = arith.constant 0 : index
    %102 = vector.load %arg1[%c1367, %c0_49] : memref<1368x128xf32, #tpu.memory_space<vmem>>, vector<1x1xf32>
    %103 = vector.broadcast %102 : vector<1x1xf32> to vector<2x1xf32>
    %104 = arith.addf %101, %103 : vector<2x1xf32>
    %cst_50 = arith.constant 0.000000e+00 : f32
    %105 = vector.broadcast %cst_50 : f32 to vector<2x1xf32>
    %106 = arith.maximumf %104, %105 : vector<2x1xf32>
    %107 = arith.negf %106 : vector<2x1xf32>
    %108 = math.exp %107 : vector<2x1xf32>
    %cst_51 = arith.constant 1.000000e+00 : f32
    %109 = vector.broadcast %cst_51 : f32 to vector<2x1xf32>
    %110 = arith.addf %109, %108 : vector<2x1xf32>
    %111 = arith.divf %109, %110 : vector<2x1xf32>
    %c0_52 = arith.constant 0 : index
    %c0_53 = arith.constant 0 : index
    %112 = vector.load %arg3[%c0_52, %c0_53] : memref<2x1xf32, #tpu.memory_space<vmem>>, vector<2x1xf32>
    tpu.vector_store %arg3[%c0_52, %c0_53], %111 {strides = array<i32>} : memref<2x1xf32, #tpu.memory_space<vmem>>, vector<2x1xf32>,
    return
  }
}

</mosaic_0001>

<bundles_post_ra>
// kernel: lenet_forward.1
= control target key start
LH: loop header
LB: loop body
LE: loop exit
PB: predicated region body
PF: predicated region fallthrough
CT: control target
= control target key end

     0   :  { %vm14_vm0 = vcmask 7168   ;;  %v4609_v0 = vmov 0   ;;  %v4610_v1 = vmov 0.0   ;;  %vm65_vm1 = vcmask 5120   ;;  %s4611_s9 = smov 66   ;;  %s4612_s10 = smov 70   ;;  %s6961_s0 = inlined_call_operand.vmem [shape: f32[126,1], index: 0, kind: input, shape index: {}]   ;;  %s6962_s2 = inlined_call_operand.vmem [shape: f32[344,216], index: 2, kind: input, shape index: {}]   ;;  %s6963_s1 = inlined_call_operand.vmem [shape: f32[1368,128], index: 1, kind: input, shape index: {}]   ;;  %s6964_s3 = inlined_call_operand.vmem [shape: f32[2,1], index: 3, kind: output, shape index: {}]  }
   0x1   :  { %4414 = vset.pattern.permute.xlu1 %v4609_v0  ;;  %4413 = vset.pattern.permute.xlu0 %v4609_v0  ;;  %17 = vst.msk [vmem:[#allocation2 + $0x10] sm:$0xff] %vm14_vm0, %v4610_v1  ;;  %v36_v2 = vld [vmem:[%s6961_s0 + $0x10] sm:$0xff]  ;;  %15 = vst.msk [vmem:[#allocation2] sm:$0xff] %vm14_vm0, %v4610_v1  ;;  %v34_v3 = vld [vmem:[%s6961_s0] sm:$0xff]  ;;  %vm666_vm2 = vcmask 1046528   ;;  %vm791_vm3 = vcmask 1045504  }
   0x2   :  { %16 = vst.msk [vmem:[#allocation2 + $0x8] sm:$0xff] %vm14_vm0, %v4610_v1  ;;  %18 = vst.msk [vmem:[#allocation2 + $0x18] sm:$0xff] %vm14_vm0, %v4610_v1  ;;  %v35_v4 = vld [vmem:[%s6961_s0 + $0x8] sm:$0xff]  ;;  %v37_v5 = vld [vmem:[%s6961_s0 + $0x18] sm:$0xff]  ;;  %1281 = vmatprep.mubr.f32.mxu1 %v4610_v1  ;;  %s4613_s11 = smov 4   ;;  %vm884_vm4 = vcmask 31744  }
   0x3   :  { %19 = vst.msk [vmem:[#allocation2 + $0x20] sm:$0xff] %vm14_vm0, %v4610_v1  ;;  %20 = vst.msk [vmem:[#allocation2 + $0x28] sm:$0xff] %vm14_vm0, %v4610_v1  ;;  %v38_v6 = vld [vmem:[%s6961_s0 + $0x20] sm:$0xff]  ;;  %v39_v7 = vld [vmem:[%s6961_s0 + $0x28] sm:$0xff]  ;;  %vm900_vm5 = vcmask 572416   ;;  %vm868_vm6 = vcmask 539648  }
   0x4   :  { %21 = vst.msk [vmem:[#allocation2 + $0x30] sm:$0xff] %vm14_vm0, %v4610_v1  ;;  %22 = vst.msk [vmem:[#allocation2 + $0x38] sm:$0xff] %vm14_vm0, %v4610_v1  ;;  %v40_v8 = vld [vmem:[%s6961_s0 + $0x30] sm:$0xff]  ;;  %v41_v9 = vld [vmem:[%s6961_s0 + $0x38] sm:$0xff]  ;;  %vm995_vm7 = vcmask 64512   ;;  %s4614_s25 = smov 88  }
   0x5   :  { %23 = vst.msk [vmem:[#allocation2 + $0x40] sm:$0xff] %vm14_vm0, %v4610_v1  ;;  %24 = vst.msk [vmem:[#allocation2 + $0x48] sm:$0xff] %vm14_vm0, %v4610_v1  ;;  %v42_v10 = vld [vmem:[%s6961_s0 + $0x40] sm:$0xff]  ;;  %v43_v11 = vld [vmem:[%s6961_s0 + $0x48] sm:$0xff]  ;;  %s4616_s7 = smov 48   ;;  %vm4617_vm8 = vmmov 0  }
   0x6   :  { %25 = vst.msk [vmem:[#allocation2 + $0x50] sm:$0xff] %vm14_vm0, %v4610_v1  ;;  %26 = vst.msk [vmem:[#allocation2 + $0x58] sm:$0xff] %vm14_vm0, %v4610_v1  ;;  %v44_v12 = vld [vmem:[%s6961_s0 + $0x50] sm:$0xff]  ;;  %v45_v13 = vld [vmem:[%s6961_s0 + $0x58] sm:$0xff]  ;;  %s4618_s28 = smov 8   ;;  %vm1500_vm9 = vcmask 719872  }
   0x7   :  { %27 = vst.msk [vmem:[#allocation2 + $0x60] sm:$0xff] %vm14_vm0, %v4610_v1  ;;  %28 = vst.msk [vmem:[#allocation2 + $0x68] sm:$0xff] %vm14_vm0, %v4610_v1  ;;  %v46_v14 = vld [vmem:[%s6961_s0 + $0x60] sm:$0xff]  ;;  %v47_v15 = vld [vmem:[%s6961_s0 + $0x68] sm:$0xff]  ;;  %vm1611_vm10 = vcmask 392192   ;;  %vm1948_vm11 = vcmask 785408  }
   0x8   :  { %29 = vst.msk [vmem:[#allocation2 + $0x70] sm:$0xff] %vm14_vm0, %v4610_v1  ;;  %30 = vst.msk [vmem:[#allocation2 + $0x78] sm:$0xff] %vm14_vm0, %v4610_v1  ;;  %v48_v16 = vld [vmem:[%s6961_s0 + $0x70] sm:$0xff]  ;;  %v49_v17 = vld [vmem:[%s6961_s0 + $0x78] sm:$0x3f]  ;;  %vm2561_vm12 = vcmask 1041408  }
   0x9   :  { %31 = vst.msk [vmem:[#allocation2 + $0x80] sm:$0xff] %vm14_vm0, %v4610_v1  ;;  %32 = vst.msk [vmem:[#allocation2 + $0x88] sm:$0xff] %vm14_vm0, %v4610_v1  ;;  %v917_v58 = vld [vmem:[%s6962_s2 + $0x8] sm:$0xff]  ;;  %v919_v59 = vld [vmem:[%s6962_s2 + $0x18] sm:$0xff]  ;;  %vm2714_vm13 = vcmask 48128   ;;  %vm2984_vm14 = vcmask 850944  }
   0xa   :  { %33 = vst.msk [vmem:[#allocation2 + $0x90] sm:$0xff] %vm14_vm0, %v4610_v1  ;;  %52 = vst.msk [vmem:[#allocation2 + $0x10] sm:$0xff] %vm14_vm0, %v36_v2  ;;  %v4056_v60 = vpack.c.bf16 %v919_v59, %v917_v58  ;;  %v916_v61 = vld [vmem:[%s6962_s2] sm:$0xff]  ;;  %v918_v62 = vld [vmem:[%s6962_s2 + $0x10] sm:$0xff]  ;;  %vm3458_vm15 = vcmask 1024  }
   0xb   :  { %50 = vst.msk [vmem:[#allocation2] sm:$0xff] %vm14_vm0, %v34_v3  ;;  %51 = vst.msk [vmem:[#allocation2 + $0x8] sm:$0xff] %vm14_vm0, %v35_v4  ;;  %v4058_v0 = vpack.c.bf16 %v918_v62, %v916_v61  ;;  %v921_v2 = vld [vmem:[%s6962_s2 + $0x28] sm:$0xff]  ;;  %v923_v3 = vld [vmem:[%s6962_s2 + $0x38] sm:$0xff] }
   0xc   :  { %53 = vst.msk [vmem:[#allocation2 + $0x18] sm:$0xff] %vm14_vm0, %v37_v5  ;;  %54 = vst.msk [vmem:[#allocation2 + $0x20] sm:$0xff] %vm14_vm0, %v38_v6  ;;  %4057 = vmatprep.subr.bf16.mxu0 %v4056_v60  ;;  %v4060_v4 = vpack.c.bf16 %v923_v3, %v921_v2  ;;  %v920_v5 = vld [vmem:[%s6962_s2 + $0x20] sm:$0xff]  ;;  %v922_v6 = vld [vmem:[%s6962_s2 + $0x30] sm:$0xff] }
   0xd   :  { %55 = vst.msk [vmem:[#allocation2 + $0x28] sm:$0xff] %vm14_vm0, %v39_v7  ;;  %56 = vst.msk [vmem:[#allocation2 + $0x30] sm:$0xff] %vm14_vm0, %v40_v8  ;;  %4059 = vmatpush1.bf16.msra.mxu0 %v4058_v0  ;;  %v949_v60 = vld [vmem:[%s6962_s2 + $0x108] sm:$0xff]  ;;  %v951_v61 = vld [vmem:[%s6962_s2 + $0x118] sm:$0xff] }
   0xe   :  { %57 = vst.msk [vmem:[#allocation2 + $0x38] sm:$0xff] %vm14_vm0, %v41_v9  ;;  %58 = vst.msk [vmem:[#allocation2 + $0x40] sm:$0xff] %vm14_vm0, %v42_v10  ;;  %v4062_v9 = vpack.c.bf16 %v922_v6, %v920_v5  ;;  %4061 = vmatprep.subr.bf16.mxu0 %v4060_v4  ;;  %v925_v10 = vld [vmem:[%s6962_s2 + $0x48] sm:$0xff]  ;;  %v948_v0 = vld [vmem:[%s6962_s2 + $0x100] sm:$0xff] }
   0xf   :  { %59 = vst.msk [vmem:[#allocation2 + $0x48] sm:$0xff] %vm14_vm0, %v43_v11  ;;  %60 = vst.msk [vmem:[#allocation2 + $0x50] sm:$0xff] %vm14_vm0, %v44_v12  ;;  %v927_v11 = vld [vmem:[%s6962_s2 + $0x58] sm:$0xff]  ;;  %v950_v2 = vld [vmem:[%s6962_s2 + $0x110] sm:$0xff] }
  0x10   :  { %61 = vst.msk [vmem:[#allocation2 + $0x58] sm:$0xff] %vm14_vm0, %v45_v13  ;;  %62 = vst.msk [vmem:[#allocation2 + $0x60] sm:$0xff] %vm14_vm0, %v46_v14  ;;  %v4064_v12 = vpack.c.bf16 %v927_v11, %v925_v10  ;;  %v924_v13 = vld [vmem:[%s6962_s2 + $0x40] sm:$0xff]  ;;  %v926_v14 = vld [vmem:[%s6962_s2 + $0x50] sm:$0xff]  ;;  %v4090_v3 = vpack.c.bf16 %v950_v2, %v948_v0 }
  0x11   :  { %63 = vst.msk [vmem:[#allocation2 + $0x68] sm:$0xff] %vm14_vm0, %v47_v15  ;;  %64 = vst.msk [vmem:[#allocation2 + $0x70] sm:$0xff] %vm14_vm0, %v48_v16  ;;  %v70_v18 = vld [vmem:[#allocation2 + $0x10] sm:$0xff]  ;;  %4063 = vmatpush1.bf16.msra.mxu0 %v4062_v9  ;;  %v4066_v16 = vpack.c.bf16 %v926_v14, %v924_v13  ;;  %v952_v11 = vld [vmem:[%s6962_s2 + $0x120] sm:$0xff] }
  0x12   :  { %66 = vst.msk [vmem:[#allocation2 + $0x78] sm:$0x3f] %vm65_vm1, %v49_v17  ;;  %v68_v19 = vld [vmem:[#allocation2] sm:$0xff]  ;;  %97 = vperm.xlu1 %4414, %v70_v18   ;;  %v69_v21 = vld [vmem:[#allocation2 + $0x8] sm:$0xff]  ;;  %4065 = vmatprep.subr.bf16.mxu0 %v4064_v12  ;;  %v931_v18 = vld [vmem:[%s6962_s2 + $0x78] sm:$0xff] }
  0x13   :  { %87 = vperm.xlu0 %4413, %v68_v19   ;;  %v191_v20 = vld [vmem:[#allocation2 + $0x1] sm:$0xff]  ;;  %v193_v22 = vld [vmem:[#allocation2 + $0x11] sm:$0xff]  ;;  %v192_v23 = vld [vmem:[#allocation2 + $0x9] sm:$0xff] }
  0x14   :  { %v71_v24 = vld [vmem:[#allocation2 + $0x18] sm:$0xff]  ;;  %v471_v26 = vld [vmem:[#allocation2 + $0xa] sm:$0xff]  ;;  %v72_v29 = vld [vmem:[#allocation2 + $0x20] sm:$0xff] }
  0x15   :  { %v333_v25 = vld [vmem:[#allocation2 + $0x19] sm:$0xff]  ;;  %v334_v30 = vld [vmem:[#allocation2 + $0x21] sm:$0xff]  ;;  %v335_v33 = vld [vmem:[#allocation2 + $0x29] sm:$0xff]  ;;  %4067 = vmatpush1.bf16.msra.mxu0 %v4066_v16 }
  0x16   :  { %210 = vperm.xlu1 %4414, %v191_v20   ;;  %v473_v27 = vld [vmem:[#allocation2 + $0x1a] sm:$0xff]  ;;  %v472_v28 = vld [vmem:[#allocation2 + $0x12] sm:$0xff]  ;;  %v474_v31 = vld [vmem:[#allocation2 + $0x22] sm:$0xff] }
  0x17   :  { %92 = vperm.xlu0 %4413, %v69_v21   ;;  %v73_v32 = vld [vmem:[#allocation2 + $0x28] sm:$0xff]  ;;  %v74_v35 = vld [vmem:[#allocation2 + $0x30] sm:$0xff]  ;;  %v75_v38 = vld [vmem:[#allocation2 + $0x38] sm:$0xff] }
  0x18   :  { %v475_v34 = vld [vmem:[#allocation2 + $0x2a] sm:$0xff]  ;;  %v476_v37 = vld [vmem:[#allocation2 + $0x32] sm:$0xff]  ;;  %v477_v40 = vld [vmem:[#allocation2 + $0x3a] sm:$0xff] }
  0x19   :  { %v336_v36 = vld [vmem:[#allocation2 + $0x31] sm:$0xff]  ;;  %v337_v39 = vld [vmem:[#allocation2 + $0x39] sm:$0xff]  ;;  %v338_v42 = vld [vmem:[#allocation2 + $0x41] sm:$0xff] }
  0x1a   :  { %220 = vperm.xlu1 %4414, %v193_v22   ;;  %v76_v41 = vld [vmem:[#allocation2 + $0x40] sm:$0xff]  ;;  %v77_v44 = vld [vmem:[#allocation2 + $0x48] sm:$0xff]  ;;  %v78_v47 = vld [vmem:[#allocation2 + $0x50] sm:$0xff] }
  0x1b   :  { %215 = vperm.xlu0 %4413, %v192_v23   ;;  %v478_v43 = vld [vmem:[#allocation2 + $0x42] sm:$0xff]  ;;  %v479_v46 = vld [vmem:[#allocation2 + $0x4a] sm:$0xff]  ;;  %v480_v49 = vld [vmem:[#allocation2 + $0x52] sm:$0xff] }
  0x1c   :  { %v339_v45 = vld [vmem:[#allocation2 + $0x49] sm:$0xff]  ;;  %v340_v48 = vld [vmem:[#allocation2 + $0x51] sm:$0xff]  ;;  %v341_v51 = vld [vmem:[#allocation2 + $0x59] sm:$0xff] }
  0x1d   :  { %v79_v50 = vld [vmem:[#allocation2 + $0x58] sm:$0xff]  ;;  %v80_v53 = vld [vmem:[#allocation2 + $0x60] sm:$0xff]  ;;  %v81_v56 = vld [vmem:[#allocation2 + $0x68] sm:$0xff] }
  0x1e   :  { %355 = vperm.xlu1 %4414, %v193_v22   ;;  %v481_v52 = vld [vmem:[#allocation2 + $0x5a] sm:$0xff]  ;;  %v482_v55 = vld [vmem:[#allocation2 + $0x62] sm:$0xff]  ;;  %v483_v63 = vld [vmem:[#allocation2 + $0x6a] sm:$0xff] }
  0x1f   :  { %350 = vperm.xlu0 %4413, %v192_v23   ;;  %v342_v54 = vld [vmem:[#allocation2 + $0x61] sm:$0xff]  ;;  %v343_v57 = vld [vmem:[#allocation2 + $0x69] sm:$0xff]  ;;  %v344_v8 = vld [vmem:[#allocation2 + $0x71] sm:$0xff] }
  0x20   :  { %v82_v7 = vld [vmem:[#allocation2 + $0x70] sm:$0xff]  ;;  %v929_v17 = vld [vmem:[%s6962_s2 + $0x68] sm:$0xff]  ;;  %v928_v20 = vld [vmem:[%s6962_s2 + $0x60] sm:$0xff] }
  0x21   :  { %v484_v15 = vld [vmem:[#allocation2 + $0x72] sm:$0xff]  ;;  %v4068_v19 = vpack.c.bf16 %v931_v18, %v929_v17  ;;  %v67_v13 = vld [vmem:[%s6963_s1] sm:$0xf]  ;;  %v969_v2 = vld [vmem:[%s6962_s2 + $0x1a8] sm:$0xff] }
  0x22   :  { %102 = vperm.xlu1 %4414, %v71_v24   ;;  %v930_v21 = vld [vmem:[%s6962_s2 + $0x70] sm:$0xff]  ;;  %v83_v22 = vld [vmem:[#allocation2 + $0x78] sm:$0xff] }
  0x23   :  { %360 = vperm.xlu0 %4413, %v333_v25   ;;  %v345_v23 = vld [vmem:[#allocation2 + $0x79] sm:$0xff]  ;;  %v4070_v24 = vpack.c.bf16 %v930_v21, %v928_v20  ;;  %4069 = vmatprep.subr.bf16.mxu0 %v4068_v19  ;;  %v954_v12 = vld [vmem:[%s6962_s2 + $0x130] sm:$0xff]  ;;  %v957_v19 = vld [vmem:[%s6962_s2 + $0x148] sm:$0xff] }
  0x24   :  { %v4094_v14 = vpack.c.bf16 %v954_v12, %v952_v11  ;;  %v959_v20 = vld [vmem:[%s6962_s2 + $0x158] sm:$0xff] }
  0x25   :  { %4071 = vmatpush1.bf16.msra.mxu0 %v4070_v24  ;;  %v956_v24 = vld [vmem:[%s6962_s2 + $0x140] sm:$0xff] }
  0x26   :  { %490 = vperm.xlu1 %4414, %v471_v26   ;;  %v935_v26 = vld [vmem:[%s6962_s2 + $0x98] sm:$0xff] }
  0x27   :  { %225 = vperm.xlu0 %4413, %v333_v25   ;;  %v933_v25 = vld [vmem:[%s6962_s2 + $0x88] sm:$0xff] }
  0x2a   :  { %500 = vperm.xlu1 %4414, %v473_v27   ;;  %v4072_v27 = vpack.c.bf16 %v935_v26, %v933_v25  ;;  %v958_v25 = vld [vmem:[%s6962_s2 + $0x150] sm:$0xff] }
  0x2b   :  { %495 = vperm.xlu0 %4413, %v472_v28   ;;  %v932_v28 = vld [vmem:[%s6962_s2 + $0x80] sm:$0xff]  ;;  %v4098_v26 = vpack.c.bf16 %v958_v25, %v956_v24 }
  0x2c   :  { %4073 = vmatprep.subr.bf16.mxu0 %v4072_v27  ;;  %v961_v27 = vld [vmem:[%s6962_s2 + $0x168] sm:$0xff] }
  0x2e   :  { %107 = vperm.xlu1 %4414, %v72_v29   ;;  %v934_v29 = vld [vmem:[%s6962_s2 + $0x90] sm:$0xff] }
  0x2f   :  { %365 = vperm.xlu0 %4413, %v334_v30  }
  0x32   :  { %505 = vperm.xlu1 %4414, %v474_v31   ;;  %v4074_v31 = vpack.c.bf16 %v934_v29, %v932_v28  ;;  %v963_v28 = vld [vmem:[%s6962_s2 + $0x178] sm:$0xff] }
  0x33   :  { %230 = vperm.xlu0 %4413, %v334_v30   ;;  %v485_v30 = vld [vmem:[#allocation2 + $0x7a] sm:$0xff] }
  0x34   :  { %4075 = vmatpush1.bf16.msra.mxu0 %v4074_v31  ;;  %v4100_v31 = vpack.c.bf16 %v963_v28, %v961_v27  ;;  %v974_v27 = vld [vmem:[%s6962_s2 + $0x1d0] sm:$0xff] }
  0x36   :  { %112 = vperm.xlu1 %4414, %v73_v32   ;;  %v937_v32 = vld [vmem:[%s6962_s2 + $0xa8] sm:$0xff] }
  0x37   :  { %370 = vperm.xlu0 %4413, %v335_v33  }
  0x3a   :  { %510 = vperm.xlu1 %4414, %v475_v34  }
  0x3b   :  { %235 = vperm.xlu0 %4413, %v335_v33   ;;  %v939_v33 = vld [vmem:[%s6962_s2 + $0xb8] sm:$0xff] }
  0x3c   :  { %v4076_v34 = vpack.c.bf16 %v939_v33, %v937_v32 }
  0x3e   :  { %117 = vperm.xlu1 %4414, %v74_v35   ;;  %v936_v35 = vld [vmem:[%s6962_s2 + $0xa0] sm:$0xff]  ;;  %4077 = vmatprep.subr.bf16.mxu0 %v4076_v34 }
  0x3f   :  { %375 = vperm.xlu0 %4413, %v336_v36  }
  0x42   :  { %515 = vperm.xlu1 %4414, %v476_v37   ;;  %v84_v37 = vld [vmem:[#allocation2 + $0x80] sm:$0xff] }
  0x43   :  { %240 = vperm.xlu0 %4413, %v336_v36   ;;  %v938_v36 = vld [vmem:[%s6962_s2 + $0xb0] sm:$0xff] }
  0x46   :  { %122 = vperm.xlu1 %4414, %v75_v38   ;;  %v346_v38 = vld [vmem:[#allocation2 + $0x81] sm:$0xff] }
  0x47   :  { %380 = vperm.xlu0 %4413, %v337_v39  }
  0x4a   :  { %520 = vperm.xlu1 %4414, %v477_v40   ;;  %v941_v40 = vld [vmem:[%s6962_s2 + $0xc8] sm:$0xff] }
  0x4b   :  { %245 = vperm.xlu0 %4413, %v337_v39   ;;  %v4078_v39 = vpack.c.bf16 %v938_v36, %v936_v35 }
  0x4d   :  { %4079 = vmatpush1.bf16.msra.mxu0 %v4078_v39 }
  0x4e   :  { %127 = vperm.xlu1 %4414, %v76_v41   ;;  %v943_v41 = vld [vmem:[%s6962_s2 + $0xd8] sm:$0xff] }
  0x4f   :  { %385 = vperm.xlu0 %4413, %v338_v42  }
  0x52   :  { %525 = vperm.xlu1 %4414, %v478_v43   ;;  %v940_v43 = vld [vmem:[%s6962_s2 + $0xc0] sm:$0xff] }
  0x53   :  { %250 = vperm.xlu0 %4413, %v338_v42   ;;  %v4080_v42 = vpack.c.bf16 %v943_v41, %v941_v40 }
  0x55   :  { %4081 = vmatprep.subr.bf16.mxu0 %v4080_v42  ;;  %v965_v42 = vld [vmem:[%s6962_s2 + $0x188] sm:$0xff] }
  0x56   :  { %132 = vperm.xlu1 %4414, %v77_v44   ;;  %v942_v44 = vld [vmem:[%s6962_s2 + $0xd0] sm:$0xff] }
  0x57   :  { %390 = vperm.xlu0 %4413, %v339_v45  }
  0x5a   :  { %530 = vperm.xlu1 %4414, %v479_v46   ;;  %v4082_v46 = vpack.c.bf16 %v942_v44, %v940_v43  ;;  %v967_v43 = vld [vmem:[%s6962_s2 + $0x198] sm:$0xff] }
  0x5b   :  { %255 = vperm.xlu0 %4413, %v339_v45   ;;  %v486_v45 = vld [vmem:[#allocation2 + $0x82] sm:$0xff] }
  0x5c   :  { %4083 = vmatpush1.bf16.msra.mxu0 %v4082_v46 }
  0x5e   :  { %137 = vperm.xlu1 %4414, %v78_v47  }
  0x5f   :  { %395 = vperm.xlu0 %4413, %v340_v48  }
  0x62   :  { %535 = vperm.xlu1 %4414, %v480_v49   ;;  %v945_v49 = vld [vmem:[%s6962_s2 + $0xe8] sm:$0xff] }
  0x63   :  { %260 = vperm.xlu0 %4413, %v340_v48  }
  0x66   :  { %142 = vperm.xlu1 %4414, %v79_v50   ;;  %v947_v50 = vld [vmem:[%s6962_s2 + $0xf8] sm:$0xff] }
  0x67   :  { %400 = vperm.xlu0 %4413, %v341_v51  }
  0x6a   :  { %540 = vperm.xlu1 %4414, %v481_v52   ;;  %v4084_v52 = vpack.c.bf16 %v947_v50, %v945_v49 }
  0x6b   :  { %265 = vperm.xlu0 %4413, %v341_v51   ;;  %v170_v51 = vlaneseq }
  0x6c   :  { %4085 = vmatprep.subr.bf16.mxu0 %v4084_v52 }
  0x6d   :  { %v171_v62 = vshrl.u32 %v170_v51, 7 }
  0x6e   :  { %147 = vperm.xlu1 %4414, %v80_v53   ;;  %v944_v53 = vld [vmem:[%s6962_s2 + $0xe0] sm:$0xff] }
  0x6f   :  { %405 = vperm.xlu0 %4413, %v342_v54   ;;  %v4853_v4 = vsub.s32 1, %v171_v62  ;;  %v435_v9 = vsub.s32 2, %v171_v62 }
  0x71   :  { %v4873_v16 = vrot.slane %v67_v13, %v4853_v4  ;;  %v4881_v21 = vrot.slane %v67_v13, %v435_v9  ;;  %v968_v9 = vld [vmem:[%s6962_s2 + $0x1a0] sm:$0xff] }
  0x72   :  { %545 = vperm.xlu1 %4414, %v482_v55   ;;  %v487_v55 = vld [vmem:[#allocation2 + $0x8a] sm:$0xff] }
  0x73   :  { %270 = vperm.xlu0 %4413, %v342_v54   ;;  %v946_v54 = vld [vmem:[%s6962_s2 + $0xf0] sm:$0xff] }
  0x76   :  { %152 = vperm.xlu1 %4414, %v81_v56   ;;  %v347_v56 = vld [vmem:[#allocation2 + $0x89] sm:$0xff] }
  0x77   :  { %410 = vperm.xlu0 %4413, %v343_v57  }
  0x7a   :  { %550 = vperm.xlu1 %4414, %v483_v63   ;;  %v4088_v63 = vpack.c.bf16 %v951_v61, %v949_v60 }
  0x7b   :  { %275 = vperm.xlu0 %4413, %v343_v57   ;;  %v4086_v57 = vpack.c.bf16 %v946_v54, %v944_v53 }
  0x7d   :  { %4087 = vmatpush1.bf16.msra.mxu0 %v4086_v57 }
  0x7e   :  { %157 = vperm.xlu1 %4414, %v82_v7   ;;  %4089 = vmatprep.subr.bf16.mxu0 %v4088_v63  ;;  %v953_v7 = vld [vmem:[%s6962_s2 + $0x128] sm:$0xff] }
  0x7f   :  { %415 = vperm.xlu0 %4413, %v344_v8  }
  0x81   :  { %4091 = vmatpush1.bf16.msra.mxu0 %v4090_v3  ;;  %v971_v3 = vld [vmem:[%s6962_s2 + $0x1b8] sm:$0xff] }
  0x82   :  { %555 = vperm.xlu1 %4414, %v484_v15   ;;  %v4870_v15 = vsub.s32 0, %v171_v62 }
  0x83   :  { %280 = vperm.xlu0 %4413, %v344_v8   ;;  %v955_v8 = vld [vmem:[%s6962_s2 + $0x138] sm:$0xff] }
  0x84   :  { %v4092_v10 = vpack.c.bf16 %v955_v8, %v953_v7  ;;  %v4896_v29 = vrot.slane %v67_v13, %v4870_v15  ;;  %v4108_v8 = vpack.c.bf16 %v971_v3, %v969_v2 }
  0x86   :  { %162 = vperm.xlu1 %4414, %v83_v22   ;;  %4093 = vmatprep.subr.bf16.mxu0 %v4092_v10  ;;  %v575_v22 = vsub.s32 3, %v171_v62  ;;  %v970_v10 = vld [vmem:[%s6962_s2 + $0x1b0] sm:$0xff] }
  0x87   :  { %420 = vperm.xlu0 %4413, %v345_v23   ;;  %4095 = vmatpush1.bf16.msra.mxu0 %v4094_v14  ;;  %v4110_v11 = vpack.c.bf16 %v970_v10, %v968_v9 }
  0x88   :  { %v4902_v36 = vrot.slane %v67_v13, %v575_v22  ;;  %v975_v22 = vld [vmem:[%s6962_s2 + $0x1d8] sm:$0xff] }
  0x8a   :  { %560 = vperm.xlu1 %4414, %v485_v30  }
  0x8b   :  { %285 = vperm.xlu0 %4413, %v345_v23   ;;  %v4096_v23 = vpack.c.bf16 %v959_v20, %v957_v19  ;;  %v973_v20 = vld [vmem:[%s6962_s2 + $0x1c8] sm:$0xff] }
  0x8d   :  { %4097 = vmatprep.subr.bf16.mxu0 %v4096_v23  ;;  %v972_v23 = vld [vmem:[%s6962_s2 + $0x1c0] sm:$0xff] }
  0x8e   :  { %167 = vperm.xlu1 %4414, %v84_v37   ;;  %4099 = vmatpush1.bf16.msra.mxu0 %v4098_v26  ;;  %v960_v37 = vld [vmem:[%s6962_s2 + $0x160] sm:$0xff] }
  0x8f   :  { %425 = vperm.xlu0 %4413, %v346_v38   ;;  %4101 = vmatprep.subr.bf16.mxu0 %v4100_v31  ;;  %v4114_v31 = vpack.c.bf16 %v974_v27, %v972_v23 }
  0x91   :  { %v4825_v47 = vpop.permute.xlu1 %97 }
  0x92   :  { %v4827_v48 = vpop.permute.xlu0 %87  ;;  %565 = vperm.xlu1 %4414, %v486_v45   ;;  %v4104_v45 = vpack.c.bf16 %v967_v43, %v965_v42  ;;  %v176_v46 = vmul.f32 %v4896_v29, %v4825_v47  ;;  %v966_v47 = vld [vmem:[%s6962_s2 + $0x190] sm:$0xff] }
  0x93   :  { %290 = vperm.xlu0 %4413, %v346_v38   ;;  %v174_v34 = vmul.f32 %v4896_v29, %v4827_v48  ;;  %v962_v38 = vld [vmem:[%s6962_s2 + $0x170] sm:$0xff] }
  0x94   :  { %v4102_v41 = vpack.c.bf16 %v962_v38, %v960_v37 }
  0x95   :  { %v211_v58 = vpop.permute.xlu1 %210 }
  0x96   :  { %v93_v59 = vpop.permute.xlu0 %92  ;;  %570 = vperm.xlu1 %4414, %v487_v55   ;;  %v297_v30 = vmul.f32 %v4873_v16, %v211_v58  ;;  %4103 = vmatpush1.bf16.msra.mxu0 %v4102_v41  ;;  %v964_v55 = vld [vmem:[%s6962_s2 + $0x180] sm:$0xff]  ;;  %v4933_v58 = vld [vmem:[%s6963_s1 + $0x550] ss:$0 sm:$0xff] }
  0x97   :  { %430 = vperm.xlu0 %4413, %v347_v56   ;;  %v175_v48 = vmul.f32 %v4896_v29, %v93_v59  ;;  %4105 = vmatprep.subr.bf16.mxu0 %v4104_v45  ;;  %v4106_v59 = vpack.c.bf16 %v966_v47, %v964_v55  ;;  %v976_v45 = vld [vmem:[%s6962_s2 + $0x1e0] sm:$0xff] }
  0x98   :  { %v314_v44 = vadd.f32 %v297_v30, %v174_v34  ;;  %v4112_v30 = vpack.c.bf16 %v975_v22, %v973_v20 }
  0x99   :  { %v221_v5 = vpop.permute.xlu1 %220 }
  0x9a   :  { %v216_v6 = vpop.permute.xlu0 %215  ;;  %v299_v39 = vmul.f32 %v4873_v16, %v221_v5  ;;  %4107 = vmatpush1.bf16.msra.mxu0 %v4106_v59 }
  0x9b   :  { %v298_v40 = vmul.f32 %v4873_v16, %v216_v6  ;;  %4109 = vmatprep.subr.bf16.mxu0 %v4108_v8 }
  0x9c   :  { %v316_v56 = vadd.f32 %v299_v39, %v176_v46  ;;  %v977_v39 = vld [vmem:[%s6962_s2 + $0x1e8] sm:$0xff]  ;;  %v978_v46 = vld [vmem:[%s6962_s2 + $0x1f0] sm:$0xff] }
  0x9d   :  { %v356_v17 = vpop.permute.xlu1 %355  ;;  %v315_v57 = vadd.f32 %v298_v40, %v175_v48  ;;  %v979_v40 = vld [vmem:[%s6962_s2 + $0x1f8] sm:$0xff] }
  0x9e   :  { %v351_v18 = vpop.permute.xlu0 %350  ;;  %v438_v49 = vmul.f32 %v4881_v21, %v356_v17  ;;  %4111 = vmatpush1.bf16.msra.mxu0 %v4110_v11  ;;  %v4116_v48 = vpack.c.bf16 %v979_v40, %v977_v39 }
  0x9f   :  { %v437_v35 = vmul.f32 %v4881_v21, %v351_v18  ;;  %4113 = vmatprep.subr.bf16.mxu0 %v4112_v30 }
  0xa0   :  { %v455_v61 = vadd.f32 %v438_v49, %v315_v57  ;;  %v4118_v49 = vpack.c.bf16 %v978_v46, %v976_v45 }
  0xa1   :  { %v103_v32 = vpop.permute.xlu1 %102  ;;  %v454_v53 = vadd.f32 %v437_v35, %v314_v44 }
  0xa2   :  { %v361_v33 = vpop.permute.xlu0 %360  ;;  %v177_v24 = vmul.f32 %v4896_v29, %v103_v32  ;;  %4115 = vmatpush1.bf16.msra.mxu0 %v4114_v31 }
  0xa3   :  { %v439_v50 = vmul.f32 %v4881_v21, %v361_v33  ;;  %4117 = vmatprep.subr.bf16.mxu0 %v4116_v48 }
  0xa5   :  { %v491_v51 = vpop.permute.xlu1 %490  ;;  %v456_v62 = vadd.f32 %v439_v50, %v316_v56 }
  0xa6   :  { %v226_v52 = vpop.permute.xlu0 %225  ;;  %v577_v54 = vmul.f32 %v4902_v36, %v491_v51  ;;  %4119 = vmatpush1.bf16.msra.mxu0 %v4118_v49 }
  0xa7   :  { %v300_v12 = vmul.f32 %v4873_v16, %v226_v52 }
  0xa8   :  { %v594_v60 = vadd.f32 %v577_v54, %v454_v53 }
  0xa9   :  { %v501_v63 = vpop.permute.xlu1 %500  ;;  %v317_v33 = vadd.f32 %v300_v12, %v177_v24 }
  0xaa   :  { %v496_v0 = vpop.permute.xlu0 %495  ;;  %v4942_v5 = vadd.f32 %v4933_v58, %v594_v60  ;;  %v579_v6 = vmul.f32 %v4902_v36, %v501_v63 }
  0xab   :  { %v578_v7 = vmul.f32 %v4902_v36, %v496_v0 }
  0xac   :  { %v596_v13 = vadd.f32 %v579_v6, %v456_v62  ;;  %v633_v17 = vmax.f32 %v4942_v5, 0.0 }
  0xad   :  { %v595_v14 = vadd.f32 %v578_v7, %v455_v61  ;;  %v108_v18 = vpop.permute.xlu1 %107 }
  0xae   :  { %v366_v19 = vpop.permute.xlu0 %365  ;;  %v618_v25 = vadd.f32 %v4933_v58, %v596_v13  ;;  %v667_v32 = vrot.slane %v633_v17, 1  ;;  %v178_v54 = vmul.f32 %v4896_v29, %v108_v18 }
  0xaf   :  { %v617_v26 = vadd.f32 %v4933_v58, %v595_v14  ;;  %v440_v28 = vmul.f32 %v4881_v21, %v366_v19 }
  0xb0   :  { %v4970_v34 = vmax.f32 %v618_v25, 0.0 }
  0xb1   :  { %v4972_v35 = vmax.f32 %v617_v26, 0.0  ;;  %v506_v37 = vpop.permute.xlu1 %505  ;;  %v457_v41 = vadd.f32 %v440_v28, %v317_v33 }
  0xb2   :  { %v231_v38 = vpop.permute.xlu0 %230  ;;  %v580_v42 = vmul.f32 %v4902_v36, %v506_v37  ;;  %v670_v44 = vrot.slane %v4970_v34, 1  ;;  %v793_v61 = vrot.slane %v4970_v34, 2 }
  0xb3   :  { %v668_v43 = vrot.slane %v4972_v35, 1  ;;  %v301_v51 = vmul.f32 %v4873_v16, %v231_v38  ;;  %v792_v60 = vrot.slane %v4972_v35, 2 }
  0xb4   :  { %v597_v50 = vadd.f32 %v580_v42, %v457_v41 }
  0xb5   :  { %v669_v52 = vsel %vm666_vm2, %v667_v32, %v668_v43  ;;  %v671_v53 = vsel %vm666_vm2, %v668_v43, %v670_v44  ;;  %v113_v55 = vpop.permute.xlu1 %112  ;;  %v318_v63 = vadd.f32 %v301_v51, %v178_v54  ;;  %v794_v7 = vsel %vm791_vm3, %v792_v60, %v793_v61 }
  0xb6   :  { %v371_v47 = vpop.permute.xlu0 %370  ;;  %v4415_v56 = vpack.i.bf16 %v671_v53, %v669_v52  ;;  %v619_v57 = vadd.f32 %v4933_v58, %v597_v50  ;;  %v179_v18 = vmul.f32 %v4896_v29, %v113_v55 }
  0xb7   :  { %v441_v59 = vmul.f32 %v4881_v21, %v371_v47 }
  0xb8   :  { %4416 = vrot.lane.b32.xlu0 %v4415_v56, %s4611_s9  ;;  %v5000_v62 = vmax.f32 %v619_v57, 0.0 }
  0xb9   :  { %v511_v0 = vpop.permute.xlu1 %510  ;;  %v458_v3 = vadd.f32 %v441_v59, %v318_v63 }
  0xba   :  { %v236_v2 = vpop.permute.xlu0 %235  ;;  %v581_v6 = vmul.f32 %v4902_v36, %v511_v0  ;;  %v672_v8 = vrot.slane %v5000_v62, 1  ;;  %v795_v22 = vrot.slane %v5000_v62, 2 }
  0xbb   :  { %v302_v10 = vmul.f32 %v4873_v16, %v236_v2 }
  0xbc   :  { %823 = vrot.lane.b32.xlu0 %v794_v7, %s4612_s10  ;;  %v598_v9 = vadd.f32 %v581_v6, %v458_v3  ;;  %v673_v11 = vsel %vm666_vm2, %v670_v44, %v672_v8  ;;  %v796_v30 = vsel %vm791_vm3, %v793_v61, %v795_v22 }
  0xbd   :  { %v118_v12 = vpop.permute.xlu1 %117  ;;  %v4420_v14 = vpack.i.bf16 %v673_v11, %v671_v53  ;;  %v319_v24 = vadd.f32 %v302_v10, %v179_v18 }
  0xbe   :  { %v376_v13 = vpop.permute.xlu0 %375  ;;  %v620_v19 = vadd.f32 %v4933_v58, %v598_v9  ;;  %v180_v41 = vmul.f32 %v4896_v29, %v118_v12 }
  0xbf   :  { %v442_v20 = vmul.f32 %v4881_v21, %v376_v13  ;;  %4421 = vrot.lane.b32.xlu1 %v4420_v14, %s4613_s11 }
  0xc0   :  { %v5013_v23 = vmax.f32 %v620_v19, 0.0 }
  0xc1   :  { %v516_v25 = vpop.permute.xlu1 %515  ;;  %v459_v27 = vadd.f32 %v442_v20, %v319_v24 }
  0xc2   :  { %v241_v26 = vpop.permute.xlu0 %240  ;;  %v582_v28 = vmul.f32 %v4902_v36, %v516_v25  ;;  %v674_v31 = vrot.slane %v5013_v23, 1  ;;  %v797_v44 = vrot.slane %v5013_v23, 2 }
  0xc3   :  { %825 = vrot.lane.b32.xlu1 %v796_v30, %s4612_s10  ;;  %v303_v32 = vmul.f32 %v4873_v16, %v241_v26 }
  0xc4   :  { %v599_v33 = vadd.f32 %v582_v28, %v459_v27  ;;  %v675_v37 = vsel %vm666_vm2, %v672_v8, %v674_v31  ;;  %v798_v52 = vsel %vm791_vm3, %v795_v22, %v797_v44 }
  0xc5   :  { %v123_v38 = vpop.permute.xlu1 %122  ;;  %v4425_v40 = vpack.i.bf16 %v675_v37, %v673_v11  ;;  %v320_v46 = vadd.f32 %v303_v32, %v180_v41 }
  0xc6   :  { %v381_v39 = vpop.permute.xlu0 %380  ;;  %v621_v42 = vadd.f32 %v4933_v58, %v599_v33  ;;  %v181_v60 = vmul.f32 %v4896_v29, %v123_v38 }
  0xc7   :  { %v443_v43 = vmul.f32 %v4881_v21, %v381_v39  ;;  %4426 = vrot.lane.b32.xlu0 %v4425_v40, %s4611_s9  ;;  %v981_v39 = vld [vmem:[%s6962_s2 + $0x208] sm:$0xff]  ;;  %v5064_v40 = vld [vmem:[%s6962_s2 + $0x200] sm:$0xff] }
  0xc8   :  { %v5026_v45 = vmax.f32 %v621_v42, 0.0  ;;  %4331 = vmatprep.subr.mxu1 %v981_v39  ;;  %1181 = vmatprep.subr.mxu0 %v981_v39 }
  0xc9   :  { %v521_v48 = vpop.permute.xlu1 %520  ;;  %v460_v50 = vadd.f32 %v443_v43, %v320_v46  ;;  %4332 = vmatpush1.msra.mxu1 %v5064_v40 }
  0xca   :  { %v246_v49 = vpop.permute.xlu0 %245  ;;  %v583_v51 = vmul.f32 %v4902_v36, %v521_v48  ;;  %v676_v53 = vrot.slane %v5026_v45, 1  ;;  %v799_v0 = vrot.slane %v5026_v45, 2 }
  0xcb   :  { %827 = vrot.lane.b32.xlu0 %v798_v52, %s4612_s10  ;;  %v304_v55 = vmul.f32 %v4873_v16, %v246_v49 }
  0xcc   :  { %v600_v54 = vadd.f32 %v583_v51, %v460_v50  ;;  %v677_v47 = vsel %vm666_vm2, %v674_v31, %v676_v53  ;;  %v800_v10 = vsel %vm791_vm3, %v797_v44, %v799_v0 }
  0xcd   :  { %v128_v56 = vpop.permute.xlu1 %127  ;;  %v4430_v59 = vpack.i.bf16 %v677_v47, %v675_v37  ;;  %v321_v3 = vadd.f32 %v304_v55, %v181_v60 }
  0xce   :  { %v386_v57 = vpop.permute.xlu0 %385  ;;  %v622_v61 = vadd.f32 %v4933_v58, %v600_v54  ;;  %v182_v22 = vmul.f32 %v4896_v29, %v128_v56 }
  0xcf   :  { %v444_v63 = vmul.f32 %v4881_v21, %v386_v57  ;;  %4431 = vrot.lane.b32.xlu1 %v4430_v59, %s4613_s11 }
  0xd0   :  { %v5039_v2 = vmax.f32 %v622_v61, 0.0 }
  0xd1   :  { %v526_v6 = vpop.permute.xlu1 %525  ;;  %v461_v8 = vadd.f32 %v444_v63, %v321_v3 }
  0xd2   :  { %v251_v7 = vpop.permute.xlu0 %250  ;;  %v584_v9 = vmul.f32 %v4902_v36, %v526_v6  ;;  %v678_v11 = vrot.slane %v5039_v2, 1  ;;  %v801_v26 = vrot.slane %v5039_v2, 2 }
  0xd3   :  { %829 = vrot.lane.b32.xlu1 %v800_v10, %s4612_s10  ;;  %v305_v13 = vmul.f32 %v4873_v16, %v251_v7 }
  0xd4   :  { %v601_v12 = vadd.f32 %v584_v9, %v461_v8  ;;  %v679_v14 = vsel %vm666_vm2, %v676_v53, %v678_v11  ;;  %v802_v37 = vsel %vm791_vm3, %v799_v0, %v801_v26 }
  0xd5   :  { %v133_v18 = vpop.permute.xlu1 %132  ;;  %v4435_v20 = vpack.i.bf16 %v679_v14, %v677_v47  ;;  %v322_v28 = vadd.f32 %v305_v13, %v182_v22 }
  0xd6   :  { %v391_v19 = vpop.permute.xlu0 %390  ;;  %v623_v24 = vadd.f32 %v4933_v58, %v601_v12  ;;  %v183_v49 = vmul.f32 %v4896_v29, %v133_v18 }
  0xd7   :  { %v445_v25 = vmul.f32 %v4881_v21, %v391_v19  ;;  %4436 = vrot.lane.b32.xlu0 %v4435_v20, %s4611_s9 }
  0xd8   :  { %v5052_v27 = vmax.f32 %v623_v24, 0.0 }
  0xd9   :  { %v531_v30 = vpop.permute.xlu1 %530  ;;  %v462_v33 = vadd.f32 %v445_v25, %v322_v28 }
  0xda   :  { %v256_v31 = vpop.permute.xlu0 %255  ;;  %v585_v32 = vmul.f32 %v4902_v36, %v531_v30  ;;  %v680_v38 = vrot.slane %v5052_v27, 1  ;;  %v803_v52 = vrot.slane %v5052_v27, 2 }
  0xdb   :  { %831 = vrot.lane.b32.xlu0 %v802_v37, %s4612_s10  ;;  %v306_v42 = vmul.f32 %v4873_v16, %v256_v31 }
  0xdc   :  { %v602_v41 = vadd.f32 %v585_v32, %v462_v33  ;;  %v681_v43 = vsel %vm666_vm2, %v678_v11, %v680_v38  ;;  %v804_v59 = vsel %vm791_vm3, %v801_v26, %v803_v52 }
  0xdd   :  { %v138_v44 = vpop.permute.xlu1 %137  ;;  %v4440_v48 = vpack.i.bf16 %v681_v43, %v679_v14  ;;  %v323_v54 = vadd.f32 %v306_v42, %v183_v49 }
  0xde   :  { %v396_v46 = vpop.permute.xlu0 %395  ;;  %v624_v50 = vadd.f32 %v4933_v58, %v602_v41  ;;  %v184_v8 = vmul.f32 %v4896_v29, %v138_v44 }
  0xdf   :  { %v446_v51 = vmul.f32 %v4881_v21, %v396_v46  ;;  %4441 = vrot.lane.b32.xlu1 %v4440_v48, %s4613_s11 }
  0xe0   :  { %v5074_v53 = vmax.f32 %v624_v50, 0.0 }
  0xe1   :  { %v536_v55 = vpop.permute.xlu1 %535  ;;  %v463_v56 = vadd.f32 %v446_v51, %v323_v54 }
  0xe2   :  { %v261_v47 = vpop.permute.xlu0 %260  ;;  %v586_v57 = vmul.f32 %v4902_v36, %v536_v55  ;;  %v682_v60 = vrot.slane %v5074_v53, 1  ;;  %v805_v11 = vrot.slane %v5074_v53, 2 }
  0xe3   :  { %833 = vrot.lane.b32.xlu1 %v804_v59, %s4612_s10  ;;  %v307_v63 = vmul.f32 %v4873_v16, %v261_v47 }
  0xe4   :  { %v603_v61 = vadd.f32 %v586_v57, %v463_v56  ;;  %v683_v0 = vsel %vm666_vm2, %v680_v38, %v682_v60  ;;  %v806_v22 = vsel %vm791_vm3, %v803_v52, %v805_v11 }
  0xe5   :  { %v143_v3 = vpop.permute.xlu1 %142  ;;  %v4445_v7 = vpack.i.bf16 %v683_v0, %v681_v43  ;;  %v324_v13 = vadd.f32 %v307_v63, %v184_v8 }
  0xe6   :  { %v401_v6 = vpop.permute.xlu0 %400  ;;  %v625_v9 = vadd.f32 %v4933_v58, %v603_v61  ;;  %v185_v32 = vmul.f32 %v4896_v29, %v143_v3 }
  0xe7   :  { %v447_v10 = vmul.f32 %v4881_v21, %v401_v6  ;;  %4446 = vrot.lane.b32.xlu0 %v4445_v7, %s4611_s9 }
  0xe8   :  { %v5087_v12 = vmax.f32 %v625_v9, 0.0 }
  0xe9   :  { %v541_v14 = vpop.permute.xlu1 %540  ;;  %v464_v19 = vadd.f32 %v447_v10, %v324_v13 }
  0xea   :  { %v266_v18 = vpop.permute.xlu0 %265  ;;  %v587_v20 = vmul.f32 %v4902_v36, %v541_v14  ;;  %v684_v24 = vrot.slane %v5087_v12, 1  ;;  %v807_v39 = vrot.slane %v5087_v12, 2 }
  0xeb   :  { %835 = vrot.lane.b32.xlu0 %v806_v22, %s4612_s10  ;;  %v308_v26 = vmul.f32 %v4873_v16, %v266_v18 }
  0xec   :  { %v604_v25 = vadd.f32 %v587_v20, %v464_v19  ;;  %v685_v28 = vsel %vm666_vm2, %v682_v60, %v684_v24  ;;  %v808_v49 = vsel %vm791_vm3, %v805_v11, %v807_v39 }
  0xed   :  { %v148_v30 = vpop.permute.xlu1 %147  ;;  %v4450_v33 = vpack.i.bf16 %v685_v28, %v683_v0  ;;  %v325_v42 = vadd.f32 %v308_v26, %v185_v32 }
  0xee   :  { %v406_v31 = vpop.permute.xlu0 %405  ;;  %v626_v37 = vadd.f32 %v4933_v58, %v604_v25  ;;  %v186_v57 = vmul.f32 %v4896_v29, %v148_v30 }
  0xef   :  { %v448_v38 = vmul.f32 %v4881_v21, %v406_v31  ;;  %4451 = vrot.lane.b32.xlu1 %v4450_v33, %s4613_s11 }
  0xf0   :  { %v5100_v41 = vmax.f32 %v626_v37, 0.0 }
  0xf1   :  { %v546_v43 = vpop.permute.xlu1 %545  ;;  %v465_v46 = vadd.f32 %v448_v38, %v325_v42 }
  0xf2   :  { %v271_v44 = vpop.permute.xlu0 %270  ;;  %v588_v48 = vmul.f32 %v4902_v36, %v546_v43  ;;  %v686_v50 = vrot.slane %v5100_v41, 1  ;;  %v809_v61 = vrot.slane %v5100_v41, 2 }
  0xf3   :  { %837 = vrot.lane.b32.xlu1 %v808_v49, %s4612_s10  ;;  %v309_v52 = vmul.f32 %v4873_v16, %v271_v44 }
  0xf4   :  { %v605_v51 = vadd.f32 %v588_v48, %v465_v46  ;;  %v687_v54 = vsel %vm666_vm2, %v684_v24, %v686_v50  ;;  %v810_v9 = vsel %vm791_vm3, %v807_v39, %v809_v61 }
  0xf5   :  { %v153_v55 = vpop.permute.xlu1 %152  ;;  %v4455_v56 = vpack.i.bf16 %v687_v54, %v685_v28  ;;  %v326_v0 = vadd.f32 %v309_v52, %v186_v57 }
  0xf6   :  { %v411_v47 = vpop.permute.xlu0 %410  ;;  %v627_v59 = vadd.f32 %v4933_v58, %v605_v51  ;;  %v187_v22 = vmul.f32 %v4896_v29, %v153_v55 }
  0xf7   :  { %v449_v60 = vmul.f32 %v4881_v21, %v411_v47  ;;  %4456 = vrot.lane.b32.xlu0 %v4455_v56, %s4611_s9 }
  0xf8   :  { %v5113_v63 = vmax.f32 %v627_v59, 0.0 }
  0xf9   :  { %v551_v3 = vpop.permute.xlu1 %550  ;;  %v466_v7 = vadd.f32 %v449_v60, %v326_v0 }
  0xfa   :  { %v276_v6 = vpop.permute.xlu0 %275  ;;  %v589_v8 = vmul.f32 %v4902_v36, %v551_v3  ;;  %v688_v10 = vrot.slane %v5113_v63, 1  ;;  %v811_v26 = vrot.slane %v5113_v63, 2 }
  0xfb   :  { %839 = vrot.lane.b32.xlu0 %v810_v9, %s4612_s10  ;;  %v310_v13 = vmul.f32 %v4873_v16, %v276_v6 }
  0xfc   :  { %v606_v11 = vadd.f32 %v589_v8, %v466_v7  ;;  %v689_v14 = vsel %vm666_vm2, %v686_v50, %v688_v10  ;;  %v812_v38 = vsel %vm791_vm3, %v809_v61, %v811_v26 }
  0xfd   :  { %v158_v18 = vpop.permute.xlu1 %157  ;;  %v4460_v20 = vpack.i.bf16 %v689_v14, %v687_v54  ;;  %v327_v30 = vadd.f32 %v310_v13, %v187_v22 }
  0xfe   :  { %v416_v19 = vpop.permute.xlu0 %415  ;;  %v628_v24 = vadd.f32 %v4933_v58, %v606_v11  ;;  %v188_v50 = vmul.f32 %v4896_v29, %v158_v18 }
  0xff   :  { %v450_v25 = vmul.f32 %v4881_v21, %v416_v19  ;;  %4461 = vrot.lane.b32.xlu1 %v4460_v20, %s4613_s11 }
 0x100   :  { %v5126_v28 = vmax.f32 %v628_v24, 0.0 }
 0x101   :  { %v556_v31 = vpop.permute.xlu1 %555  ;;  %v467_v32 = vadd.f32 %v450_v25, %v327_v30 }
 0x102   :  { %v281_v33 = vpop.permute.xlu0 %280  ;;  %v590_v37 = vmul.f32 %v4902_v36, %v556_v31  ;;  %v690_v39 = vrot.slane %v5126_v28, 1  ;;  %v813_v54 = vrot.slane %v5126_v28, 2 }
 0x103   :  { %841 = vrot.lane.b32.xlu1 %v812_v38, %s4612_s10  ;;  %v311_v43 = vmul.f32 %v4873_v16, %v281_v33 }
 0x104   :  { %v607_v42 = vadd.f32 %v590_v37, %v467_v32  ;;  %v691_v44 = vsel %vm666_vm2, %v688_v10, %v690_v39  ;;  %v814_v61 = vsel %vm791_vm3, %v811_v26, %v813_v54 }
 0x105   :  { %v163_v46 = vpop.permute.xlu1 %162  ;;  %v4465_v49 = vpack.i.bf16 %v691_v44, %v689_v14  ;;  %v328_v47 = vadd.f32 %v311_v43, %v188_v50 }
 0x106   :  { %v421_v48 = vpop.permute.xlu0 %420  ;;  %v629_v51 = vadd.f32 %v4933_v58, %v607_v42  ;;  %v189_v13 = vmul.f32 %v4896_v29, %v163_v46 }
 0x107   :  { %v451_v52 = vmul.f32 %v4881_v21, %v421_v48  ;;  %4466 = vrot.lane.b32.xlu0 %v4465_v49, %s4611_s9 }
 0x108   :  { %v5139_v55 = vmax.f32 %v629_v51, 0.0 }
 0x109   :  { %v561_v56 = vpop.permute.xlu1 %560  ;;  %v468_v59 = vadd.f32 %v451_v52, %v328_v47 }
 0x10a   :  { %v286_v57 = vpop.permute.xlu0 %285  ;;  %v591_v60 = vmul.f32 %v4902_v36, %v561_v56  ;;  %v692_v0 = vrot.slane %v5139_v55, 1  ;;  %v815_v11 = vrot.slane %v5139_v55, 2 }
 0x10b   :  { %843 = vrot.lane.b32.xlu0 %v814_v61, %s4612_s10  ;;  %v312_v6 = vmul.f32 %v4873_v16, %v286_v57 }
 0x10c   :  { %v608_v3 = vadd.f32 %v591_v60, %v468_v59  ;;  %v693_v7 = vsel %vm666_vm2, %v690_v39, %v692_v0  ;;  %v816_v25 = vsel %vm791_vm3, %v813_v54, %v815_v11 }
 0x10d   :  { %v168_v8 = vpop.permute.xlu1 %167  ;;  %v4470_v10 = vpack.i.bf16 %v693_v7, %v691_v44  ;;  %v329_v20 = vadd.f32 %v312_v6, %v189_v13 }
 0x10e   :  { %v426_v9 = vpop.permute.xlu0 %425  ;;  %v630_v14 = vadd.f32 %v4933_v58, %v608_v3  ;;  %v190_v32 = vmul.f32 %v4896_v29, %v168_v8 }
 0x10f   :  { %v452_v18 = vmul.f32 %v4881_v21, %v426_v9  ;;  %4471 = vrot.lane.b32.xlu1 %v4470_v10, %s4613_s11 }
 0x110   :  { %v5152_v19 = vmax.f32 %v630_v14, 0.0 }
 0x111   :  { %v566_v22 = vpop.permute.xlu1 %565  ;;  %v469_v26 = vadd.f32 %v452_v18, %v329_v20 }
 0x112   :  { %v291_v24 = vpop.permute.xlu0 %290  ;;  %v592_v30 = vmul.f32 %v4902_v36, %v566_v22  ;;  %v694_v33 = vrot.slane %v5152_v19, 1  ;;  %v817_v49 = vrot.slane %v5152_v19, 2 }
 0x113   :  { %v313_v31 = vmul.f32 %v4873_v16, %v291_v24  ;;  %845 = vrot.lane.b32.xlu1 %v816_v25, %s4612_s10 }
 0x114   :  { %v609_v37 = vadd.f32 %v592_v30, %v469_v26  ;;  %v695_v38 = vsel %vm666_vm2, %v692_v0, %v694_v33  ;;  %v818_v52 = vsel %vm791_vm3, %v815_v11, %v817_v49 }
 0x115   :  { %v571_v39 = vpop.permute.xlu1 %570  ;;  %v4475_v43 = vpack.i.bf16 %v695_v38, %v693_v7  ;;  %v330_v46 = vadd.f32 %v313_v31, %v190_v32 }
 0x116   :  { %v431_v42 = vpop.permute.xlu0 %430  ;;  %v631_v44 = vadd.f32 %v4933_v58, %v609_v37  ;;  %v593_v50 = vmul.f32 %v4902_v36, %v571_v39 }
 0x117   :  { %v453_v48 = vmul.f32 %v4881_v21, %v431_v42  ;;  %4476 = vrot.lane.b32.xlu0 %v4475_v43, %s4611_s9 }
 0x118   :  { %v648_v16 = vmax.f32 %v631_v44, 0.0 }
 0x119   :  { %v470_v51 = vadd.f32 %v453_v48, %v330_v46 }
 0x11a   :  { %v696_v54 = vrot.slane %v648_v16, 1  ;;  %v819_v59 = vrot.slane %v648_v16, 2 }
 0x11b   :  { %v610_v29 = vadd.f32 %v593_v50, %v470_v51  ;;  %847 = vrot.lane.b32.xlu0 %v818_v52, %s4612_s10 }
 0x11c   :  { %v697_v56 = vsel %vm666_vm2, %v694_v33, %v696_v54  ;;  %v820_v36 = vsel %vm791_vm3, %v817_v49, %v819_v59 }
 0x11d   :  { %v632_v47 = vadd.f32 %v4933_v58, %v610_v29  ;;  %v4480_v57 = vpack.i.bf16 %v697_v56, %v695_v38 }
 0x11f   :  { %v649_v21 = vmax.f32 %v632_v47, 0.0  ;;  %726 = vrot.lane.b32.xlu0 %v697_v56, %s4611_s9  ;;  %4481 = vrot.lane.b32.xlu1 %v4480_v57, %s4613_s11 }
 0x121   :  { %v821_v60 = vrot.slane %v649_v21, 2  ;;  %v744_v0 = vrot.slane %v649_v21, 1 }
 0x123   :  { %v822_v61 = vsel %vm791_vm3, %v819_v59, %v821_v60  ;;  %849 = vrot.lane.b32.xlu1 %v820_v36, %s4612_s10  ;;  %v745_v58 = vsel %vm666_vm2, %v696_v54, %v744_v0 }
 0x124   :  { %851 = vrot.lane.b32.xlu0 %v822_v61, %s4612_s10 }
 0x127   :  { %774 = vrot.lane.b32.xlu1 %v745_v58, %s4613_s11 }
 0x12a   :  { %v4417_v3 = vpop.permute.xlu0 %4416 }
 0x12b   :  { %v4419_v7 = vunpack.i.h.bf16 %v4417_v3  ;;  %v4418_v8 = vunpack.i.l.bf16 %v4417_v3 }
 0x12d   :  { %v869_v22 = vsel %vm868_vm6, %v633_v17, %v4418_v8  ;;  %v870_v25 = vsel %vm868_vm6, %v4972_v35, %v4419_v7 }
 0x12e   :  { %v5178_v11 = vpop.permute.xlu0 %823 }
 0x131   :  { %v4422_v6 = vpop.permute.xlu1 %4421 }
 0x132   :  { %v4424_v9 = vunpack.i.h.bf16 %v4422_v6  ;;  %v4423_v10 = vunpack.i.l.bf16 %v4422_v6 }
 0x134   :  { %v885_v13 = vsel %vm884_vm4, %v4418_v8, %v4423_v10  ;;  %v886_v14 = vsel %vm884_vm4, %v4419_v7, %v4424_v9 }
 0x135   :  { %v5182_v18 = vpop.permute.xlu1 %825  ;;  %v901_v20 = vsel %vm900_vm5, %v885_v13, %v5178_v11 }
 0x136   :  { %1090 = vmatprep.mubr.f32.mxu0 %v901_v20  ;;  %v902_v24 = vsel %vm900_vm5, %v886_v14, %v5182_v18 }
 0x137   :  { %1091 = vmatmul.mubr.f32.vlgmr.msra.gmra.mrb[0].mxu0 %v869_v22 }
 0x138   :  { %1096 = vmatprep.mubr.f32.mxu0 %v902_v24  ;;  %1182 = vmatpush1.msra.mxu0 %v5064_v40 }
 0x139   :  { %v4427_v26 = vpop.permute.xlu0 %4426 }
 0x13a   :  { %v4429_v31 = vunpack.i.h.bf16 %v4427_v26  ;;  %v4428_v33 = vunpack.i.l.bf16 %v4427_v26 }
 0x13b   :  { %1097 = vmatmul.mubr.f32.gmra.mrb[2].mxu0 %v870_v25 }
 0x13c   :  { %v871_v35 = vsel %vm868_vm6, %v4970_v34, %v4428_v33  ;;  %v872_v43 = vsel %vm868_vm6, %v5000_v62, %v4429_v31 }
 0x13d   :  { %v5194_v5 = vpop.permute.xlu0 %827 }
 0x141   :  { %v4432_v30 = vpop.permute.xlu1 %4431 }
 0x142   :  { %v4434_v32 = vunpack.i.h.bf16 %v4432_v30  ;;  %v4433_v37 = vunpack.i.l.bf16 %v4432_v30 }
 0x144   :  { %v887_v17 = vsel %vm884_vm4, %v4428_v33, %v4433_v37  ;;  %v888_v38 = vsel %vm884_vm4, %v4429_v31, %v4434_v32 }
 0x145   :  { %v5198_v39 = vpop.permute.xlu1 %829  ;;  %v903_v40 = vsel %vm900_vm5, %v887_v17, %v5194_v5 }
 0x146   :  { %1102 = vmatprep.mubr.f32.mxu0 %v903_v40  ;;  %v904_v42 = vsel %vm900_vm5, %v888_v38, %v5198_v39 }
 0x147   :  { %1103 = vmatmul.mubr.f32.gmra.mrb[4].mxu0 %v871_v35 }
 0x148   :  { %1108 = vmatprep.mubr.f32.mxu0 %v904_v42 }
 0x149   :  { %v4437_v44 = vpop.permute.xlu0 %4436 }
 0x14a   :  { %v4439_v48 = vunpack.i.h.bf16 %v4437_v44  ;;  %v4438_v49 = vunpack.i.l.bf16 %v4437_v44 }
 0x14b   :  { %1109 = vmatmul.mubr.f32.gmra.mrb[6].mxu0 %v872_v43 }
 0x14c   :  { %v873_v62 = vsel %vm868_vm6, %v5013_v23, %v4438_v49  ;;  %v874_v57 = vsel %vm868_vm6, %v5026_v45, %v4439_v48 }
 0x14d   :  { %v5208_v51 = vpop.permute.xlu0 %831 }
 0x151   :  { %v4442_v46 = vpop.permute.xlu1 %4441 }
 0x152   :  { %v4444_v16 = vunpack.i.h.bf16 %v4442_v46  ;;  %v4443_v50 = vunpack.i.l.bf16 %v4442_v46 }
 0x154   :  { %v889_v29 = vsel %vm884_vm4, %v4438_v49, %v4443_v50  ;;  %v890_v34 = vsel %vm884_vm4, %v4439_v48, %v4444_v16 }
 0x155   :  { %v5212_v52 = vpop.permute.xlu1 %833  ;;  %v905_v54 = vsel %vm900_vm5, %v889_v29, %v5208_v51 }
 0x156   :  { %1114 = vmatprep.mubr.f32.mxu0 %v905_v54  ;;  %v906_v47 = vsel %vm900_vm5, %v890_v34, %v5212_v52 }
 0x157   :  { %1115 = vmatmul.mubr.f32.gmra.mrb[8].mxu0 %v873_v62 }
 0x158   :  { %1120 = vmatprep.mubr.f32.mxu0 %v906_v47 }
 0x159   :  { %v4447_v56 = vpop.permute.xlu0 %4446 }
 0x15a   :  { %v4449_v60 = vunpack.i.h.bf16 %v4447_v56  ;;  %v4448_v36 = vunpack.i.l.bf16 %v4447_v56 }
 0x15b   :  { %1121 = vmatmul.mubr.f32.gmra.mrb[10].mxu0 %v874_v57 }
 0x15c   :  { %v875_v45 = vsel %vm868_vm6, %v5039_v2, %v4448_v36  ;;  %v876_v9 = vsel %vm868_vm6, %v5052_v27, %v4449_v60 }
 0x15d   :  { %v836_v21 = vpop.permute.xlu0 %835 }
 0x15e   :  { %3472 = vmatmul.mubr.msk.f32.vlgmr.msra.gmra.mrb[0].mxu1 %vm995_vm7, %v836_v21 }
 0x15f   :  { %1287 = vmatprep.mubr.f32.mxu1 %v4610_v1 }
 0x161   :  { %v4452_v59 = vpop.permute.xlu1 %4451 }
 0x162   :  { %v4454_v23 = vunpack.i.h.bf16 %v4452_v59  ;;  %v4453_v61 = vunpack.i.l.bf16 %v4452_v59 }
 0x164   :  { %v891_v0 = vsel %vm884_vm4, %v4448_v36, %v4453_v61  ;;  %v892_v58 = vsel %vm884_vm4, %v4449_v60, %v4454_v23 }
 0x165   :  { %v838_v3 = vpop.permute.xlu1 %837  ;;  %v907_v6 = vsel %vm900_vm5, %v891_v0, %v836_v21 }
 0x166   :  { %1126 = vmatprep.mubr.f32.mxu0 %v907_v6  ;;  %3473 = vmatmul.mubr.msk.f32.gmra.mrb[2].mxu1 %vm995_vm7, %v838_v3  ;;  %v908_v7 = vsel %vm900_vm5, %v892_v58, %v838_v3 }
 0x167   :  { %1127 = vmatmul.mubr.f32.gmra.mrb[12].mxu0 %v875_v45  ;;  %1293 = vmatprep.mubr.f32.mxu1 %v4610_v1 }
 0x168   :  { %1132 = vmatprep.mubr.f32.mxu0 %v908_v7 }
 0x169   :  { %v4457_v8 = vpop.permute.xlu0 %4456 }
 0x16a   :  { %v4459_v14 = vunpack.i.h.bf16 %v4457_v8  ;;  %v4458_v20 = vunpack.i.l.bf16 %v4457_v8 }
 0x16b   :  { %1133 = vmatmul.mubr.f32.gmra.mrb[14].mxu0 %v876_v9 }
 0x16c   :  { %v877_v27 = vsel %vm868_vm6, %v5074_v53, %v4458_v20  ;;  %v878_v32 = vsel %vm868_vm6, %v5087_v12, %v4459_v14 }
 0x16d   :  { %v840_v10 = vpop.permute.xlu0 %839 }
 0x16e   :  { %3474 = vmatmul.mubr.msk.f32.gmra.mrb[4].mxu1 %vm995_vm7, %v840_v10 }
 0x16f   :  { %1299 = vmatprep.mubr.f32.mxu1 %v4610_v1 }
 0x171   :  { %v4462_v13 = vpop.permute.xlu1 %4461 }
 0x172   :  { %v4464_v2 = vunpack.i.h.bf16 %v4462_v13  ;;  %v4463_v22 = vunpack.i.l.bf16 %v4462_v13 }
 0x174   :  { %v893_v24 = vsel %vm884_vm4, %v4458_v20, %v4463_v22  ;;  %v894_v25 = vsel %vm884_vm4, %v4459_v14, %v4464_v2 }
 0x175   :  { %v842_v26 = vpop.permute.xlu1 %841  ;;  %v909_v30 = vsel %vm900_vm5, %v893_v24, %v840_v10 }
 0x176   :  { %1138 = vmatprep.mubr.f32.mxu0 %v909_v30  ;;  %3475 = vmatmul.mubr.msk.f32.gmra.mrb[6].mxu1 %vm995_vm7, %v842_v26  ;;  %v910_v31 = vsel %vm900_vm5, %v894_v25, %v842_v26 }
 0x177   :  { %1139 = vmatmul.mubr.f32.gmra.mrb[16].mxu0 %v877_v27  ;;  %1305 = vmatprep.mubr.f32.mxu1 %v4610_v1 }
 0x178   :  { %1144 = vmatprep.mubr.f32.mxu0 %v910_v31 }
 0x179   :  { %v4467_v33 = vpop.permute.xlu0 %4466 }
 0x17a   :  { %v4469_v38 = vunpack.i.h.bf16 %v4467_v33  ;;  %v4468_v40 = vunpack.i.l.bf16 %v4467_v33 }
 0x17b   :  { %1145 = vmatmul.mubr.f32.gmra.mrb[18].mxu0 %v878_v32 }
 0x17c   :  { %v879_v12 = vsel %vm868_vm6, %v5100_v41, %v4468_v40  ;;  %v880_v16 = vsel %vm868_vm6, %v5113_v63, %v4469_v38 }
 0x17d   :  { %v844_v37 = vpop.permute.xlu0 %843 }
 0x17e   :  { %3476 = vmatmul.mubr.msk.f32.gmra.mrb[8].mxu1 %vm995_vm7, %v844_v37 }
 0x17f   :  { %1311 = vmatprep.mubr.f32.mxu1 %v4610_v1 }
 0x181   :  { %v4472_v17 = vpop.permute.xlu1 %4471 }
 0x182   :  { %v4474_v53 = vunpack.i.h.bf16 %v4472_v17  ;;  %v4473_v35 = vunpack.i.l.bf16 %v4472_v17 }
 0x184   :  { %v895_v42 = vsel %vm884_vm4, %v4468_v40, %v4473_v35  ;;  %v896_v43 = vsel %vm884_vm4, %v4469_v38, %v4474_v53 }
 0x185   :  { %v846_v44 = vpop.permute.xlu1 %845  ;;  %v911_v46 = vsel %vm900_vm5, %v895_v42, %v844_v37 }
 0x186   :  { %1150 = vmatprep.mubr.f32.mxu0 %v911_v46  ;;  %3477 = vmatmul.mubr.msk.f32.gmra.mrb[10].mxu1 %vm995_vm7, %v846_v44  ;;  %v912_v48 = vsel %vm900_vm5, %v896_v43, %v846_v44  ;;  %v1851_v46 = vld [vmem:[%s6963_s1 + $0x88] sm:$0xff] }
 0x187   :  { %1151 = vmatmul.mubr.f32.gmra.mrb[20].mxu0 %v879_v12  ;;  %1317 = vmatprep.mubr.f32.mxu1 %v4610_v1  ;;  %v1852_v12 = vld [vmem:[%s6963_s1 + $0x90] sm:$0xff] }
 0x188   :  { %1156 = vmatprep.mubr.f32.mxu0 %v912_v48  ;;  %v1835_v48 = vld [vmem:[%s6963_s1 + $0x8] sm:$0xff] }
 0x189   :  { %v4477_v49 = vpop.permute.xlu0 %4476 }
 0x18a   :  { %v4479_v34 = vunpack.i.h.bf16 %v4477_v49  ;;  %v4478_v54 = vunpack.i.l.bf16 %v4477_v49  ;;  %v4120_v49 = vpack.c.bf16 %v1852_v12, %v1851_v46  ;;  %v1846_v46 = vld [vmem:[%s6963_s1 + $0x60] sm:$0xff] }
 0x18b   :  { %1157 = vmatmul.mubr.f32.gmra.mrb[22].mxu0 %v880_v16  ;;  %v1836_v16 = vld [vmem:[%s6963_s1 + $0x10] sm:$0xff] }
 0x18c   :  { %v881_v63 = vsel %vm868_vm6, %v5126_v28, %v4478_v54  ;;  %v882_v0 = vsel %vm868_vm6, %v5139_v55, %v4479_v34  ;;  %4121 = vmatprep.subr.bf16.mxu1 %v4120_v49 }
 0x18d   :  { %v848_v50 = vpop.permute.xlu0 %847 }
 0x18e   :  { %3478 = vmatmul.mubr.msk.f32.gmra.mrb[12].mxu1 %vm995_vm7, %v848_v50 }
 0x18f   :  { %1323 = vmatprep.mubr.f32.mxu1 %v4610_v1 }
 0x191   :  { %v4482_v29 = vpop.permute.xlu1 %4481  ;;  %v727_v47 = vpop.permute.xlu0 %726 }
 0x192   :  { %v4484_v41 = vunpack.i.h.bf16 %v4482_v29  ;;  %v4483_v62 = vunpack.i.l.bf16 %v4482_v29  ;;  %v883_v28 = vsel %vm868_vm6, %v5152_v19, %v727_v47  ;;  %v1853_v29 = vld [vmem:[%s6963_s1 + $0x98] sm:$0xff] }
 0x194   :  { %v897_v56 = vsel %vm884_vm4, %v4478_v54, %v4483_v62  ;;  %v898_v57 = vsel %vm884_vm4, %v4479_v34, %v4484_v41  ;;  %v1854_v34 = vld [vmem:[%s6963_s1 + $0xa0] sm:$0xff]  ;;  %v1837_v54 = vld [vmem:[%s6963_s1 + $0x18] sm:$0xff] }
 0x195   :  { %v850_v21 = vpop.permute.xlu1 %849  ;;  %v913_v59 = vsel %vm900_vm5, %v897_v56, %v848_v50  ;;  %v4122_v50 = vpack.c.bf16 %v1836_v16, %v1835_v48  ;;  %v4124_v62 = vpack.c.bf16 %v1854_v34, %v1853_v29  ;;  %v1863_v34 = vld [vmem:[%s6963_s1 + $0xe8] sm:$0xff] }
 0x196   :  { %1162 = vmatprep.mubr.f32.mxu0 %v913_v59  ;;  %3479 = vmatmul.mubr.msk.f32.gmra.mrb[14].mxu1 %vm995_vm7, %v850_v21  ;;  %v914_v60 = vsel %vm900_vm5, %v898_v57, %v850_v21  ;;  %v852_v36 = vpop.permute.xlu0 %851 }
 0x197   :  { %1163 = vmatmul.mubr.f32.gmra.mrb[24].mxu0 %v881_v63  ;;  %1329 = vmatprep.mubr.f32.mxu1 %v4610_v1 }
 0x198   :  { %1168 = vmatprep.mubr.f32.mxu0 %v914_v60  ;;  %4123 = vmatpush3.bf16.msra.mxu1 %v4122_v50 }
 0x199   :  { %v775_v23 = vpop.permute.xlu1 %774  ;;  %4125 = vmatprep.subr.bf16.mxu1 %v4124_v62 }
 0x19a   :  { %v899_v61 = vsel %vm884_vm4, %v727_v47, %v775_v23  ;;  %3480 = vmatmul.mubr.msk.f32.gmra.mrb[16].mxu1 %vm995_vm7, %v852_v36  ;;  %v1838_v47 = vld [vmem:[%s6963_s1 + $0x20] sm:$0xff]  ;;  %v1856_v23 = vld [vmem:[%s6963_s1 + $0xb0] sm:$0xff] }
 0x19b   :  { %1169 = vmatmul.mubr.f32.gmra.mrb[26].mxu0 %v882_v0  ;;  %v915_v58 = vsel %vm900_vm5, %v899_v61, %v852_v36  ;;  %v4126_v21 = vpack.c.bf16 %v1838_v47, %v1837_v54  ;;  %v1855_v36 = vld [vmem:[%s6963_s1 + $0xa8] sm:$0xff]  ;;  %v1864_v54 = vld [vmem:[%s6963_s1 + $0xf0] sm:$0xff] }
 0x19c   :  { %1174 = vmatprep.mubr.f32.mxu0 %v915_v58  ;;  %v1839_v61 = vld [vmem:[%s6963_s1 + $0x28] sm:$0xff]  ;;  %v4128_v58 = vpack.c.bf16 %v1856_v23, %v1855_v36 }
 0x19d   :  { %4127 = vmatpush3.bf16.msra.mxu1 %v4126_v21 }
 0x19e   :  { %4129 = vmatprep.subr.bf16.mxu1 %v4128_v58  ;;  %v1865_v58 = vld [vmem:[%s6963_s1 + $0xf8] sm:$0xff] }
 0x19f   :  { %1175 = vmatmul.mubr.f32.gmra.mrb[28].mxu0 %v883_v28  ;;  %v1840_v28 = vld [vmem:[%s6963_s1 + $0x30] sm:$0xff] }
 0x1a0   :  { %1245 = vmatprep.mubr.f32.mxu0 %v4610_v1 }
 0x1a3   :  { %3466 = vmatmul.mubr.msk.f32.vlgmr.msra.gmra.mrb[0].mxu0 %vm995_vm7, %v5178_v11  ;;  %v3465_v11 = vld [vmem:[%s6962_s2 + $0x2a0] ss:$8 sm:$0x3] }
 0x1a4   :  { %1251 = vmatprep.mubr.f32.mxu0 %v4610_v1 }
 0x1a7   :  { %3467 = vmatmul.mubr.msk.f32.gmra.mrb[2].mxu0 %vm995_vm7, %v5182_v18  ;;  %v5297_v18 = vrot.slane %v3465_v11, %v4870_v15 }
 0x1a8   :  { %1257 = vmatprep.mubr.f32.mxu0 %v4610_v1 }
 0x1ab   :  { %3468 = vmatmul.mubr.msk.f32.gmra.mrb[4].mxu0 %vm995_vm7, %v5194_v5  ;;  %v5300_v5 = vrot.slane %v3465_v11, %v4853_v4  ;;  %v4130_v11 = vpack.c.bf16 %v1840_v28, %v1839_v61  ;;  %v1866_v28 = vld [vmem:[%s6963_s1 + $0x100] sm:$0xff] }
 0x1ac   :  { %1263 = vmatprep.mubr.f32.mxu0 %v4610_v1 }
 0x1ad   :  { %4131 = vmatpush3.bf16.msra.mxu1 %v4130_v11 }
 0x1af   :  { %3469 = vmatmul.mubr.msk.f32.gmra.mrb[6].mxu0 %vm995_vm7, %v5198_v39 }
 0x1b0   :  { %1269 = vmatprep.mubr.f32.mxu0 %v4610_v1 }
 0x1b3   :  { %3470 = vmatmul.mubr.msk.f32.gmra.mrb[8].mxu0 %vm995_vm7, %v5208_v51 }
 0x1b4   :  { %1275 = vmatprep.mubr.f32.mxu0 %v4610_v1 }
 0x1b7   :  { %3471 = vmatmul.mubr.msk.f32.gmra.mrb[10].mxu0 %vm995_vm7, %v5212_v52 }
 0x1b8   :  { %3864 = vmatprep.mubr.msk.f32.mxu0 %vm4617_vm8, %v4610_v1 }
 0x231   :  { %v1283_v55 = vpop.f32.mrb[0].mxu1 }
 0x232   :  { %v1285_v19 = vpop.f32.mrb[1].mxu1 }
 0x239   :  { %v1289_v39 = vpop.f32.mrb[2].mxu1 }
 0x23a   :  { %v1128_v3 = vpop.f32.mrb[12].mxu0  ;;  %v1291_v51 = vpop.f32.mrb[3].mxu1 }
 0x23b   :  { %v1129_v6 = vadd.f32 %v1128_v3, %v5297_v18  ;;  %v1130_v45 = vpop.f32.mrb[13].mxu0 }
 0x23c   :  { %v1131_v52 = vadd.f32 %v1130_v45, %v5300_v5  ;;  %v1858_v45 = vld [vmem:[%s6963_s1 + $0xc0] sm:$0xff] }
 0x23d   :  { %v5304_v7 = vadd.f32 %v1283_v55, %v1129_v6  ;;  %v1857_v6 = vld [vmem:[%s6963_s1 + $0xb8] sm:$0xff] }
 0x23e   :  { %v5306_v8 = vadd.f32 %v1285_v19, %v1131_v52  ;;  %v1134_v9 = vpop.f32.mrb[14].mxu0  ;;  %v1841_v52 = vld [vmem:[%s6963_s1 + $0x38] sm:$0xff] }
 0x23f   :  { %v1135_v10 = vadd.f32 %v1134_v9, %v5297_v18  ;;  %v1136_v13 = vpop.f32.mrb[15].mxu0 }
 0x240   :  { %v1137_v14 = vadd.f32 %v1136_v13, %v5300_v5  ;;  %v4132_v13 = vpack.c.bf16 %v1858_v45, %v1857_v6 }
 0x241   :  { %v5310_v20 = vadd.f32 %v1289_v39, %v1135_v10  ;;  %v1295_v2 = vpop.f32.mrb[4].mxu1 }
 0x242   :  { %v5312_v22 = vadd.f32 %v1291_v51, %v1137_v14  ;;  %v1297_v24 = vpop.f32.mrb[5].mxu1  ;;  %v1842_v14 = vld [vmem:[%s6963_s1 + $0x40] sm:$0xff]  ;;  %4133 = vmatprep.subr.bf16.mxu1 %v4132_v13 }
 0x249   :  { %v1301_v25 = vpop.f32.mrb[6].mxu1 }
 0x24a   :  { %v1140_v26 = vpop.f32.mrb[16].mxu0  ;;  %v1303_v30 = vpop.f32.mrb[7].mxu1 }
 0x24b   :  { %v1141_v27 = vadd.f32 %v1140_v26, %v5297_v18  ;;  %v1142_v31 = vpop.f32.mrb[17].mxu0  ;;  %v1859_v26 = vld [vmem:[%s6963_s1 + $0xc8] sm:$0xff] }
 0x24c   :  { %v1143_v33 = vadd.f32 %v1142_v31, %v5300_v5 }
 0x24d   :  { %v5316_v32 = vadd.f32 %v1295_v2, %v1141_v27  ;;  %v1843_v27 = vld [vmem:[%s6963_s1 + $0x48] sm:$0xff] }
 0x24e   :  { %v5318_v37 = vadd.f32 %v1297_v24, %v1143_v33  ;;  %v1146_v17 = vpop.f32.mrb[18].mxu0  ;;  %v1844_v33 = vld [vmem:[%s6963_s1 + $0x50] sm:$0xff] }
 0x24f   :  { %v1147_v38 = vadd.f32 %v1146_v17, %v5297_v18  ;;  %v1148_v40 = vpop.f32.mrb[19].mxu0  ;;  %v4138_v17 = vpack.c.bf16 %v1844_v33, %v1843_v27 }
 0x250   :  { %v1149_v53 = vadd.f32 %v1148_v40, %v5300_v5  ;;  %v1862_v40 = vld [vmem:[%s6963_s1 + $0xe0] sm:$0xff] }
 0x251   :  { %v5322_v35 = vadd.f32 %v1301_v25, %v1147_v38  ;;  %v1307_v42 = vpop.f32.mrb[8].mxu1  ;;  %v4134_v25 = vpack.c.bf16 %v1842_v14, %v1841_v52  ;;  %v1861_v38 = vld [vmem:[%s6963_s1 + $0xd8] sm:$0xff] }
 0x252   :  { %v5324_v43 = vadd.f32 %v1303_v30, %v1149_v53  ;;  %v1309_v44 = vpop.f32.mrb[9].mxu1  ;;  %v1860_v30 = vld [vmem:[%s6963_s1 + $0xd0] sm:$0xff]  ;;  %v1845_v53 = vld [vmem:[%s6963_s1 + $0x58] sm:$0xff] }
 0x253   :  { %4135 = vmatpush3.bf16.msra.mxu1 %v4134_v25  ;;  %v4136_v31 = vpack.c.bf16 %v1860_v30, %v1859_v26  ;;  %v4142_v49 = vpack.c.bf16 %v1846_v46, %v1845_v53 }
 0x255   :  { %4137 = vmatprep.subr.bf16.mxu1 %v4136_v31 }
 0x257   :  { %4139 = vmatpush3.bf16.msra.mxu1 %v4138_v17 }
 0x259   :  { %v1313_v41 = vpop.f32.mrb[10].mxu1 }
 0x25a   :  { %v1152_v56 = vpop.f32.mrb[20].mxu0  ;;  %v1315_v57 = vpop.f32.mrb[11].mxu1 }
 0x25b   :  { %v1153_v59 = vadd.f32 %v1152_v56, %v5297_v18  ;;  %v1154_v63 = vpop.f32.mrb[21].mxu0  ;;  %v4144_v56 = vpack.c.bf16 %v1864_v54, %v1863_v34 }
 0x25c   :  { %v1155_v60 = vadd.f32 %v1154_v63, %v5300_v5 }
 0x25d   :  { %v5361_v0 = vadd.f32 %v1307_v42, %v1153_v59 }
 0x25e   :  { %v5366_v55 = vadd.f32 %v1309_v44, %v1155_v60  ;;  %v1158_v19 = vpop.f32.mrb[22].mxu0  ;;  %v4140_v44 = vpack.c.bf16 %v1862_v40, %v1861_v38 }
 0x25f   :  { %v1159_v39 = vadd.f32 %v1158_v19, %v5297_v18  ;;  %v1160_v3 = vpop.f32.mrb[23].mxu0  ;;  %v1849_v19 = vld [vmem:[%s6963_s1 + $0x78] sm:$0xff] }
 0x260   :  { %v1161_v51 = vadd.f32 %v1160_v3, %v5300_v5  ;;  %4141 = vmatprep.subr.bf16.mxu1 %v4140_v44  ;;  %v1850_v3 = vld [vmem:[%s6963_s1 + $0x80] sm:$0xff] }
 0x261   :  { %v5379_v9 = vadd.f32 %v1313_v41, %v1159_v39  ;;  %v1319_v10 = vpop.f32.mrb[12].mxu1  ;;  %4143 = vmatpush3.bf16.msra.mxu1 %v4142_v49  ;;  %v1847_v41 = vld [vmem:[%s6963_s1 + $0x68] sm:$0xff]  ;;  %v4148_v39 = vpack.c.bf16 %v1866_v28, %v1865_v58  ;;  %v4150_v45 = vpack.c.bf16 %v1850_v3, %v1849_v19  ;;  %v1884_v3 = vld [vmem:[%s6963_s1 + $0x190] sm:$0xff] }
 0x262   :  { %v5384_v2 = vadd.f32 %v1315_v57, %v1161_v51  ;;  %v1321_v24 = vpop.f32.mrb[13].mxu1  ;;  %v1848_v57 = vld [vmem:[%s6963_s1 + $0x70] sm:$0xff]  ;;  %4145 = vmatprep.subr.bf16.mxu1 %v4144_v56 }
 0x263   :  { %v4146_v60 = vpack.c.bf16 %v1848_v57, %v1847_v41 }
 0x265   :  { %4147 = vmatpush3.bf16.msra.mxu1 %v4146_v60 }
 0x266   :  { %4149 = vmatprep.subr.bf16.mxu1 %v4148_v39  ;;  %v1883_v39 = vld [vmem:[%s6963_s1 + $0x188] sm:$0xff] }
 0x269   :  { %v1325_v42 = vpop.f32.mrb[14].mxu1  ;;  %4151 = vmatpush3.bf16.msra.mxu1 %v4150_v45 }
 0x26a   :  { %v1164_v12 = vpop.f32.mrb[24].mxu0  ;;  %v1327_v48 = vpop.f32.mrb[15].mxu1 }
 0x26b   :  { %v1165_v16 = vadd.f32 %v1164_v12, %v5297_v18  ;;  %v1166_v50 = vpop.f32.mrb[25].mxu0 }
 0x26c   :  { %v1167_v29 = vadd.f32 %v1166_v50, %v5300_v5 }
 0x26d   :  { %v5421_v62 = vadd.f32 %v1319_v10, %v1165_v16  ;;  %v1331_v47 = vpop.f32.mrb[16].mxu1 }
 0x26e   :  { %v5426_v21 = vadd.f32 %v1321_v24, %v1167_v29  ;;  %v1170_v59 = vpop.f32.mrb[26].mxu0  ;;  %v1333_v63 = vpop.f32.mrb[17].mxu1 }
 0x26f   :  { %v1171_v36 = vadd.f32 %v1170_v59, %v5297_v18  ;;  %v1172_v23 = vpop.f32.mrb[27].mxu0 }
 0x270   :  { %v1173_v61 = vadd.f32 %v1172_v23, %v5300_v5 }
 0x271   :  { %v1326_v11 = vadd.f32 %v1325_v42, %v1171_v36 }
 0x272   :  { %v1328_v51 = vadd.f32 %v1327_v48, %v1173_v61  ;;  %v1176_v6 = vpop.f32.mrb[28].mxu0 }
 0x273   :  { %v1177_v52 = vadd.f32 %v1176_v6, %v5297_v18  ;;  %v1178_v10 = vpop.f32.mrb[29].mxu0  ;;  %v1362_v14 = vmax.f32 %v1326_v11, 0.0 }
 0x274   :  { %v1179_v13 = vadd.f32 %v1178_v10, %v5300_v5  ;;  %v1363_v25 = vmax.f32 %v1328_v51, 0.0  ;;  %v4152_v51 = vpack.c.bf16 %v1884_v3, %v1883_v39 }
 0x275   :  { %v1332_v24 = vadd.f32 %v1331_v47, %v1177_v52  ;;  %v5447_v38 = vrot.slane %v1362_v14, 1  ;;  %v5449_v40 = vrot.slane %v1362_v14, 2  ;;  %v5497_v52 = vmax.f32 %v5316_v32, 0.0 }
 0x276   :  { %v1334_v26 = vadd.f32 %v1333_v63, %v1179_v13  ;;  %v1247_v30 = vpop.f32.mrb[0].mxu0  ;;  %v5451_v44 = vrot.slane %v1363_v25, 1  ;;  %v5453_v46 = vrot.slane %v1363_v25, 2  ;;  %4153 = vmatprep.subr.bf16.mxu1 %v4152_v51 }
 0x277   :  { %v1364_v27 = vmax.f32 %v1332_v24, 0.0  ;;  %v5445_v31 = vadd.f32 %v1247_v30, %v5297_v18  ;;  %v1249_v33 = vpop.f32.mrb[1].mxu0  ;;  %v5503_v24 = vmax.f32 %v5310_v20, 0.0  ;;  %v5509_v30 = vmax.f32 %v5304_v7, 0.0 }
 0x278   :  { %v1365_v17 = vmax.f32 %v1334_v26, 0.0  ;;  %v1424_v32 = vrot.slane %v5497_v52, 1  ;;  %v5523_v7 = vmax.f32 %v5322_v35, 0.0 }
 0x279   :  { %v1555_v53 = vrot.slane %v1364_v27, 1  ;;  %v1714_v42 = vrot.slane %v1364_v27, 2  ;;  %v6965_v16 = vmax.f32 %v5445_v31, 0.0  ;;  %v5513_v27 = vmax.f32 %v5361_v0, 0.0 }
 0x27a   :  { %v1557_v12 = vrot.slane %v1365_v17, 1  ;;  %v1716_v48 = vrot.slane %v1365_v17, 2  ;;  %v1253_v49 = vpop.f32.mrb[2].mxu0  ;;  %v5529_v0 = vadd.f32 %v1249_v33, %v5300_v5 }
 0x27b   :  { %v4345_v50 = vadd.f32 %v1253_v49, %v5297_v18  ;;  %v1255_v29 = vpop.f32.mrb[3].mxu0  ;;  %v5459_v34 = vsel %vm666_vm2, %v5447_v38, %v1555_v53  ;;  %v5463_v54 = vsel %vm791_vm3, %v5449_v40, %v1714_v42  ;;  %v1394_v59 = vrot.slane %v6965_v16, 1 }
 0x27c   :  { %v5467_v41 = vsel %vm666_vm2, %v5451_v44, %v1557_v12  ;;  %v5473_v56 = vsel %vm791_vm3, %v5453_v46, %v1716_v48  ;;  %v5516_v53 = vmax.f32 %v5421_v62, 0.0  ;;  %v4346_v42 = vadd.f32 %v1255_v29, %v5300_v5 }
 0x27d   :  { %v5469_v47 = vmax.f32 %v4345_v50, 0.0  ;;  %v1420_v49 = vrot.slane %v5503_v24, 1  ;;  %v5526_v50 = vmax.f32 %v5379_v9, 0.0  ;;  %v1337_v39 = vmax.f32 %v5529_v0, 0.0  ;;  %v1888_v0 = vld [vmem:[%s6963_s1 + $0x1b0] sm:$0xff] }
 0x27e   :  { %v1259_v57 = vpop.f32.mrb[4].mxu0  ;;  %v1440_v9 = vrot.slane %v5516_v53, 1  ;;  %v5544_v33 = vmax.f32 %v4346_v42, 0.0  ;;  %v5667_v16 = vmax.f32 %v5384_v2, 0.0  ;;  %v1937_v2 = vld [vmem:[%s6963_s1 + $0x338] sm:$0xff] }
 0x27f   :  { %v1395_v63 = vrot.slane %v5469_v47, 1  ;;  %v4347_v60 = vadd.f32 %v1259_v57, %v5297_v18  ;;  %v1261_v36 = vpop.f32.mrb[5].mxu0 }
 0x280   :  { %v4348_v3 = vadd.f32 %v1261_v36, %v5300_v5 }
 0x281   :  { %v5479_v23 = vmax.f32 %v4347_v60, 0.0  ;;  %v1396_v61 = vsel %vm666_vm2, %v1394_v59, %v1395_v63  ;;  %v1432_v59 = vrot.slane %v5513_v27, 1 }
 0x282   :  { %v1265_v58 = vpop.f32.mrb[6].mxu0  ;;  %1448 = vrot.lane.b32.xlu1 %v1396_v61, %s4614_s25 }
 0x283   :  { %v1400_v28 = vrot.slane %v5479_v23, 1  ;;  %v4349_v19 = vadd.f32 %v1265_v58, %v5297_v18  ;;  %v1267_v11 = vpop.f32.mrb[7].mxu0  ;;  %v1428_v58 = vrot.slane %v5523_v7, 1 }
 0x284   :  { %v4350_v60 = vadd.f32 %v1267_v11, %v5300_v5 }
 0x285   :  { %v5491_v6 = vmax.f32 %v4349_v19, 0.0  ;;  %v5494_v45 = vsel %vm666_vm2, %v1395_v63, %v1400_v28  ;;  %v5541_v63 = vsel %vm666_vm2, %v1420_v49, %v1424_v32 }
 0x286   :  { %v1271_v10 = vpop.f32.mrb[8].mxu0  ;;  %1452 = vrot.lane.b32.xlu0 %v5494_v45, %s4614_s25  ;;  %v5567_v42 = vmax.f32 %v4350_v60, 0.0 }
 0x287   :  { %v4351_v13 = vadd.f32 %v1271_v10, %v5297_v18  ;;  %v1273_v14 = vpop.f32.mrb[9].mxu0  ;;  %v1404_v25 = vrot.slane %v5491_v6, 1 }
 0x289   :  { %v5506_v26 = vmax.f32 %v4351_v13, 0.0  ;;  %v1405_v62 = vsel %vm666_vm2, %v1400_v28, %v1404_v25  ;;  %v1436_v28 = vrot.slane %v5526_v50, 1 }
 0x28a   :  { %v1277_v17 = vpop.f32.mrb[10].mxu0 }
 0x28b   :  { %v1408_v20 = vrot.slane %v5506_v26, 1  ;;  %v4353_v12 = vadd.f32 %v1277_v17, %v5297_v18  ;;  %v1279_v48 = vpop.f32.mrb[11].mxu0  ;;  %v1416_v18 = vrot.slane %v5509_v30, 1  ;;  %v1398_v17 = vrot.slane %v5544_v33, 1 }
 0x28c   :  { %v5571_v36 = vsel %vm666_vm2, %v1436_v28, %v1440_v9  ;;  %v5584_v60 = vsel %vm666_vm2, %v1432_v59, %v1436_v28  ;;  %v4615_v28 = vmov 0.0|0.0  }
 0x28d   :  { %v5533_v29 = vsel %vm666_vm2, %v1404_v25, %v1408_v20  ;;  %v5535_v57 = vmax.f32 %v4353_v12, 0.0  ;;  %v5552_v19 = vsel %vm666_vm2, %v1416_v18, %v1420_v49  ;;  %v5564_v25 = vsel %vm666_vm2, %v1428_v58, %v1432_v59  ;;  %4216 = vmatprep.subr.bf16.mxu0 %v4615_v28 }
 0x28e   :  { %v4485_v35 = vpack.i.bf16 %v5533_v29, %v1405_v62  ;;  %v4495_v11 = vpack.i.bf16 %v5541_v63, %v5552_v19  ;;  %v4354_v12 = vadd.f32 %v1279_v48, %v5300_v5  ;;  %v1397_v49 = vrot.slane %v1337_v39, 1 }
 0x28f   :  { %v1412_v61 = vrot.slane %v5535_v57, 1  ;;  %v4505_v48 = vpack.i.bf16 %v5571_v36, %v5584_v60  ;;  %v5601_v59 = vsel %vm666_vm2, %v1440_v9, %v5447_v38  ;;  %v5617_v9 = vmax.f32 %v5306_v8, 0.0  ;;  %v1934_v8 = vld [vmem:[%s6963_s1 + $0x320] sm:$0xff] }
 0x290   :  { %4486 = vrot.lane.b32.xlu1 %v4485_v35, %s4614_s25  ;;  %v4352_v35 = vadd.f32 %v1273_v14, %v5300_v5 }
 0x291   :  { %v1413_v51 = vsel %vm666_vm2, %v1408_v20, %v1412_v61  ;;  %v5558_v10 = vsel %vm666_vm2, %v1412_v61, %v1416_v18  ;;  %v5576_v20 = vsel %vm666_vm2, %v1424_v32, %v1428_v58  ;;  %v5580_v18 = vmax.f32 %v4348_v3, 0.0  ;;  %v1931_v3 = vld [vmem:[%s6963_s1 + $0x308] sm:$0xff] }
 0x292   :  { %v4490_v13 = vpack.i.bf16 %v5558_v10, %v1413_v51  ;;  %v4500_v61 = vpack.i.bf16 %v5564_v25, %v5576_v20  ;;  %v5591_v32 = vmax.f32 %v4354_v12, 0.0  ;;  %v1399_v58 = vsel %vm666_vm2, %v1397_v49, %v1398_v17 }
 0x293   :  { %v1402_v5 = vrot.slane %v5580_v18, 1  ;;  %v5597_v14 = vmax.f32 %v4352_v35, 0.0  ;;  %v4515_v12 = vpack.i.bf16 %v1405_v62, %v5494_v45  ;;  %v4510_v49 = vpack.i.bf16 %v1399_v58, %v5601_v59  ;;  %v1933_v58 = vld [vmem:[%s6963_s1 + $0x318] sm:$0xff] }
 0x294   :  { %4496 = vrot.lane.b32.xlu1 %v4495_v11, %s4614_s25  ;;  %4491 = vrot.lane.b32.xlu0 %v4490_v13, %s4614_s25  ;;  %v1406_v11 = vrot.slane %v5567_v42, 1  ;;  %v1932_v13 = vld [vmem:[%s6963_s1 + $0x310] sm:$0xff] }
 0x295   :  { %v4217_v35 = vpack.c.bf16 %v1932_v13, %v1931_v3  ;;  %v1410_v45 = vrot.slane %v5597_v14, 1  ;;  %v5626_v62 = vsel %vm666_vm2, %v1398_v17, %v1402_v5  ;;  %v4525_v3 = vpack.i.bf16 %v1413_v51, %v5533_v29  ;;  %v1935_v29 = vld [vmem:[%s6963_s1 + $0x328] sm:$0xff]  ;;  %v1936_v51 = vld [vmem:[%s6963_s1 + $0x330] sm:$0xff] }
 0x296   :  { %v5614_v38 = vsel %vm666_vm2, %v1402_v5, %v1406_v11  ;;  %v4220_v13 = vpack.c.bf16 %v1934_v8, %v1933_v58  ;;  %v5639_v17 = vmax.f32 %v5324_v43, 0.0  ;;  %v4223_v58 = vpack.c.bf16 %v1936_v51, %v1935_v29 }
 0x297   :  { %4218 = vmatpush3.bf16.msra.mxu0 %v4217_v35  ;;  %v5658_v35 = vsel %vm666_vm2, %v1406_v11, %v1410_v45  ;;  %v4535_v8 = vpack.i.bf16 %v5552_v19, %v5558_v10  ;;  %v5676_v19 = vmax.f32 %v5366_v55, 0.0  ;;  %v1938_v55 = vld [vmem:[%s6963_s1 + $0x340] sm:$0xff] }
 0x298   :  { %4506 = vrot.lane.b32.xlu1 %v4505_v48, %s4614_s25  ;;  %4501 = vrot.lane.b32.xlu0 %v4500_v61, %s4614_s25  ;;  %v1414_v48 = vrot.slane %v5591_v32, 1  ;;  %v5622_v61 = vmax.f32 %v5312_v22, 0.0  ;;  %v4520_v22 = vpack.i.bf16 %v5614_v38, %v5626_v62  ;;  %v4226_v29 = vpack.c.bf16 %v1938_v55, %v1937_v2 }
 0x299   :  { %4219 = vmatprep.subr.bf16.mxu0 %v4615_v28  ;;  %v1434_v51 = vrot.slane %v5676_v19, 1  ;;  %v4555_v2 = vpack.i.bf16 %v5584_v60, %v5564_v25  ;;  %v1942_v25 = vld [vmem:[%s6963_s1 + $0x360] sm:$0xff]  ;;  %v4565_v55 = vpack.i.bf16 %v5601_v59, %v5571_v36  ;;  %v4575_v36 = vpack.i.bf16 %v5626_v62, %v5459_v34 }
 0x29a   :  { %v5642_v5 = vsel %vm666_vm2, %v1410_v45, %v1414_v48  ;;  %v1422_v43 = vrot.slane %v5622_v61, 1  ;;  %v1670_v34 = vrot.slane %v5491_v6, 2 }
 0x29b   :  { %4221 = vmatpush3.bf16.msra.mxu0 %v4220_v13  ;;  %v1438_v13 = vrot.slane %v5667_v16, 1 }
 0x29c   :  { %4516 = vrot.lane.b32.xlu1 %v4515_v12, %s4616_s7  ;;  %4511 = vrot.lane.b32.xlu0 %v4510_v49, %s4614_s25  ;;  %v1418_v12 = vrot.slane %v5617_v9, 1  ;;  %v5655_v49 = vmax.f32 %v5318_v37, 0.0 }
 0x29d   :  { %4222 = vmatprep.subr.bf16.mxu0 %v4615_v28 }
 0x29e   :  { %v5670_v37 = vsel %vm666_vm2, %v1414_v48, %v1418_v12  ;;  %v1426_v11 = vrot.slane %v5655_v49, 1  ;;  %v5679_v10 = vsel %vm666_vm2, %v1418_v12, %v1422_v43  ;;  %v4545_v48 = vpack.i.bf16 %v5576_v20, %v5541_v63  ;;  %v1939_v63 = vld [vmem:[%s6963_s1 + $0x348] sm:$0xff]  ;;  %v1940_v20 = vld [vmem:[%s6963_s1 + $0x350] sm:$0xff] }
 0x29f   :  { %4224 = vmatpush3.bf16.msra.mxu0 %v4223_v58  ;;  %v4540_v45 = vpack.i.bf16 %v5679_v10, %v5670_v37  ;;  %v5706_v58 = vmax.f32 %v5426_v21, 0.0  ;;  %v1941_v21 = vld [vmem:[%s6963_s1 + $0x358] sm:$0xff] }
 0x2a0   :  { %4526 = vrot.lane.b32.xlu1 %v4525_v3, %s4616_s7  ;;  %4521 = vrot.lane.b32.xlu0 %v4520_v22, %s4614_s25  ;;  %v4530_v3 = vpack.i.bf16 %v5642_v5, %v5658_v35  ;;  %v1430_v22 = vrot.slane %v5639_v17, 1 }
 0x2a1   :  { %4225 = vmatprep.subr.bf16.mxu0 %v4615_v28  ;;  %v1442_v60 = vrot.slane %v5706_v58, 1 }
 0x2a2   :  { %v5694_v12 = vsel %vm666_vm2, %v1426_v11, %v1430_v22 }
 0x2a3   :  { %4227 = vmatpush3.bf16.msra.mxu0 %v4226_v29 }
 0x2a4   :  { %4536 = vrot.lane.b32.xlu1 %v4535_v8, %s4616_s7  ;;  %4531 = vrot.lane.b32.xlu0 %v4530_v3, %s4614_s25  ;;  %v5709_v8 = vsel %vm666_vm2, %v1422_v43, %v1426_v11  ;;  %v4229_v3 = vpack.c.bf16 %v1940_v20, %v1939_v63  ;;  %v5729_v43 = vsel %vm666_vm2, %v1430_v22, %v1434_v51 }
 0x2a5   :  { %4228 = vmatprep.subr.bf16.mxu0 %v4615_v28  ;;  %v4232_v11 = vpack.c.bf16 %v1942_v25, %v1941_v21  ;;  %v5738_v63 = vsel %vm666_vm2, %v1442_v60, %v5451_v44  ;;  %v5743_v22 = vsel %vm666_vm2, %v1438_v13, %v1442_v60  ;;  %v1665_v44 = vrot.slane %v5479_v23, 2 }
 0x2a6   :  { %v4570_v59 = vpack.i.bf16 %v5738_v63, %v5743_v22  ;;  %v4580_v20 = vpack.i.bf16 %v5658_v35, %v5614_v38  ;;  %v1676_v35 = vrot.slane %v5597_v14, 2  ;;  %v1678_v25 = vrot.slane %v5535_v57, 2 }
 0x2a7   :  { %4230 = vmatpush3.bf16.msra.mxu0 %v4229_v3  ;;  %v1667_v3 = vrot.slane %v5544_v33, 2  ;;  %v1671_v38 = vsel %vm791_vm3, %v1665_v44, %v1670_v34 }
 0x2a8   :  { %4546 = vrot.lane.b32.xlu1 %v4545_v48, %s4616_s7  ;;  %4541 = vrot.lane.b32.xlu0 %v4540_v45, %s4614_s25  ;;  %v4550_v48 = vpack.i.bf16 %v5694_v12, %v5709_v8  ;;  %v5717_v45 = vsel %vm666_vm2, %v1434_v51, %v1438_v13  ;;  %v1664_v13 = vrot.slane %v5469_v47, 2  ;;  %v1668_v51 = vrot.slane %v5580_v18, 2 }
 0x2a9   :  { %v4560_v29 = vpack.i.bf16 %v5717_v45, %v5729_v43  ;;  %4231 = vmatprep.subr.bf16.mxu0 %v4615_v28 }
 0x2aa   :  { %v1666_v62 = vsel %vm791_vm3, %v1664_v13, %v1665_v44  ;;  %v1669_v21 = vsel %vm791_vm3, %v1667_v3, %v1668_v51  ;;  %v1684_v3 = vrot.slane %v5617_v9, 2 }
 0x2ab   :  { %4233 = vmatpush3.bf16.msra.mxu0 %v4232_v11 }
 0x2ac   :  { %4556 = vrot.lane.b32.xlu1 %v4555_v2, %s4616_s7  ;;  %4551 = vrot.lane.b32.xlu0 %v4550_v48, %s4614_s25  ;;  %v1672_v2 = vrot.slane %v5567_v42, 2  ;;  %v1674_v48 = vrot.slane %v5506_v26, 2 }
 0x2ad   :  { %4234 = vmatprep.subr.bf16.mxu0 %v4615_v28 }
 0x2ae   :  { %v1673_v60 = vsel %vm791_vm3, %v1668_v51, %v1672_v2  ;;  %v1675_v11 = vsel %vm791_vm3, %v1670_v34, %v1674_v48  ;;  %v4590_v51 = vpack.i.bf16 %v5670_v37, %v5642_v5  ;;  %v1688_v34 = vrot.slane %v5622_v61, 2 }
 0x2b0   :  { %4566 = vrot.lane.b32.xlu1 %v4565_v55, %s4616_s7  ;;  %4561 = vrot.lane.b32.xlu0 %v4560_v29, %s4614_s25  ;;  %v1686_v55 = vrot.slane %v5503_v24, 2  ;;  %v1679_v29 = vsel %vm791_vm3, %v1674_v48, %v1678_v25  ;;  %v1680_v48 = vrot.slane %v5591_v32, 2 }
 0x2b2   :  { %v1681_v37 = vsel %vm791_vm3, %v1676_v35, %v1680_v48 }
 0x2b4   :  { %4576 = vrot.lane.b32.xlu1 %v4575_v36, %s4616_s7  ;;  %4571 = vrot.lane.b32.xlu0 %v4570_v59, %s4614_s25  ;;  %v1677_v36 = vsel %vm791_vm3, %v1672_v2, %v1676_v35  ;;  %v1682_v59 = vrot.slane %v5509_v30, 2  ;;  %v1694_v2 = vrot.slane %v5523_v7, 2 }
 0x2b6   :  { %v1683_v44 = vsel %vm791_vm3, %v1678_v25, %v1682_v59  ;;  %v1687_v13 = vsel %vm791_vm3, %v1682_v59, %v1686_v55  ;;  %v1698_v25 = vrot.slane %v5513_v27, 2  ;;  %v1704_v59 = vrot.slane %v5667_v16, 2 }
 0x2b8   :  { %4581 = vrot.lane.b32.xlu1 %v4580_v20, %s4616_s7  ;;  %1718 = vrot.lane.b32.xlu0 %v1666_v62, %s4618_s28  ;;  %v4585_v20 = vpack.i.bf16 %v5709_v8, %v5679_v10  ;;  %v1690_v62 = vrot.slane %v5497_v52, 2  ;;  %v4595_v8 = vpack.i.bf16 %v5729_v43, %v5694_v12  ;;  %v1699_v35 = vsel %vm791_vm3, %v1694_v2, %v1698_v25 }
 0x2b9   :  { %v4600_v12 = vpack.i.bf16 %v5743_v22, %v5717_v45  ;;  %v1700_v43 = vrot.slane %v5676_v19, 2 }
 0x2ba   :  { %v1691_v10 = vsel %vm791_vm3, %v1686_v55, %v1690_v62  ;;  %v1695_v5 = vsel %vm791_vm3, %v1690_v62, %v1694_v2  ;;  %v1886_v2 = vld [vmem:[%s6963_s1 + $0x1a0] sm:$0xff] }
 0x2bb   :  { %v1705_v45 = vsel %vm791_vm3, %v1700_v43, %v1704_v59 }
 0x2bc   :  { %1720 = vrot.lane.b32.xlu1 %v1669_v21, %s4618_s28  ;;  %1722 = vrot.lane.b32.xlu0 %v1671_v38, %s4618_s28  ;;  %v1689_v21 = vsel %vm791_vm3, %v1684_v3, %v1688_v34  ;;  %v1692_v38 = vrot.slane %v5655_v49, 2 }
 0x2be   :  { %v1693_v55 = vsel %vm791_vm3, %v1688_v34, %v1692_v38 }
 0x2c0   :  { %1724 = vrot.lane.b32.xlu1 %v1673_v60, %s4618_s28  ;;  %1726 = vrot.lane.b32.xlu0 %v1675_v11, %s4618_s28  ;;  %v1685_v60 = vsel %vm791_vm3, %v1680_v48, %v1684_v3  ;;  %v1696_v11 = vrot.slane %v5639_v17, 2  ;;  %v1867_v3 = vld [vmem:[%s6963_s1 + $0x108] sm:$0xff] }
 0x2c4   :  { %1730 = vrot.lane.b32.xlu1 %v1679_v29, %s4618_s28  ;;  %1728 = vrot.lane.b32.xlu0 %v1677_v36, %s4618_s28  ;;  %v1702_v29 = vrot.slane %v5526_v50, 2  ;;  %v1697_v36 = vsel %vm791_vm3, %v1692_v38, %v1696_v11 }
 0x2c8   :  { %1734 = vrot.lane.b32.xlu1 %v1683_v44, %s4618_s28  ;;  %1738 = vrot.lane.b32.xlu0 %v1687_v13, %s4618_s28  ;;  %v1706_v44 = vrot.slane %v5516_v53, 2  ;;  %v1701_v13 = vsel %vm791_vm3, %v1696_v11, %v1700_v43  ;;  %v1871_v11 = vld [vmem:[%s6963_s1 + $0x128] sm:$0xff]  ;;  %v1874_v43 = vld [vmem:[%s6963_s1 + $0x140] sm:$0xff] }
 0x2ca   :  { %v1707_v22 = vsel %vm791_vm3, %v1702_v29, %v1706_v44  ;;  %v1711_v34 = vsel %vm791_vm3, %v1706_v44, %v5449_v40  ;;  %v1868_v40 = vld [vmem:[%s6963_s1 + $0x110] sm:$0xff]  ;;  %v1875_v44 = vld [vmem:[%s6963_s1 + $0x148] sm:$0xff] }
 0x2cc   :  { %4586 = vrot.lane.b32.xlu1 %v4585_v20, %s4616_s7  ;;  %4591 = vrot.lane.b32.xlu0 %v4590_v51, %s4616_s7  ;;  %v1703_v20 = vsel %vm791_vm3, %v1698_v25, %v1702_v29  ;;  %v1708_v51 = vrot.slane %v5706_v58, 2  ;;  %v1891_v29 = vld [vmem:[%s6963_s1 + $0x1c8] sm:$0xff] }
 0x2ce   :  { %v1709_v62 = vsel %vm791_vm3, %v1704_v59, %v1708_v51 }
 0x2d0   :  { %1740 = vrot.lane.b32.xlu1 %v1689_v21, %s4618_s28  ;;  %1742 = vrot.lane.b32.xlu0 %v1691_v10, %s4618_s28  ;;  %v4154_v21 = vpack.c.bf16 %v1868_v40, %v1867_v3 }
 0x2d4   :  { %1746 = vrot.lane.b32.xlu1 %v1695_v5, %s4618_s28  ;;  %1732 = vrot.lane.b32.xlu0 %v1681_v37, %s4618_s28  ;;  %v1869_v37 = vld [vmem:[%s6963_s1 + $0x118] sm:$0xff] }
 0x2d8   :  { %1736 = vrot.lane.b32.xlu1 %v1685_v60, %s4618_s28  ;;  %4596 = vrot.lane.b32.xlu0 %v4595_v8, %s4616_s7 }
 0x2dc   :  { %1750 = vrot.lane.b32.xlu1 %v1699_v35, %s4618_s28  ;;  %1744 = vrot.lane.b32.xlu0 %v1693_v55, %s4618_s28  ;;  %v1890_v35 = vld [vmem:[%s6963_s1 + $0x1c0] sm:$0xff] }
 0x2e0   :  { %4601 = vrot.lane.b32.xlu1 %v4600_v12, %s4616_s7  ;;  %1748 = vrot.lane.b32.xlu0 %v1697_v36, %s4618_s28  ;;  %v1873_v12 = vld [vmem:[%s6963_s1 + $0x138] sm:$0xff] }
 0x2e1   :  { %v4166_v36 = vpack.c.bf16 %v1874_v43, %v1873_v12  ;;  %v1916_v12 = vld [vmem:[%s6963_s1 + $0x290] sm:$0xff] }
 0x2e4   :  { %1752 = vrot.lane.b32.xlu1 %v1701_v13, %s4618_s28  ;;  %1754 = vrot.lane.b32.xlu0 %v1703_v20, %s4618_s28  ;;  %v1876_v13 = vld [vmem:[%s6963_s1 + $0x150] sm:$0xff] }
 0x2e8   :  { %1756 = vrot.lane.b32.xlu1 %v1705_v45, %s4618_s28  ;;  %1758 = vrot.lane.b32.xlu0 %v1707_v22, %s4618_s28  ;;  %v1893_v45 = vld [vmem:[%s6963_s1 + $0x1d8] sm:$0xff]  ;;  %v1894_v22 = vld [vmem:[%s6963_s1 + $0x1e0] sm:$0xff] }
 0x2e9   :  { %v4172_v40 = vpack.c.bf16 %v1894_v22, %v1893_v45 }
 0x2ec   :  { %1762 = vrot.lane.b32.xlu1 %v1711_v34, %s4618_s28  ;;  %1605 = vrot.lane.b32.xlu0 %v5738_v63, %s4616_s7  ;;  %v1885_v63 = vld [vmem:[%s6963_s1 + $0x198] sm:$0xff] }
 0x2ed   :  { %v4156_v5 = vpack.c.bf16 %v1886_v2, %v1885_v63  ;;  %v1877_v63 = vld [vmem:[%s6963_s1 + $0x158] sm:$0xff]  ;;  %v1878_v2 = vld [vmem:[%s6963_s1 + $0x160] sm:$0xff] }
 0x2f0   :  { %1609 = vrot.lane.b32.xlu1 %v5467_v41, %s4616_s7  ;;  %1760 = vrot.lane.b32.xlu0 %v1709_v62, %s4618_s28  ;;  %v1713_v41 = vsel %vm791_vm3, %v1708_v51, %v5453_v46  ;;  %v1870_v46 = vld [vmem:[%s6963_s1 + $0x120] sm:$0xff]  ;;  %v4170_v62 = vpack.c.bf16 %v1876_v13, %v1875_v44 }
 0x2f1   :  { %v4158_v38 = vpack.c.bf16 %v1870_v46, %v1869_v37  ;;  %v4174_v46 = vpack.c.bf16 %v1878_v2, %v1877_v63 }
 0x2f4   :  { %v5858_v48 = vpop.permute.xlu1 %1448  ;;  %1766 = vrot.lane.b32.xlu1 %v5463_v54, %s4618_s28  ;;  %1764 = vrot.lane.b32.xlu0 %v1713_v41, %s4618_s28  ;;  %v1887_v54 = vld [vmem:[%s6963_s1 + $0x1a8] sm:$0xff] }
 0x2f5   :  { %v1796_v10 = vsel %vm1500_vm9, %v1337_v39, %v5858_v48  ;;  %v6966_v39 = vmax.f32 %v5445_v31, 0.0  ;;  %v4160_v60 = vpack.c.bf16 %v1888_v0, %v1887_v54  ;;  %v1872_v31 = vld [vmem:[%s6963_s1 + $0x130] sm:$0xff]  ;;  %v1879_v0 = vld [vmem:[%s6963_s1 + $0x168] sm:$0xff] }
 0x2f6   :  { %2039 = vmatprep.mubr.f32.mxu1 %v1796_v10  ;;  %v1895_v10 = vld [vmem:[%s6963_s1 + $0x1e8] sm:$0xff] }
 0x2f7   :  { %2040 = vmatmul.mubr.f32.vlgmr.msra.gmra.mrb[18].mxu1 %v6966_v39  ;;  %v1880_v39 = vld [vmem:[%s6963_s1 + $0x170] sm:$0xff] }
 0x2f8   :  { %v5881_v8 = vpop.permute.xlu0 %1452  ;;  %1768 = vrot.lane.b32.xlu0 %v5473_v56, %s4618_s28  ;;  %4155 = vmatpush3.bf16.msra.mxu1 %v4154_v21  ;;  %v1889_v56 = vld [vmem:[%s6963_s1 + $0x1b8] sm:$0xff] }
 0x2f9   :  { %v1797_v25 = vsel %vm1500_vm9, %v5544_v33, %v5881_v8  ;;  %4157 = vmatprep.subr.bf16.mxu1 %v4156_v5  ;;  %v4162_v33 = vpack.c.bf16 %v1872_v31, %v1871_v11  ;;  %v4164_v55 = vpack.c.bf16 %v1890_v35, %v1889_v56  ;;  %v4178_v31 = vpack.c.bf16 %v1880_v39, %v1879_v0  ;;  %v1881_v35 = vld [vmem:[%s6963_s1 + $0x178] sm:$0xff] }
 0x2fa   :  { %2044 = vmatprep.mubr.f32.mxu1 %v1797_v25  ;;  %v1898_v25 = vld [vmem:[%s6963_s1 + $0x200] sm:$0xff] }
 0x2fb   :  { %2045 = vmatmul.mubr.f32.gmra.mrb[20].mxu1 %v5469_v47  ;;  %v1892_v47 = vld [vmem:[%s6963_s1 + $0x1d0] sm:$0xff] }
 0x2fc   :  { %4159 = vmatpush3.bf16.msra.mxu1 %v4158_v38  ;;  %v4168_v59 = vpack.c.bf16 %v1892_v47, %v1891_v29 }
 0x2fd   :  { %4161 = vmatprep.subr.bf16.mxu1 %v4160_v60 }
 0x300   :  { %4163 = vmatpush3.bf16.msra.mxu1 %v4162_v33  ;;  %v1882_v33 = vld [vmem:[%s6963_s1 + $0x180] sm:$0xff] }
 0x301   :  { %4165 = vmatprep.subr.bf16.mxu1 %v4164_v55  ;;  %v4182_v47 = vpack.c.bf16 %v1882_v33, %v1881_v35 }
 0x302   :  { %v5919_v20 = vpop.permute.xlu1 %4486 }
 0x303   :  { %v4489_v51 = vunpack.i.h.bf16 %v5919_v20  ;;  %v4488_v34 = vunpack.i.l.bf16 %v5919_v20  ;;  %v1925_v20 = vld [vmem:[%s6963_s1 + $0x2d8] sm:$0xff] }
 0x304   :  { %4167 = vmatpush3.bf16.msra.mxu1 %v4166_v36 }
 0x305   :  { %v1798_v3 = vsel %vm1500_vm9, %v5580_v18, %v4488_v34  ;;  %4169 = vmatprep.subr.bf16.mxu1 %v4168_v59  ;;  %v1896_v18 = vld [vmem:[%s6963_s1 + $0x1f0] sm:$0xff]  ;;  %v1799_v37 = vsel %vm1500_vm9, %v5567_v42, %v4489_v51  ;;  %v1897_v42 = vld [vmem:[%s6963_s1 + $0x1f8] sm:$0xff] }
 0x306   :  { %2049 = vmatprep.mubr.f32.mxu1 %v1798_v3  ;;  %v5939_v41 = vpop.permute.xlu1 %4496  ;;  %v5941_v21 = vpop.permute.xlu0 %4491  ;;  %v4176_v54 = vpack.c.bf16 %v1896_v18, %v1895_v10  ;;  %v4180_v56 = vpack.c.bf16 %v1898_v25, %v1897_v42  ;;  %v1899_v42 = vld [vmem:[%s6963_s1 + $0x208] sm:$0xff]  ;;  %v1900_v25 = vld [vmem:[%s6963_s1 + $0x210] sm:$0xff] }
 0x307   :  { %v4493_v5 = vunpack.i.l.bf16 %v5941_v21  ;;  %2050 = vmatmul.mubr.f32.gmra.mrb[22].mxu1 %v5479_v23  ;;  %v4494_v60 = vunpack.i.h.bf16 %v5941_v21  ;;  %v4498_v43 = vunpack.i.l.bf16 %v5939_v41  ;;  %v4499_v13 = vunpack.i.h.bf16 %v5939_v41 }
 0x308   :  { %2054 = vmatprep.mubr.f32.mxu1 %v1799_v37  ;;  %4171 = vmatpush3.bf16.msra.mxu1 %v4170_v62 }
 0x309   :  { %4173 = vmatprep.subr.bf16.mxu1 %v4172_v40  ;;  %v1800_v11 = vsel %vm1500_vm9, %v5597_v14, %v4493_v5  ;;  %v1915_v14 = vld [vmem:[%s6963_s1 + $0x288] sm:$0xff]  ;;  %v1801_v29 = vsel %vm1500_vm9, %v5591_v32, %v4494_v60 }
 0x30a   :  { %v5961_v38 = vpop.permute.xlu1 %4506  ;;  %v5963_v23 = vpop.permute.xlu0 %4501  ;;  %v4184_v36 = vpack.c.bf16 %v1916_v12, %v1915_v14 }
 0x30b   :  { %2055 = vmatmul.mubr.f32.gmra.mrb[24].mxu1 %v5491_v6  ;;  %v4503_v22 = vunpack.i.l.bf16 %v5963_v23  ;;  %v4504_v3 = vunpack.i.h.bf16 %v5963_v23 }
 0x30c   :  { %2059 = vmatprep.mubr.f32.mxu1 %v1800_v11  ;;  %4175 = vmatpush3.bf16.msra.mxu1 %v4174_v46 }
 0x30d   :  { %4177 = vmatprep.subr.bf16.mxu1 %v4176_v54  ;;  %v1804_v40 = vsel %vm1500_vm9, %v5655_v49, %v4503_v22  ;;  %v1805_v2 = vsel %vm1500_vm9, %v5639_v17, %v4504_v3  ;;  %v4509_v49 = vunpack.i.h.bf16 %v5961_v38 }
 0x30e   :  { %v5983_v55 = vpop.permute.xlu1 %4516  ;;  %v5985_v6 = vpop.permute.xlu0 %4511 }
 0x30f   :  { %2060 = vmatmul.mubr.f32.gmra.mrb[26].mxu1 %v5506_v26  ;;  %v1802_v26 = vsel %vm1500_vm9, %v5617_v9, %v4498_v43  ;;  %v4513_v17 = vunpack.i.l.bf16 %v5985_v6  ;;  %v1807_v46 = vsel %vm1500_vm9, %v5667_v16, %v4509_v49  ;;  %v4514_v0 = vunpack.i.h.bf16 %v5985_v6 }
 0x310   :  { %2064 = vmatprep.mubr.f32.mxu1 %v1801_v29  ;;  %4179 = vmatpush3.bf16.msra.mxu1 %v4178_v31  ;;  %v1917_v31 = vld [vmem:[%s6963_s1 + $0x298] sm:$0xff]  ;;  %v4519_v35 = vunpack.i.h.bf16 %v5983_v55 }
 0x311   :  { %4181 = vmatprep.subr.bf16.mxu1 %v4180_v56  ;;  %v1918_v56 = vld [vmem:[%s6963_s1 + $0x2a0] sm:$0xff]  ;;  %v1501_v12 = vsel %vm1500_vm9, %v5858_v48, %v4514_v0 }
 0x312   :  { %v5999_v59 = vpop.permute.xlu1 %4526  ;;  %v6001_v44 = vpop.permute.xlu0 %4521  ;;  %v4188_v29 = vpack.c.bf16 %v1918_v56, %v1917_v31  ;;  %v1922_v31 = vld [vmem:[%s6963_s1 + $0x2c0] sm:$0xff] }
 0x313   :  { %2065 = vmatmul.mubr.f32.gmra.mrb[28].mxu1 %v5535_v57  ;;  %v1803_v57 = vsel %vm1500_vm9, %v5622_v61, %v4499_v13  ;;  %v4508_v61 = vunpack.i.l.bf16 %v5961_v38  ;;  %v4529_v56 = vunpack.i.h.bf16 %v5999_v59 }
 0x314   :  { %2069 = vmatprep.mubr.f32.mxu1 %v1802_v26  ;;  %4183 = vmatpush3.bf16.msra.mxu1 %v4182_v47  ;;  %v1901_v47 = vld [vmem:[%s6963_s1 + $0x218] sm:$0xff]  ;;  %v4528_v26 = vunpack.i.l.bf16 %v5999_v59 }
 0x315   :  { %4185 = vmatprep.subr.bf16.mxu1 %v4184_v36  ;;  %v1806_v18 = vsel %vm1500_vm9, %v5676_v19, %v4508_v61  ;;  %v4518_v19 = vunpack.i.l.bf16 %v5983_v55  ;;  %v1902_v36 = vld [vmem:[%s6963_s1 + $0x220] sm:$0xff] }
 0x316   :  { %v6009_v32 = vpop.permute.xlu1 %4536  ;;  %v6011_v45 = vpop.permute.xlu0 %4531 }
 0x317   :  { %2070 = vmatmul.mubr.f32.gmra.mrb[30].mxu1 %v5509_v30 }
 0x318   :  { %2074 = vmatprep.mubr.f32.mxu1 %v1803_v57  ;;  %v4524_v57 = vunpack.i.h.bf16 %v6001_v44 }
 0x31a   :  { %v6019_v62 = vpop.permute.xlu1 %4546  ;;  %v6021_v9 = vpop.permute.xlu0 %4541 }
 0x31b   :  { %2075 = vmatmul.mubr.f32.gmra.mrb[32].mxu1 %v5503_v24 }
 0x31c   :  { %2079 = vmatprep.mubr.f32.mxu1 %v1804_v40 }
 0x31e   :  { %v6029_v30 = vpop.permute.xlu1 %4556  ;;  %v6031_v63 = vpop.permute.xlu0 %4551 }
 0x31f   :  { %2080 = vmatmul.mubr.f32.gmra.mrb[34].mxu1 %v5497_v52 }
 0x320   :  { %2084 = vmatprep.mubr.f32.mxu1 %v1805_v2  ;;  %v1919_v2 = vld [vmem:[%s6963_s1 + $0x2a8] sm:$0xff] }
 0x322   :  { %v6039_v24 = vpop.permute.xlu1 %4566  ;;  %v6041_v10 = vpop.permute.xlu0 %4561 }
 0x323   :  { %2085 = vmatmul.mubr.f32.gmra.mrb[36].mxu1 %v5523_v7 }
 0x324   :  { %2089 = vmatprep.mubr.f32.mxu1 %v1806_v18  ;;  %v1920_v18 = vld [vmem:[%s6963_s1 + $0x2b0] sm:$0xff] }
 0x326   :  { %v6049_v52 = vpop.permute.xlu1 %4576  ;;  %v6051_v37 = vpop.permute.xlu0 %4571 }
 0x327   :  { %2090 = vmatmul.mubr.f32.gmra.mrb[38].mxu1 %v5513_v27  ;;  %v1808_v27 = vsel %vm1500_vm9, %v5706_v58, %v4513_v17  ;;  %v1809_v58 = vsel %vm1611_vm10, %v4514_v0, %v4518_v19 }
 0x328   :  { %2094 = vmatprep.mubr.f32.mxu1 %v1807_v46 }
 0x32a   :  { %v6059_v7 = vpop.permute.xlu1 %4581  ;;  %v6061_v54 = vpop.permute.xlu0 %1718 }
 0x32b   :  { %2095 = vmatmul.mubr.f32.gmra.mrb[40].mxu1 %v5526_v50  ;;  %v4523_v50 = vunpack.i.l.bf16 %v6001_v44  ;;  %v4190_v44 = vpack.c.bf16 %v1902_v36, %v1901_v47  ;;  %v1905_v36 = vld [vmem:[%s6963_s1 + $0x238] sm:$0xff] }
 0x32c   :  { %2099 = vmatprep.mubr.f32.mxu1 %v1808_v27 }
 0x32d   :  { %v1810_v48 = vsel %vm1611_vm10, %v4523_v50, %v4519_v35  ;;  %v1502_v27 = vsel %vm1500_vm9, %v5881_v8, %v4523_v50  ;;  %v1811_v8 = vsel %vm1611_vm10, %v4524_v57, %v4528_v26  ;;  %v1921_v50 = vld [vmem:[%s6963_s1 + $0x2b8] sm:$0xff] }
 0x32e   :  { %v1721_v16 = vpop.permute.xlu1 %1720  ;;  %v6070_v39 = vpop.permute.xlu0 %1722  ;;  %v4196_v47 = vpack.c.bf16 %v1922_v31, %v1921_v50 }
 0x32f   :  { %v1770_v11 = vsel %vm995_vm7, %v6061_v54, %v1721_v16  ;;  %2100 = vmatmul.mubr.f32.gmra.mrb[42].mxu1 %v5516_v53  ;;  %v4186_v53 = vpack.c.bf16 %v1900_v25, %v1899_v42  ;;  %v4192_v16 = vpack.c.bf16 %v1920_v18, %v1919_v2  ;;  %v1903_v42 = vld [vmem:[%s6963_s1 + $0x228] sm:$0xff]  ;;  %v1904_v25 = vld [vmem:[%s6963_s1 + $0x230] sm:$0xff]  ;;  %v4534_v2 = vunpack.i.h.bf16 %v6011_v45 }
 0x330   :  { %2169 = vmatprep.mubr.f32.mxu1 %v1809_v58  ;;  %3865 = vmatmul.mubr.msk.f32.vlgmr.msra.gmra.mrb[30].mxu0 %vm1948_vm11, %v1770_v11  ;;  %v4533_v11 = vunpack.i.l.bf16 %v6011_v45 }
 0x331   :  { %3867 = vmatprep.mubr.msk.f32.mxu0 %vm4617_vm8, %v4610_v1 }
 0x332   :  { %v1725_v33 = vpop.permute.xlu1 %1724  ;;  %v6095_v14 = vpop.permute.xlu0 %1726  ;;  %v1812_v18 = vsel %vm1611_vm10, %v4533_v11, %v4529_v56  ;;  %v1504_v45 = vsel %vm1500_vm9, %v4489_v51, %v4533_v11  ;;  %v1926_v51 = vld [vmem:[%s6963_s1 + $0x2e0] sm:$0xff]  ;;  %v4539_v11 = vunpack.i.h.bf16 %v6009_v32 }
 0x333   :  { %v1771_v40 = vsel %vm995_vm7, %v6070_v39, %v1725_v33  ;;  %2170 = vmatmul.mubr.f32.vlgmr.msra.gmra.mrb[44].mxu1 %v1501_v12 }
 0x334   :  { %2174 = vmatprep.mubr.f32.mxu1 %v1810_v48  ;;  %3868 = vmatmul.mubr.msk.f32.gmra.mrb[32].mxu0 %vm1948_vm11, %v1771_v40  ;;  %v1906_v40 = vld [vmem:[%s6963_s1 + $0x240] sm:$0xff]  ;;  %v4538_v48 = vunpack.i.l.bf16 %v6009_v32 }
 0x335   :  { %3870 = vmatprep.mubr.msk.f32.mxu0 %vm4617_vm8, %v4610_v1  ;;  %4187 = vmatpush3.bf16.msra.mxu1 %v4186_v53  ;;  %v4194_v53 = vpack.c.bf16 %v1904_v25, %v1903_v42  ;;  %v1907_v42 = vld [vmem:[%s6963_s1 + $0x248] sm:$0xff]  ;;  %v1908_v25 = vld [vmem:[%s6963_s1 + $0x250] sm:$0xff] }
 0x336   :  { %v6121_v46 = vpop.permute.xlu1 %1730  ;;  %v1729_v0 = vpop.permute.xlu0 %1728  ;;  %4189 = vmatprep.subr.bf16.mxu1 %v4188_v29  ;;  %v1503_v29 = vsel %vm1500_vm9, %v4488_v34, %v4524_v57  ;;  %v1923_v34 = vld [vmem:[%s6963_s1 + $0x2c8] sm:$0xff]  ;;  %v1924_v57 = vld [vmem:[%s6963_s1 + $0x2d0] sm:$0xff]  ;;  %v4202_v50 = vpack.c.bf16 %v1908_v25, %v1907_v42 }
 0x337   :  { %v1772_v58 = vsel %vm995_vm7, %v6095_v14, %v1729_v0  ;;  %2175 = vmatmul.mubr.f32.gmra.mrb[46].mxu1 %v1502_v27  ;;  %v1911_v25 = vld [vmem:[%s6963_s1 + $0x268] sm:$0xff] }
 0x338   :  { %2179 = vmatprep.mubr.f32.mxu1 %v1811_v8  ;;  %3871 = vmatmul.mubr.msk.f32.gmra.mrb[34].mxu0 %vm1948_vm11, %v1772_v58  ;;  %v4543_v58 = vunpack.i.l.bf16 %v6021_v9  ;;  %v1813_v8 = vsel %vm1611_vm10, %v4534_v2, %v4538_v48 }
 0x339   :  { %4191 = vmatpush3.bf16.msra.mxu1 %v4190_v44  ;;  %3873 = vmatprep.mubr.msk.f32.mxu0 %vm4617_vm8, %v4610_v1  ;;  %v4198_v44 = vpack.c.bf16 %v1906_v40, %v1905_v36  ;;  %v1909_v36 = vld [vmem:[%s6963_s1 + $0x258] sm:$0xff]  ;;  %v1910_v40 = vld [vmem:[%s6963_s1 + $0x260] sm:$0xff] }
 0x33a   :  { %v6147_v33 = vpop.permute.xlu1 %1734  ;;  %v6149_v12 = vpop.permute.xlu0 %1738  ;;  %4193 = vmatprep.subr.bf16.mxu1 %v4192_v16  ;;  %v4200_v16 = vpack.c.bf16 %v1924_v57, %v1923_v34  ;;  %v4544_v34 = vunpack.i.h.bf16 %v6021_v9  ;;  %v1814_v57 = vsel %vm1611_vm10, %v4543_v58, %v4539_v11  ;;  %v1506_v9 = vsel %vm1500_vm9, %v4494_v60, %v4543_v58  ;;  %v1929_v60 = vld [vmem:[%s6963_s1 + $0x2f8] sm:$0xff]  ;;  %v1930_v58 = vld [vmem:[%s6963_s1 + $0x300] sm:$0xff] }
 0x33b   :  { %2180 = vmatmul.mubr.f32.gmra.mrb[48].mxu1 %v1503_v29  ;;  %v1505_v29 = vsel %vm1500_vm9, %v4493_v5, %v4534_v2  ;;  %v1927_v5 = vld [vmem:[%s6963_s1 + $0x2e8] sm:$0xff]  ;;  %v1928_v2 = vld [vmem:[%s6963_s1 + $0x2f0] sm:$0xff] }
 0x33c   :  { %2184 = vmatprep.mubr.f32.mxu1 %v1812_v18  ;;  %v4548_v18 = vunpack.i.l.bf16 %v6019_v62  ;;  %v4208_v42 = vpack.c.bf16 %v1928_v2, %v1927_v5  ;;  %v1913_v5 = vld [vmem:[%s6963_s1 + $0x278] sm:$0xff]  ;;  %v1914_v2 = vld [vmem:[%s6963_s1 + $0x280] sm:$0xff] }
 0x33d   :  { %4195 = vmatpush3.bf16.msra.mxu1 %v4194_v53 }
 0x33e   :  { %v6171_v0 = vpop.permute.xlu1 %4586  ;;  %v6173_v27 = vpop.permute.xlu0 %4591  ;;  %4197 = vmatprep.subr.bf16.mxu1 %v4196_v47  ;;  %v4204_v47 = vpack.c.bf16 %v1926_v51, %v1925_v20  ;;  %v4553_v20 = vunpack.i.l.bf16 %v6031_v63  ;;  %v1815_v21 = vsel %vm1611_vm10, %v4544_v34, %v4548_v18 }
 0x33f   :  { %2185 = vmatmul.mubr.f32.gmra.mrb[50].mxu1 %v1504_v45  ;;  %v4589_v59 = vunpack.i.h.bf16 %v6171_v0 }
 0x340   :  { %2189 = vmatprep.mubr.f32.mxu1 %v1813_v8  ;;  %v1912_v8 = vld [vmem:[%s6963_s1 + $0x270] sm:$0xff] }
 0x341   :  { %4199 = vmatpush3.bf16.msra.mxu1 %v4198_v44  ;;  %v4206_v44 = vpack.c.bf16 %v1910_v40, %v1909_v36  ;;  %v1507_v40 = vsel %vm1500_vm9, %v4498_v43, %v4544_v34  ;;  %v4214_v34 = vpack.c.bf16 %v1914_v2, %v1913_v5 }
 0x342   :  { %v1741_v31 = vpop.permute.xlu1 %1740  ;;  %v6195_v53 = vpop.permute.xlu0 %1742  ;;  %4201 = vmatprep.subr.bf16.mxu1 %v4200_v16 }
 0x343   :  { %2190 = vmatmul.mubr.f32.gmra.mrb[52].mxu1 %v1505_v29  ;;  %v4210_v29 = vpack.c.bf16 %v1912_v8, %v1911_v25  ;;  %v4563_v8 = vunpack.i.l.bf16 %v6041_v10 }
 0x344   :  { %2194 = vmatprep.mubr.f32.mxu1 %v1814_v57  ;;  %v4212_v57 = vpack.c.bf16 %v1930_v58, %v1929_v60  ;;  %v4559_v60 = vunpack.i.h.bf16 %v6029_v30  ;;  %v4564_v58 = vunpack.i.h.bf16 %v6041_v10 }
 0x345   :  { %4203 = vmatpush3.bf16.msra.mxu1 %v4202_v50  ;;  %v4549_v50 = vunpack.i.h.bf16 %v6019_v62  ;;  %v1510_v10 = vsel %vm1500_vm9, %v4504_v3, %v4563_v8 }
 0x346   :  { %v6217_v45 = vpop.permute.xlu1 %1746  ;;  %v1733_v16 = vpop.permute.xlu0 %1732  ;;  %4205 = vmatprep.subr.bf16.mxu1 %v4204_v47 }
 0x347   :  { %v1773_v51 = vsel %vm995_vm7, %v6121_v46, %v1733_v16  ;;  %2195 = vmatmul.mubr.f32.gmra.mrb[54].mxu1 %v1506_v9  ;;  %v4554_v16 = vunpack.i.h.bf16 %v6031_v63  ;;  %v1816_v43 = vsel %vm1611_vm10, %v4553_v20, %v4549_v50  ;;  %v1508_v63 = vsel %vm1500_vm9, %v4499_v13, %v4553_v20 }
 0x348   :  { %2199 = vmatprep.mubr.f32.mxu1 %v1815_v21  ;;  %3874 = vmatmul.mubr.msk.f32.gmra.mrb[36].mxu0 %vm1948_vm11, %v1773_v51  ;;  %v1775_v51 = vsel %vm995_vm7, %v6149_v12, %v1741_v31  ;;  %v4568_v20 = vunpack.i.l.bf16 %v6039_v24 }
 0x349   :  { %3876 = vmatprep.mubr.msk.f32.mxu0 %vm4617_vm8, %v4610_v1  ;;  %4207 = vmatpush3.bf16.msra.mxu1 %v4206_v44  ;;  %v4558_v44 = vunpack.i.l.bf16 %v6029_v30  ;;  %v1509_v31 = vsel %vm1500_vm9, %v4503_v22, %v4554_v16 }
 0x34a   :  { %v1737_v47 = vpop.permute.xlu1 %1736  ;;  %v6244_v36 = vpop.permute.xlu0 %4596  ;;  %4209 = vmatprep.subr.bf16.mxu1 %v4208_v42  ;;  %v1819_v2 = vsel %vm1611_vm10, %v4564_v58, %v4568_v20 }
 0x34b   :  { %v1774_v9 = vsel %vm995_vm7, %v6147_v33, %v1737_v47  ;;  %2200 = vmatmul.mubr.f32.gmra.mrb[56].mxu1 %v1507_v40  ;;  %v1817_v21 = vsel %vm1611_vm10, %v4554_v16, %v4558_v44  ;;  %v1818_v47 = vsel %vm1611_vm10, %v4563_v8, %v4559_v60  ;;  %v4569_v16 = vunpack.i.h.bf16 %v6039_v24  ;;  %v2509_v24 = vld [vmem:[%s6963_s1 + $0x4b0] sm:$0xff] }
 0x34c   :  { %2204 = vmatprep.mubr.f32.mxu1 %v1816_v43  ;;  %3877 = vmatmul.mubr.msk.f32.gmra.mrb[38].mxu0 %vm1948_vm11, %v1774_v9  ;;  %v1511_v9 = vsel %vm1500_vm9, %v4508_v61, %v4564_v58  ;;  %v4578_v43 = vunpack.i.l.bf16 %v6049_v52  ;;  %v4599_v32 = vunpack.i.h.bf16 %v6244_v36 }
 0x34d   :  { %3879 = vmatprep.mubr.msk.f32.mxu0 %vm4617_vm8, %v4610_v1  ;;  %4211 = vmatpush3.bf16.msra.mxu1 %v4210_v29 }
 0x34e   :  { %v6265_v42 = vpop.permute.xlu1 %1750  ;;  %v1745_v25 = vpop.permute.xlu0 %1744  ;;  %4213 = vmatprep.subr.bf16.mxu1 %v4212_v57  ;;  %v4573_v57 = vunpack.i.l.bf16 %v6051_v37 }
 0x34f   :  { %2205 = vmatmul.mubr.f32.gmra.mrb[58].mxu1 %v1508_v63  ;;  %v1776_v29 = vsel %vm995_vm7, %v6195_v53, %v1745_v25 }
 0x350   :  { %2209 = vmatprep.mubr.f32.mxu1 %v1817_v21  ;;  %3880 = vmatmul.mubr.msk.f32.gmra.mrb[40].mxu0 %vm1948_vm11, %v1775_v51  ;;  %v1820_v63 = vsel %vm1611_vm10, %v4573_v57, %v4569_v16 }
 0x351   :  { %3882 = vmatprep.mubr.msk.f32.mxu0 %vm4617_vm8, %v4610_v1  ;;  %4215 = vmatpush3.bf16.msra.mxu1 %v4214_v34  ;;  %v4574_v34 = vunpack.i.h.bf16 %v6051_v37  ;;  %v1512_v37 = vsel %vm1500_vm9, %v4509_v49, %v4573_v57 }
 0x352   :  { %v6280_v41 = vpop.permute.xlu1 %4601  ;;  %v1749_v13 = vpop.permute.xlu0 %1748  ;;  %4333 = vmatprep.subr.bf16.mxu1 %v4615_v28 }
 0x353   :  { %2210 = vmatmul.mubr.f32.gmra.mrb[60].mxu1 %v1509_v31  ;;  %v1777_v5 = vsel %vm995_vm7, %v6217_v45, %v1749_v13  ;;  %v1821_v21 = vsel %vm1611_vm10, %v4574_v34, %v4578_v43  ;;  %v4579_v13 = vunpack.i.h.bf16 %v6049_v52  ;;  %v1513_v38 = vsel %vm1500_vm9, %v4513_v17, %v4574_v34  ;;  %v2510_v52 = vld [vmem:[%s6963_s1 + $0x4b8] sm:$0xff] }
 0x354   :  { %2214 = vmatprep.mubr.f32.mxu1 %v1818_v47  ;;  %3883 = vmatmul.mubr.msk.f32.gmra.mrb[42].mxu0 %vm1948_vm11, %v1776_v29  ;;  %v4583_v47 = vunpack.i.l.bf16 %v6059_v7  ;;  %v4604_v62 = vunpack.i.h.bf16 %v6280_v41 }
 0x355   :  { %3885 = vmatprep.mubr.msk.f32.mxu0 %vm4617_vm8, %v4610_v1  ;;  %v1822_v58 = vsel %vm995_vm7, %v4579_v13, %v6061_v54  ;;  %v1612_v17 = vsel %vm1611_vm10, %v4518_v19, %v4579_v13 }
 0x356   :  { %v1753_v22 = vpop.permute.xlu1 %1752  ;;  %v6296_v40 = vpop.permute.xlu0 %1754  ;;  %v1823_v54 = vsel %vm995_vm7, %v4583_v47, %v6070_v39  ;;  %v1613_v19 = vsel %vm1611_vm10, %v4519_v35, %v4583_v47 }
 0x357   :  { %2215 = vmatmul.mubr.f32.gmra.mrb[62].mxu1 %v1510_v10  ;;  %v1778_v25 = vsel %vm995_vm7, %v6265_v42, %v1753_v22  ;;  %v4584_v10 = vunpack.i.h.bf16 %v6059_v7  ;;  %v4594_v7 = vunpack.i.h.bf16 %v6173_v27 }
 0x358   :  { %2219 = vmatprep.mubr.f32.mxu1 %v1819_v2  ;;  %3886 = vmatmul.mubr.msk.f32.gmra.mrb[44].mxu0 %vm1948_vm11, %v1777_v5  ;;  %v4593_v2 = vunpack.i.l.bf16 %v6173_v27  ;;  %v4598_v27 = vunpack.i.l.bf16 %v6244_v36 }
 0x359   :  { %3888 = vmatprep.mubr.msk.f32.mxu0 %vm4617_vm8, %v4610_v1  ;;  %v1824_v39 = vsel %vm995_vm7, %v4584_v10, %v6095_v14  ;;  %v1614_v55 = vsel %vm1611_vm10, %v4528_v26, %v4584_v10  ;;  %v1826_v34 = vsel %vm995_vm7, %v4594_v7, %v6147_v33  ;;  %v1616_v26 = vsel %vm1611_vm10, %v4538_v48, %v4594_v7 }
 0x35a   :  { %v1757_v23 = vpop.permute.xlu1 %1756  ;;  %v6311_v3 = vpop.permute.xlu0 %1758  ;;  %v1825_v35 = vsel %vm995_vm7, %v4593_v2, %v6121_v46  ;;  %v1615_v14 = vsel %vm1611_vm10, %v4529_v56, %v4593_v2  ;;  %v1828_v33 = vsel %vm995_vm7, %v4589_v59, %v6195_v53  ;;  %v1618_v48 = vsel %vm1611_vm10, %v4548_v18, %v4589_v59 }
 0x35b   :  { %2220 = vmatmul.mubr.f32.gmra.mrb[64].mxu1 %v1511_v9  ;;  %v1779_v51 = vsel %vm995_vm7, %v6296_v40, %v1757_v23  ;;  %v4588_v9 = vunpack.i.l.bf16 %v6171_v0  ;;  %v1619_v0 = vsel %vm1611_vm10, %v4549_v50, %v4598_v27  ;;  %v4603_v53 = vunpack.i.l.bf16 %v6280_v41 }
 0x35c   :  { %2224 = vmatprep.mubr.f32.mxu1 %v1820_v63  ;;  %3889 = vmatmul.mubr.msk.f32.gmra.mrb[46].mxu0 %vm1948_vm11, %v1778_v25  ;;  %v1620_v18 = vsel %vm1611_vm10, %v4558_v44, %v4599_v32  ;;  %v1832_v36 = vsel %vm995_vm7, %v4604_v62, %v6311_v3  ;;  %v1622_v44 = vsel %vm1611_vm10, %v4568_v20, %v4604_v62  ;;  %v2508_v20 = vld [vmem:[%s6963_s1 + $0x4a8] sm:$0xff]  ;;  %v2513_v25 = vld [vmem:[%s6963_s1 + $0x4d0] sm:$0xff] }
 0x35d   :  { %3891 = vmatprep.mubr.msk.f32.mxu0 %vm4617_vm8, %v4610_v1  ;;  %v1827_v46 = vsel %vm995_vm7, %v4588_v9, %v6149_v12  ;;  %v1617_v56 = vsel %vm1611_vm10, %v4539_v11, %v4588_v9  ;;  %v1829_v12 = vsel %vm995_vm7, %v4598_v27, %v6217_v45  ;;  %v1830_v11 = vsel %vm995_vm7, %v4599_v32, %v6265_v42 }
 0x35e   :  { %v6326_v8 = vpop.permute.xlu1 %1762  ;;  %v6328_v61 = vpop.permute.xlu0 %1605  ;;  %v1831_v45 = vsel %vm995_vm7, %v4603_v53, %v6296_v40  ;;  %v1621_v50 = vsel %vm1611_vm10, %v4559_v60, %v4603_v53  ;;  %v4235_v40 = vpack.c.bf16 %v2509_v24, %v2508_v20 }
 0x35f   :  { %2225 = vmatmul.mubr.f32.gmra.mrb[66].mxu1 %v1512_v37  ;;  %v1833_v42 = vsel %vm995_vm7, %v6328_v61, %v6326_v8  ;;  %v1623_v30 = vsel %vm1611_vm10, %v4569_v16, %v6328_v61  ;;  %v2511_v16 = vld [vmem:[%s6963_s1 + $0x4c0] sm:$0xff] }
 0x360   :  { %2229 = vmatprep.mubr.f32.mxu1 %v1821_v21  ;;  %3892 = vmatmul.mubr.msk.f32.gmra.mrb[48].mxu0 %vm1948_vm11, %v1779_v51  ;;  %v2515_v61 = vld [vmem:[%s6963_s1 + $0x4e0] sm:$0xff]  ;;  %v2516_v51 = vld [vmem:[%s6963_s1 + $0x4e8] sm:$0x3] }
 0x361   :  { %3894 = vmatprep.mubr.msk.f32.mxu0 %vm4617_vm8, %v4610_v1  ;;  %4236 = vmatpush3.bf16.msra.mxu0 %v4235_v40 }
 0x362   :  { %v1761_v31 = vpop.permute.xlu0 %1760  ;;  %v6349_v29 = vpop.permute.xlu1 %1609  ;;  %4237 = vmatprep.subr.bf16.mxu0 %v4615_v28 }
 0x363   :  { %v1780_v49 = vsel %vm995_vm7, %v6311_v3, %v1761_v31  ;;  %2230 = vmatmul.mubr.f32.gmra.mrb[68].mxu1 %v1513_v38  ;;  %v1624_v41 = vsel %vm1611_vm10, %v4578_v43, %v6349_v29  ;;  %v4238_v3 = vpack.c.bf16 %v2511_v16, %v2510_v52  ;;  %v2512_v43 = vld [vmem:[%s6963_s1 + $0x4c8] sm:$0xff] }
 0x364   :  { %2299 = vmatprep.mubr.f32.mxu1 %v1822_v58  ;;  %3895 = vmatmul.mubr.msk.f32.gmra.mrb[50].mxu0 %vm1948_vm11, %v1780_v49  ;;  %v4241_v63 = vpack.c.bf16 %v2513_v25, %v2512_v43 }
 0x365   :  { %3897 = vmatprep.mubr.msk.f32.mxu0 %vm4617_vm8, %v4610_v1  ;;  %4239 = vmatpush3.bf16.msra.mxu0 %v4238_v3 }
 0x366   :  { %v1765_v6 = vpop.permute.xlu0 %1764  ;;  %v1767_v57 = vpop.permute.xlu1 %1766  ;;  %4240 = vmatprep.subr.bf16.mxu0 %v4615_v28 }
 0x367   :  { %v1781_v22 = vsel %vm995_vm7, %v6326_v8, %v1765_v6  ;;  %2300 = vmatmul.mubr.f32.vlgmr.msra.gmra.mrb[70].mxu1 %v1612_v17  ;;  %v1834_v60 = vsel %vm995_vm7, %v6349_v29, %v1767_v57  ;;  %v2514_v8 = vld [vmem:[%s6963_s1 + $0x4d8] sm:$0xff] }
 0x368   :  { %2304 = vmatprep.mubr.f32.mxu1 %v1823_v54  ;;  %3898 = vmatmul.mubr.msk.f32.gmra.mrb[52].mxu0 %vm1948_vm11, %v1781_v22  ;;  %v4244_v37 = vpack.c.bf16 %v2515_v61, %v2514_v8 }
 0x369   :  { %3900 = vmatprep.mubr.msk.f32.mxu0 %vm4617_vm8, %v4610_v1  ;;  %4338 = vmatpush3.bf16.msra.mxu1 %v4235_v40 }
 0x36a   :  { %v1769_v5 = vpop.permute.xlu0 %1768  ;;  %4334 = vmatprep.subr.bf16.mxu1 %v4615_v28  ;;  %4242 = vmatpush3.bf16.msra.mxu0 %v4241_v63 }
 0x36b   :  { %v1782_v23 = vsel %vm995_vm7, %v1767_v57, %v1769_v5  ;;  %2305 = vmatmul.mubr.f32.gmra.mrb[72].mxu1 %v1613_v19  ;;  %4243 = vmatprep.subr.bf16.mxu0 %v4615_v28 }
 0x36c   :  { %2309 = vmatprep.mubr.f32.mxu1 %v1824_v39  ;;  %3901 = vmatmul.mubr.msk.f32.gmra.mrb[54].mxu0 %vm1948_vm11, %v1782_v23 }
 0x36d   :  { %3921 = vmatprep.mubr.msk.f32.mxu0 %vm4617_vm8, %v4610_v1  ;;  %4339 = vmatpush3.bf16.msra.mxu1 %v4238_v3 }
 0x36e   :  { %4335 = vmatprep.subr.bf16.mxu1 %v4615_v28  ;;  %4245 = vmatpush3.bf16.msra.mxu0 %v4244_v37 }
 0x36f   :  { %2310 = vmatmul.mubr.f32.gmra.mrb[74].mxu1 %v1614_v55  ;;  %3919 = vmatprep.subr.mxu0 %v4610_v1 }
 0x370   :  { %2314 = vmatprep.mubr.f32.mxu1 %v1825_v35 }
 0x371   :  { %4340 = vmatpush3.bf16.msra.mxu1 %v4241_v63 }
 0x372   :  { %4336 = vmatprep.subr.bf16.mxu1 %v4615_v28  ;;  %3920 = vmatpush3.msk.msra.mxu0 %vm2561_vm12, %v2516_v51 }
 0x373   :  { %2315 = vmatmul.mubr.f32.gmra.mrb[76].mxu1 %v1615_v14  ;;  %3960 = vmatprep.subr.mxu0 %v4610_v1 }
 0x374   :  { %2319 = vmatprep.mubr.f32.mxu1 %v1826_v34 }
 0x375   :  { %4341 = vmatpush3.bf16.msra.mxu1 %v4244_v37 }
 0x376   :  { %4337 = vmatprep.subr.mxu1 %v4610_v1 }
 0x377   :  { %2320 = vmatmul.mubr.f32.gmra.mrb[78].mxu1 %v1616_v26 }
 0x378   :  { %2324 = vmatprep.mubr.f32.mxu1 %v1827_v46 }
 0x379   :  { %4342 = vmatpush3.msk.msra.mxu1 %vm2561_vm12, %v2516_v51 }
 0x37a   :  { %4246 = vmatprep.subr.bf16.mxu1 %v4615_v28 }
 0x37b   :  { %2325 = vmatmul.mubr.f32.gmra.mrb[80].mxu1 %v1617_v56 }
 0x37c   :  { %2329 = vmatprep.mubr.f32.mxu1 %v1828_v33 }
 0x37f   :  { %2330 = vmatmul.mubr.f32.gmra.mrb[82].mxu1 %v1618_v48 }
 0x380   :  { %2334 = vmatprep.mubr.f32.mxu1 %v1829_v12 }
 0x383   :  { %2335 = vmatmul.mubr.f32.gmra.mrb[84].mxu1 %v1619_v0 }
 0x384   :  { %2339 = vmatprep.mubr.f32.mxu1 %v1830_v11 }
 0x387   :  { %2340 = vmatmul.mubr.f32.gmra.mrb[86].mxu1 %v1620_v18 }
 0x388   :  { %2344 = vmatprep.mubr.f32.mxu1 %v1831_v45 }
 0x38b   :  { %2345 = vmatmul.mubr.f32.gmra.mrb[88].mxu1 %v1621_v50 }
 0x38c   :  { %2349 = vmatprep.mubr.f32.mxu1 %v1832_v36  ;;  %v6497_v36 = vld [vmem:[%s6963_s1 + $0x551] ss:$0 sm:$0xff] }
 0x38f   :  { %2350 = vmatmul.mubr.f32.gmra.mrb[90].mxu1 %v1622_v44 }
 0x390   :  { %2354 = vmatprep.mubr.f32.mxu1 %v1833_v42 }
 0x393   :  { %2355 = vmatmul.mubr.f32.gmra.mrb[92].mxu1 %v1623_v30 }
 0x394   :  { %2359 = vmatprep.mubr.f32.mxu1 %v1834_v60 }
 0x397   :  { %2360 = vmatmul.mubr.f32.gmra.mrb[94].mxu1 %v1624_v41 }
 0x398   :  { %3933 = vmatprep.mubr.msk.f32.mxu1 %vm4617_vm8, %v4610_v1 }
 0x3ca   :  { %v3572_v21 = vpop.f32.mrb[18].mxu1 }
 0x3cb   :  { %v3573_v13 = vpop.f32.mrb[19].mxu1 }
 0x3cc   :  { %v3574_v31 = vadd.f32 %v3573_v13, %v3572_v21 }
 0x3ce   :  { %v3575_v38 = vpop.f32.mrb[20].mxu1  ;;  %v2042_v60 = vadd.f32 %v3574_v31, %v6497_v36 }
 0x3cf   :  { %v3576_v49 = vpop.f32.mrb[21].mxu1 }
 0x3d0   :  { %v3577_v58 = vadd.f32 %v3576_v49, %v3575_v38 }
 0x3d2   :  { %v2047_v3 = vadd.f32 %v3577_v58, %v6497_v36 }
 0x3da   :  { %v3578_v29 = vpop.f32.mrb[22].mxu1 }
 0x3db   :  { %v3579_v47 = vpop.f32.mrb[23].mxu1 }
 0x3dc   :  { %v3580_v6 = vadd.f32 %v3579_v47, %v3578_v29 }
 0x3de   :  { %v3581_v17 = vpop.f32.mrb[24].mxu1  ;;  %v2052_v37 = vadd.f32 %v3580_v6, %v6497_v36 }
 0x3df   :  { %v3582_v22 = vpop.f32.mrb[25].mxu1 }
 0x3e0   :  { %v3583_v54 = vadd.f32 %v3582_v22, %v3581_v17 }
 0x3e2   :  { %v3584_v10 = vpop.f32.mrb[26].mxu1  ;;  %v2057_v38 = vadd.f32 %v3583_v54, %v6497_v36 }
 0x3e3   :  { %v3585_v57 = vpop.f32.mrb[27].mxu1 }
 0x3e4   :  { %v3586_v5 = vadd.f32 %v3585_v57, %v3584_v10 }
 0x3e6   :  { %v3587_v19 = vpop.f32.mrb[28].mxu1  ;;  %v2062_v17 = vadd.f32 %v3586_v5, %v6497_v36 }
 0x3e7   :  { %v3588_v2 = vpop.f32.mrb[29].mxu1 }
 0x3e8   :  { %v3589_v23 = vadd.f32 %v3588_v2, %v3587_v19 }
 0x3ea   :  { %v3590_v39 = vpop.f32.mrb[30].mxu1  ;;  %v2067_v2 = vadd.f32 %v3589_v23, %v6497_v36 }
 0x3eb   :  { %v3591_v55 = vpop.f32.mrb[31].mxu1 }
 0x3ec   :  { %v3592_v7 = vadd.f32 %v3591_v55, %v3590_v39 }
 0x3ee   :  { %v3593_v35 = vpop.f32.mrb[32].mxu1 }
 0x3ef   :  { %v3594_v14 = vpop.f32.mrb[33].mxu1 }
 0x3f0   :  { %v6480_v9 = vadd.f32 %v3594_v14, %v3593_v35 }
 0x3f2   :  { %v3596_v34 = vpop.f32.mrb[34].mxu1  ;;  %v2077_v23 = vadd.f32 %v6480_v9, %v6497_v36 }
 0x3f3   :  { %v3597_v26 = vpop.f32.mrb[35].mxu1 }
 0x3f4   :  { %v6482_v46 = vadd.f32 %v3597_v26, %v3596_v34  ;;  %v2072_v26 = vadd.f32 %v3592_v7, %v6497_v36 }
 0x3f6   :  { %v3599_v59 = vpop.f32.mrb[36].mxu1  ;;  %v2082_v7 = vadd.f32 %v6482_v46, %v6497_v36 }
 0x3f7   :  { %v3600_v56 = vpop.f32.mrb[37].mxu1 }
 0x3f8   :  { %v6484_v27 = vadd.f32 %v3600_v56, %v3599_v59 }
 0x3fa   :  { %v3602_v33 = vpop.f32.mrb[38].mxu1  ;;  %v2087_v9 = vadd.f32 %v6484_v27, %v6497_v36 }
 0x3fb   :  { %v3603_v48 = vpop.f32.mrb[39].mxu1 }
 0x3fc   :  { %v6486_v12 = vadd.f32 %v3603_v48, %v3602_v33 }
 0x3fe   :  { %v3605_v32 = vpop.f32.mrb[40].mxu1  ;;  %v2092_v46 = vadd.f32 %v6486_v12, %v6497_v36 }
 0x3ff   :  { %v3606_v0 = vpop.f32.mrb[41].mxu1 }
 0x400   :  { %v6488_v11 = vadd.f32 %v3606_v0, %v3605_v32 }
 0x402   :  { %v3608_v53 = vpop.f32.mrb[42].mxu1  ;;  %v2097_v27 = vadd.f32 %v6488_v11, %v6497_v36 }
 0x403   :  { %v3609_v18 = vpop.f32.mrb[43].mxu1  ;;  %v6490_v45 = vpop.f32.mrb[30].mxu0 }
 0x404   :  { %v6492_v62 = vadd.f32 %v3609_v18, %v3608_v53  ;;  %v3866_v50 = vpop.f32.mrb[31].mxu0 }
 0x406   :  { %v3643_v44 = vpop.f32.mrb[44].mxu1  ;;  %v2102_v12 = vadd.f32 %v6492_v62, %v6497_v36 }
 0x407   :  { %v3644_v42 = vpop.f32.mrb[45].mxu1  ;;  %v6499_v30 = vpop.f32.mrb[32].mxu0 }
 0x408   :  { %v3645_v41 = vadd.f32 %v3644_v42, %v3643_v44  ;;  %v3869_v20 = vpop.f32.mrb[33].mxu0 }
 0x40a   :  { %v6502_v24 = vadd.f32 %v3645_v41, %v2042_v60  ;;  %v3646_v40 = vpop.f32.mrb[46].mxu1 }
 0x40b   :  { %v3647_v52 = vpop.f32.mrb[47].mxu1  ;;  %v6504_v16 = vpop.f32.mrb[34].mxu0 }
 0x40c   :  { %v3648_v43 = vadd.f32 %v3647_v52, %v3646_v40  ;;  %v3872_v25 = vpop.f32.mrb[35].mxu0 }
 0x40e   :  { %v6507_v63 = vadd.f32 %v3648_v43, %v2047_v3  ;;  %v3649_v8 = vpop.f32.mrb[48].mxu1 }
 0x40f   :  { %v3650_v61 = vpop.f32.mrb[49].mxu1 }
 0x410   :  { %v3651_v51 = vadd.f32 %v3650_v61, %v3649_v8 }
 0x412   :  { %v6510_v21 = vadd.f32 %v3651_v51, %v2052_v37  ;;  %v3652_v13 = vpop.f32.mrb[50].mxu1 }
 0x413   :  { %v3653_v31 = vpop.f32.mrb[51].mxu1 }
 0x414   :  { %v3654_v49 = vadd.f32 %v3653_v31, %v3652_v13 }
 0x416   :  { %v6513_v29 = vadd.f32 %v3654_v49, %v2057_v38  ;;  %v3655_v47 = vpop.f32.mrb[52].mxu1 }
 0x417   :  { %v3656_v58 = vpop.f32.mrb[53].mxu1 }
 0x418   :  { %v3657_v22 = vadd.f32 %v3656_v58, %v3655_v47 }
 0x41a   :  { %v6516_v10 = vadd.f32 %v3657_v22, %v2062_v17  ;;  %v3658_v57 = vpop.f32.mrb[54].mxu1 }
 0x41b   :  { %v3659_v19 = vpop.f32.mrb[55].mxu1  ;;  %v6518_v6 = vpop.f32.mrb[36].mxu0 }
 0x41c   :  { %v3660_v39 = vadd.f32 %v3659_v19, %v3658_v57  ;;  %v3875_v55 = vpop.f32.mrb[37].mxu0 }
 0x41e   :  { %v6521_v35 = vadd.f32 %v3660_v39, %v2067_v2  ;;  %v3661_v54 = vpop.f32.mrb[56].mxu1 }
 0x41f   :  { %v3662_v14 = vpop.f32.mrb[57].mxu1  ;;  %v6523_v34 = vpop.f32.mrb[38].mxu0 }
 0x420   :  { %v3663_v5 = vadd.f32 %v3662_v14, %v3661_v54  ;;  %v3878_v59 = vpop.f32.mrb[39].mxu0 }
 0x422   :  { %v6526_v56 = vadd.f32 %v3663_v5, %v2072_v26  ;;  %v3664_v33 = vpop.f32.mrb[58].mxu1 }
 0x423   :  { %v3665_v48 = vpop.f32.mrb[59].mxu1  ;;  %v6528_v32 = vpop.f32.mrb[40].mxu0 }
 0x424   :  { %v3666_v0 = vadd.f32 %v3665_v48, %v3664_v33  ;;  %v3881_v53 = vpop.f32.mrb[41].mxu0 }
 0x426   :  { %v6532_v18 = vadd.f32 %v3666_v0, %v2077_v23  ;;  %v3667_v50 = vpop.f32.mrb[60].mxu1 }
 0x427   :  { %v3668_v44 = vpop.f32.mrb[61].mxu1  ;;  %v6534_v42 = vpop.f32.mrb[42].mxu0 }
 0x428   :  { %v3669_v60 = vadd.f32 %v3668_v44, %v3667_v50  ;;  %v3884_v41 = vpop.f32.mrb[43].mxu0 }
 0x429   :  { %v2708_v41 = vld [vmem:[%s6963_s1 + $0x538] sm:$0x3f] }
 0x42a   :  { %v6538_v20 = vadd.f32 %v3669_v60, %v2082_v7  ;;  %v3670_v40 = vpop.f32.mrb[62].mxu1 }
 0x42b   :  { %v3671_v52 = vpop.f32.mrb[63].mxu1  ;;  %v6540_v3 = vpop.f32.mrb[44].mxu0 }
 0x42c   :  { %v3672_v43 = vadd.f32 %v3671_v52, %v3670_v40  ;;  %v3887_v25 = vpop.f32.mrb[45].mxu0 }
 0x42e   :  { %v6544_v8 = vadd.f32 %v3672_v43, %v2087_v9  ;;  %v3673_v61 = vpop.f32.mrb[64].mxu1 }
 0x42f   :  { %v3674_v37 = vpop.f32.mrb[65].mxu1  ;;  %v6546_v51 = vpop.f32.mrb[46].mxu0 }
 0x430   :  { %v3675_v13 = vadd.f32 %v3674_v37, %v3673_v61  ;;  %v3890_v31 = vpop.f32.mrb[47].mxu0 }
 0x432   :  { %v6550_v38 = vadd.f32 %v3675_v13, %v2092_v46  ;;  %v3676_v49 = vpop.f32.mrb[66].mxu1 }
 0x433   :  { %v3677_v47 = vpop.f32.mrb[67].mxu1  ;;  %v6552_v58 = vpop.f32.mrb[48].mxu0 }
 0x434   :  { %v3678_v17 = vadd.f32 %v3677_v47, %v3676_v49  ;;  %v3893_v22 = vpop.f32.mrb[49].mxu0 }
 0x436   :  { %v6556_v57 = vadd.f32 %v3678_v17, %v2097_v27  ;;  %v3679_v19 = vpop.f32.mrb[68].mxu1 }
 0x437   :  { %v3680_v2 = vpop.f32.mrb[69].mxu1  ;;  %v6558_v39 = vpop.f32.mrb[50].mxu0 }
 0x438   :  { %v3681_v55 = vadd.f32 %v3680_v2, %v3679_v19  ;;  %v3896_v54 = vpop.f32.mrb[51].mxu0 }
 0x43a   :  { %v6562_v14 = vadd.f32 %v3681_v55, %v2102_v12  ;;  %v3714_v26 = vpop.f32.mrb[70].mxu1 }
 0x43b   :  { %v3715_v5 = vpop.f32.mrb[71].mxu1  ;;  %v6564_v59 = vpop.f32.mrb[52].mxu0 }
 0x43c   :  { %v3716_v11 = vadd.f32 %v3715_v5, %v3714_v26  ;;  %v3899_v33 = vpop.f32.mrb[53].mxu0 }
 0x43e   :  { %v2302_v48 = vadd.f32 %v3716_v11, %v6502_v24  ;;  %v3717_v23 = vpop.f32.mrb[72].mxu1 }
 0x43f   :  { %v3718_v0 = vpop.f32.mrb[73].mxu1  ;;  %v6567_v53 = vpop.f32.mrb[54].mxu0 }
 0x440   :  { %v2432_v50 = vadd.f32 %v6490_v45, %v2302_v48  ;;  %v3719_v44 = vadd.f32 %v3718_v0, %v3717_v23  ;;  %v3902_v62 = vpop.f32.mrb[55].mxu0 }
 0x442   :  { %v2495_v36 = vmax.f32 %v2432_v50, 0.0  ;;  %v2307_v7 = vadd.f32 %v3719_v44, %v6507_v63  ;;  %v3720_v60 = vpop.f32.mrb[74].mxu1 }
 0x443   :  { %v3721_v40 = vpop.f32.mrb[75].mxu1 }
 0x444   :  { %v2437_v52 = vadd.f32 %v6499_v30, %v2307_v7  ;;  %v3722_v24 = vadd.f32 %v3721_v40, %v3720_v60  ;;  %3922 = vmatmul.mubr.msk.f32.vlgmr.msra.gmra.mrb[56].mxu0 %vm868_vm6, %v2495_v36 }
 0x445   :  { %3924 = vmatprep.mubr.msk.f32.mxu0 %vm4617_vm8, %v4610_v1  ;;  %3961 = vmatpush3.msk.msra.mxu0 %vm791_vm3, %v2708_v41 }
 0x446   :  { %v2496_v45 = vmax.f32 %v2437_v52, 0.0  ;;  %v2312_v9 = vadd.f32 %v3722_v24, %v6510_v21  ;;  %v3723_v63 = vpop.f32.mrb[76].mxu1  ;;  %4280 = vmatprep.subr.bf16.mxu0 %v4615_v28 }
 0x447   :  { %v3724_v43 = vpop.f32.mrb[77].mxu1 }
 0x448   :  { %v2442_v25 = vadd.f32 %v6504_v16, %v2312_v9  ;;  %v3725_v61 = vadd.f32 %v3724_v43, %v3723_v63  ;;  %3925 = vmatmul.mubr.msk.f32.gmra.mrb[58].mxu0 %vm868_vm6, %v2496_v45 }
 0x449   :  { %3927 = vmatprep.mubr.msk.f32.mxu0 %vm4617_vm8, %v4610_v1 }
 0x44a   :  { %v2497_v30 = vmax.f32 %v2442_v25, 0.0  ;;  %v2317_v37 = vadd.f32 %v3725_v61, %v6513_v29  ;;  %v3726_v46 = vpop.f32.mrb[78].mxu1 }
 0x44b   :  { %v3727_v13 = vpop.f32.mrb[79].mxu1 }
 0x44c   :  { %v2447_v31 = vadd.f32 %v6518_v6, %v2317_v37  ;;  %v3728_v21 = vadd.f32 %v3727_v13, %v3726_v46  ;;  %3928 = vmatmul.mubr.msk.f32.gmra.mrb[60].mxu0 %vm868_vm6, %v2497_v30 }
 0x44d   :  { %3930 = vmatprep.mubr.msk.f32.mxu0 %vm4617_vm8, %v4610_v1 }
 0x44e   :  { %v2498_v16 = vmax.f32 %v2447_v31, 0.0  ;;  %v2322_v49 = vadd.f32 %v3728_v21, %v6516_v10  ;;  %v3729_v47 = vpop.f32.mrb[80].mxu1 }
 0x44f   :  { %v3730_v27 = vpop.f32.mrb[81].mxu1 }
 0x450   :  { %v2452_v17 = vadd.f32 %v6523_v34, %v2322_v49  ;;  %v3731_v22 = vadd.f32 %v3730_v27, %v3729_v47  ;;  %3931 = vmatmul.mubr.msk.f32.gmra.mrb[62].mxu0 %vm868_vm6, %v2498_v16 }
 0x451   :  { %3962 = vmatprep.mubr.msk.f32.mxu0 %vm4617_vm8, %v4610_v1 }
 0x452   :  { %v2499_v29 = vmax.f32 %v2452_v17, 0.0  ;;  %v2327_v6 = vadd.f32 %v3731_v22, %v6521_v35  ;;  %v3732_v19 = vpop.f32.mrb[82].mxu1 }
 0x453   :  { %v3733_v2 = vpop.f32.mrb[83].mxu1 }
 0x454   :  { %v2457_v12 = vadd.f32 %v6528_v32, %v2327_v6  ;;  %v3734_v55 = vadd.f32 %v3733_v2, %v3732_v19  ;;  %3934 = vmatmul.mubr.msk.f32.vlgmr.msra.gmra.mrb[96].mxu1 %vm868_vm6, %v2499_v29 }
 0x455   :  { %3936 = vmatprep.mubr.msk.f32.mxu1 %vm4617_vm8, %v4610_v1 }
 0x456   :  { %v2500_v10 = vmax.f32 %v2457_v12, 0.0  ;;  %v2332_v34 = vadd.f32 %v3734_v55, %v6526_v56  ;;  %v3735_v54 = vpop.f32.mrb[84].mxu1 }
 0x457   :  { %v3736_v26 = vpop.f32.mrb[85].mxu1 }
 0x458   :  { %v2462_v5 = vadd.f32 %v6534_v42, %v2332_v34  ;;  %v3737_v11 = vadd.f32 %v3736_v26, %v3735_v54  ;;  %3937 = vmatmul.mubr.msk.f32.gmra.mrb[98].mxu1 %vm868_vm6, %v2500_v10 }
 0x459   :  { %3939 = vmatprep.mubr.msk.f32.mxu1 %vm4617_vm8, %v4610_v1 }
 0x45a   :  { %v2501_v35 = vmax.f32 %v2462_v5, 0.0  ;;  %v2337_v32 = vadd.f32 %v3737_v11, %v6532_v18  ;;  %v3738_v33 = vpop.f32.mrb[86].mxu1 }
 0x45b   :  { %v3739_v48 = vpop.f32.mrb[87].mxu1 }
 0x45c   :  { %v2467_v23 = vadd.f32 %v6540_v3, %v2337_v32  ;;  %v3740_v0 = vadd.f32 %v3739_v48, %v3738_v33  ;;  %3940 = vmatmul.mubr.msk.f32.gmra.mrb[100].mxu1 %vm868_vm6, %v2501_v35 }
 0x45d   :  { %3942 = vmatprep.mubr.msk.f32.mxu1 %vm4617_vm8, %v4610_v1 }
 0x45e   :  { %v2502_v56 = vmax.f32 %v2467_v23, 0.0  ;;  %v2342_v42 = vadd.f32 %v3740_v0, %v6538_v20  ;;  %v3741_v50 = vpop.f32.mrb[88].mxu1 }
 0x45f   :  { %v3742_v44 = vpop.f32.mrb[89].mxu1 }
 0x460   :  { %v2472_v62 = vadd.f32 %v6546_v51, %v2342_v42  ;;  %v3743_v36 = vadd.f32 %v3742_v44, %v3741_v50  ;;  %3943 = vmatmul.mubr.msk.f32.gmra.mrb[102].mxu1 %vm868_vm6, %v2502_v56 }
 0x461   :  { %3945 = vmatprep.mubr.msk.f32.mxu1 %vm4617_vm8, %v4610_v1 }
 0x462   :  { %v2503_v18 = vmax.f32 %v2472_v62, 0.0  ;;  %v2347_v3 = vadd.f32 %v3743_v36, %v6544_v8  ;;  %v3744_v7 = vpop.f32.mrb[90].mxu1 }
 0x463   :  { %v3745_v60 = vpop.f32.mrb[91].mxu1 }
 0x464   :  { %v2477_v41 = vadd.f32 %v6552_v58, %v2347_v3  ;;  %v3746_v40 = vadd.f32 %v3745_v60, %v3744_v7  ;;  %3946 = vmatmul.mubr.msk.f32.gmra.mrb[104].mxu1 %vm868_vm6, %v2503_v18 }
 0x465   :  { %3948 = vmatprep.mubr.msk.f32.mxu1 %vm4617_vm8, %v4610_v1 }
 0x466   :  { %v2504_v20 = vmax.f32 %v2477_v41, 0.0  ;;  %v2352_v51 = vadd.f32 %v3746_v40, %v6550_v38  ;;  %v3747_v52 = vpop.f32.mrb[92].mxu1 }
 0x467   :  { %v3748_v24 = vpop.f32.mrb[93].mxu1 }
 0x468   :  { %v2482_v45 = vadd.f32 %v6558_v39, %v2352_v51  ;;  %v3749_v9 = vadd.f32 %v3748_v24, %v3747_v52  ;;  %3949 = vmatmul.mubr.msk.f32.gmra.mrb[106].mxu1 %vm868_vm6, %v2504_v20 }
 0x469   :  { %3951 = vmatprep.mubr.msk.f32.mxu1 %vm4617_vm8, %v4610_v1 }
 0x46a   :  { %v2505_v8 = vmax.f32 %v2482_v45, 0.0  ;;  %v2357_v58 = vadd.f32 %v3749_v9, %v6556_v57  ;;  %v3750_v63 = vpop.f32.mrb[94].mxu1 }
 0x46b   :  { %v3751_v43 = vpop.f32.mrb[95].mxu1 }
 0x46c   :  { %v2487_v25 = vadd.f32 %v6564_v59, %v2357_v58  ;;  %v3752_v61 = vadd.f32 %v3751_v43, %v3750_v63  ;;  %3952 = vmatmul.mubr.msk.f32.gmra.mrb[108].mxu1 %vm868_vm6, %v2505_v8  ;;  %v6641_v59 = vld [vmem:[%s6963_s1 + $0x552] ss:$0 sm:$0xff]  ;;  %v3510_v43 = vld [vmem:[%s6963_s1 + $0x553] ss:$0 sm:$0xff] }
 0x46d   :  { %3954 = vmatprep.mubr.msk.f32.mxu1 %vm4617_vm8, %v4610_v1 }
 0x46e   :  { %v2506_v38 = vmax.f32 %v2487_v25, 0.0  ;;  %v2362_v39 = vadd.f32 %v3752_v61, %v6562_v14 }
 0x470   :  { %v2492_v30 = vadd.f32 %v6567_v53, %v2362_v39  ;;  %3955 = vmatmul.mubr.msk.f32.gmra.mrb[110].mxu1 %vm868_vm6, %v2506_v38 }
 0x471   :  { %3957 = vmatprep.mubr.msk.f32.mxu1 %vm4617_vm8, %v4610_v1 }
 0x472   :  { %v2507_v57 = vmax.f32 %v2492_v30, 0.0 }
 0x474   :  { %3958 = vmatmul.mubr.msk.f32.gmra.mrb[112].mxu1 %vm868_vm6, %v2507_v57 }
 0x475   :  { %4027 = vmatprep.mubr.msk.f32.mxu1 %vm4617_vm8, %v4610_v1 }
 0x517   :  { %v2631_v37 = vpop.f32.mrb[56].mxu0 }
 0x518   :  { %v2632_v14 = vadd.f32 %v6641_v59, %v2631_v37  ;;  %v3923_v53 = vpop.f32.mrb[57].mxu0 }
 0x51a   :  { %v2695_v46 = vmax.f32 %v2632_v14, 0.0 }
 0x51b   :  { %v2636_v13 = vpop.f32.mrb[58].mxu0 }
 0x51c   :  { %v2637_v31 = vadd.f32 %v6641_v59, %v2636_v13  ;;  %v3926_v21 = vpop.f32.mrb[59].mxu0  ;;  %3963 = vmatmul.mubr.msk.f32.vlgmr.msra.gmra.mrb[64].mxu0 %vm2714_vm13, %v2695_v46 }
 0x51d   :  { %3965 = vmatprep.mubr.msk.f32.mxu0 %vm4617_vm8, %v4610_v1 }
 0x51e   :  { %v2696_v16 = vmax.f32 %v2637_v31, 0.0 }
 0x51f   :  { %v2641_v49 = vpop.f32.mrb[60].mxu0 }
 0x520   :  { %v2642_v47 = vadd.f32 %v6641_v59, %v2641_v49  ;;  %v3929_v27 = vpop.f32.mrb[61].mxu0  ;;  %3966 = vmatmul.mubr.msk.f32.gmra.mrb[66].mxu0 %vm2714_vm13, %v2696_v16 }
 0x521   :  { %3968 = vmatprep.mubr.msk.f32.mxu0 %vm4617_vm8, %v4610_v1 }
 0x522   :  { %v2697_v17 = vmax.f32 %v2642_v47, 0.0 }
 0x523   :  { %v2646_v22 = vpop.f32.mrb[62].mxu0 }
 0x524   :  { %v2647_v29 = vadd.f32 %v6641_v59, %v2646_v22  ;;  %v3932_v6 = vpop.f32.mrb[63].mxu0  ;;  %3969 = vmatmul.mubr.msk.f32.gmra.mrb[68].mxu0 %vm2714_vm13, %v2697_v17 }
 0x525   :  { %3971 = vmatprep.mubr.msk.f32.mxu0 %vm4617_vm8, %v4610_v1 }
 0x526   :  { %v2698_v19 = vmax.f32 %v2647_v29, 0.0 }
 0x527   :  { %v2651_v2 = vpop.f32.mrb[96].mxu1 }
 0x528   :  { %v2652_v12 = vadd.f32 %v6641_v59, %v2651_v2  ;;  %v3935_v55 = vpop.f32.mrb[97].mxu1  ;;  %3972 = vmatmul.mubr.msk.f32.gmra.mrb[70].mxu0 %vm2714_vm13, %v2698_v19 }
 0x529   :  { %3974 = vmatprep.mubr.msk.f32.mxu0 %vm4617_vm8, %v4610_v1 }
 0x52a   :  { %v2699_v10 = vmax.f32 %v2652_v12, 0.0 }
 0x52b   :  { %v2656_v34 = vpop.f32.mrb[98].mxu1 }
 0x52c   :  { %v2657_v54 = vadd.f32 %v6641_v59, %v2656_v34  ;;  %v3938_v26 = vpop.f32.mrb[99].mxu1  ;;  %3975 = vmatmul.mubr.msk.f32.gmra.mrb[72].mxu0 %vm2714_vm13, %v2699_v10 }
 0x52d   :  { %3977 = vmatprep.mubr.msk.f32.mxu0 %vm4617_vm8, %v4610_v1 }
 0x52e   :  { %v2700_v5 = vmax.f32 %v2657_v54, 0.0 }
 0x52f   :  { %v2661_v11 = vpop.f32.mrb[100].mxu1 }
 0x530   :  { %v2662_v35 = vadd.f32 %v6641_v59, %v2661_v11  ;;  %v3941_v32 = vpop.f32.mrb[101].mxu1  ;;  %3978 = vmatmul.mubr.msk.f32.gmra.mrb[74].mxu0 %vm2714_vm13, %v2700_v5 }
 0x531   :  { %3980 = vmatprep.mubr.msk.f32.mxu0 %vm4617_vm8, %v4610_v1 }
 0x532   :  { %v2701_v33 = vmax.f32 %v2662_v35, 0.0 }
 0x533   :  { %v2666_v48 = vpop.f32.mrb[102].mxu1 }
 0x534   :  { %v2667_v23 = vadd.f32 %v6641_v59, %v2666_v48  ;;  %v3944_v0 = vpop.f32.mrb[103].mxu1  ;;  %3981 = vmatmul.mubr.msk.f32.gmra.mrb[76].mxu0 %vm2714_vm13, %v2701_v33 }
 0x535   :  { %3983 = vmatprep.mubr.msk.f32.mxu0 %vm4617_vm8, %v4610_v1 }
 0x536   :  { %v2702_v56 = vmax.f32 %v2667_v23, 0.0 }
 0x537   :  { %v2671_v42 = vpop.f32.mrb[104].mxu1 }
 0x538   :  { %v2672_v50 = vadd.f32 %v6641_v59, %v2671_v42  ;;  %v3947_v44 = vpop.f32.mrb[105].mxu1  ;;  %3984 = vmatmul.mubr.msk.f32.gmra.mrb[78].mxu0 %vm2714_vm13, %v2702_v56  ;;  %v2888_v42 = vld [vmem:[%s6963_s1 + $0x368] sm:$0xff] }
 0x539   :  { %3986 = vmatprep.mubr.msk.f32.mxu0 %vm4617_vm8, %v4610_v1  ;;  %v2889_v44 = vld [vmem:[%s6963_s1 + $0x370] sm:$0xff] }
 0x53a   :  { %v2703_v62 = vmax.f32 %v2672_v50, 0.0 }
 0x53b   :  { %v2676_v36 = vpop.f32.mrb[106].mxu1 }
 0x53c   :  { %v2677_v18 = vadd.f32 %v6641_v59, %v2676_v36  ;;  %v3950_v3 = vpop.f32.mrb[107].mxu1  ;;  %3987 = vmatmul.mubr.msk.f32.gmra.mrb[80].mxu0 %vm2714_vm13, %v2703_v62 }
 0x53d   :  { %3989 = vmatprep.mubr.msk.f32.mxu0 %vm4617_vm8, %v4610_v1 }
 0x53e   :  { %v2704_v7 = vmax.f32 %v2677_v18, 0.0 }
 0x53f   :  { %v2681_v60 = vpop.f32.mrb[108].mxu1 }
 0x540   :  { %v2682_v41 = vadd.f32 %v6641_v59, %v2681_v60  ;;  %v3953_v40 = vpop.f32.mrb[109].mxu1  ;;  %3990 = vmatmul.mubr.msk.f32.gmra.mrb[82].mxu0 %vm2714_vm13, %v2704_v7  ;;  %v2890_v7 = vld [vmem:[%s6963_s1 + $0x378] sm:$0xff] }
 0x541   :  { %3992 = vmatprep.mubr.msk.f32.mxu0 %vm4617_vm8, %v4610_v1 }
 0x542   :  { %v2705_v20 = vmax.f32 %v2682_v41, 0.0  ;;  %v2891_v41 = vld [vmem:[%s6963_s1 + $0x380] sm:$0xff] }
 0x543   :  { %v2686_v51 = vpop.f32.mrb[110].mxu1 }
 0x544   :  { %v2687_v52 = vadd.f32 %v6641_v59, %v2686_v51  ;;  %v3956_v24 = vpop.f32.mrb[111].mxu1  ;;  %3993 = vmatmul.mubr.msk.f32.gmra.mrb[84].mxu0 %vm2714_vm13, %v2705_v20 }
 0x545   :  { %3995 = vmatprep.mubr.msk.f32.mxu0 %vm4617_vm8, %v4610_v1  ;;  %v2892_v24 = vld [vmem:[%s6963_s1 + $0x388] sm:$0xff] }
 0x546   :  { %v2706_v45 = vmax.f32 %v2687_v52, 0.0 }
 0x547   :  { %v2691_v9 = vpop.f32.mrb[112].mxu1 }
 0x548   :  { %v2692_v8 = vadd.f32 %v6641_v59, %v2691_v9  ;;  %v3959_v58 = vpop.f32.mrb[113].mxu1  ;;  %3996 = vmatmul.mubr.msk.f32.gmra.mrb[86].mxu0 %vm2714_vm13, %v2706_v45  ;;  %v2893_v9 = vld [vmem:[%s6963_s1 + $0x390] sm:$0xff] }
 0x549   :  { %3998 = vmatprep.mubr.msk.f32.mxu0 %vm4617_vm8, %v4610_v1 }
 0x54a   :  { %v2707_v63 = vmax.f32 %v2692_v8, 0.0 }
 0x54c   :  { %3999 = vmatmul.mubr.msk.f32.gmra.mrb[88].mxu0 %vm2714_vm13, %v2707_v63 }
 0x5ef   :  { %v2823_v25 = vpop.f32.mrb[64].mxu0 }
 0x5f0   :  { %v2824_v61 = vadd.f32 %v3510_v43, %v2823_v25  ;;  %v3964_v38 = vpop.f32.mrb[65].mxu0  ;;  %v2894_v25 = vld [vmem:[%s6963_s1 + $0x398] sm:$0xff] }
 0x5f1   :  { %v2895_v38 = vld [vmem:[%s6963_s1 + $0x3a0] sm:$0xff] }
 0x5f2   :  { %2903 = vperm.xlu1 %4414, %v2824_v61  }
 0x5f3   :  { %v2828_v39 = vpop.f32.mrb[66].mxu0 }
 0x5f4   :  { %v2829_v30 = vadd.f32 %v3510_v43, %v2828_v39  ;;  %v3967_v57 = vpop.f32.mrb[67].mxu0 }
 0x5f6   :  { %2908 = vperm.xlu0 %4413, %v2829_v30  }
 0x5f7   :  { %v2833_v59 = vpop.f32.mrb[68].mxu0 }
 0x5f8   :  { %v2834_v37 = vadd.f32 %v3510_v43, %v2833_v59  ;;  %v3970_v14 = vpop.f32.mrb[69].mxu0 }
 0x5fa   :  { %2913 = vperm.xlu1 %4414, %v2834_v37   ;;  %v2896_v37 = vld [vmem:[%s6963_s1 + $0x3a8] sm:$0xff] }
 0x5fb   :  { %v2838_v53 = vpop.f32.mrb[70].mxu0 }
 0x5fc   :  { %v2839_v46 = vadd.f32 %v3510_v43, %v2838_v53  ;;  %v3973_v13 = vpop.f32.mrb[71].mxu0  ;;  %v2897_v53 = vld [vmem:[%s6963_s1 + $0x3b0] sm:$0xff] }
 0x5fe   :  { %2918 = vperm.xlu0 %4413, %v2839_v46  }
 0x5ff   :  { %v2843_v31 = vpop.f32.mrb[72].mxu0 }
 0x600   :  { %v2844_v21 = vadd.f32 %v3510_v43, %v2843_v31  ;;  %v3976_v16 = vpop.f32.mrb[73].mxu0 }
 0x601   :  { %v2898_v16 = vld [vmem:[%s6963_s1 + $0x3b8] sm:$0xff] }
 0x602   :  { %2923 = vperm.xlu1 %4414, %v2844_v21  }
 0x603   :  { %v2848_v49 = vpop.f32.mrb[74].mxu0 }
 0x604   :  { %v2849_v47 = vadd.f32 %v3510_v43, %v2848_v49  ;;  %v3979_v27 = vpop.f32.mrb[75].mxu0 }
 0x606   :  { %2928 = vperm.xlu0 %4413, %v2849_v47   ;;  %v2899_v47 = vld [vmem:[%s6963_s1 + $0x3c0] sm:$0xff] }
 0x607   :  { %v2853_v17 = vpop.f32.mrb[76].mxu0 }
 0x608   :  { %v2854_v22 = vadd.f32 %v3510_v43, %v2853_v17  ;;  %v3982_v29 = vpop.f32.mrb[77].mxu0 }
 0x60a   :  { %2933 = vperm.xlu1 %4414, %v2854_v22  }
 0x60b   :  { %v2858_v6 = vpop.f32.mrb[78].mxu0 }
 0x60c   :  { %v2859_v19 = vadd.f32 %v3510_v43, %v2858_v6  ;;  %v3985_v2 = vpop.f32.mrb[79].mxu0  ;;  %v3060_v6 = vld [vmem:[%s6962_s2 + $0x218] sm:$0xff] }
 0x60d   :  { %v2900_v2 = vld [vmem:[%s6963_s1 + $0x3c8] sm:$0xff] }
 0x60e   :  { %2938 = vperm.xlu0 %4413, %v2859_v19   ;;  %v3062_v19 = vld [vmem:[%s6962_s2 + $0x228] sm:$0xff] }
 0x60f   :  { %v2863_v12 = vpop.f32.mrb[80].mxu0 }
 0x610   :  { %v2864_v55 = vadd.f32 %v3510_v43, %v2863_v12  ;;  %v3988_v10 = vpop.f32.mrb[81].mxu0 }
 0x611   :  { %v3061_v10 = vld [vmem:[%s6962_s2 + $0x220] sm:$0xff] }
 0x612   :  { %2943 = vperm.xlu1 %4414, %v2864_v55   ;;  %v3059_v55 = vld [vmem:[%s6962_s2 + $0x210] sm:$0xff] }
 0x613   :  { %v2868_v34 = vpop.f32.mrb[82].mxu0 }
 0x614   :  { %v2869_v54 = vadd.f32 %v3510_v43, %v2868_v34  ;;  %v3991_v26 = vpop.f32.mrb[83].mxu0  ;;  %v3064_v34 = vld [vmem:[%s6962_s2 + $0x238] sm:$0xff] }
 0x615   :  { %v4264_v26 = vpack.c.bf16 %v3062_v19, %v3060_v6  ;;  %v3192_v6 = vld [vmem:[%s6963_s1 + $0x470] sm:$0xff]  ;;  %v3193_v19 = vld [vmem:[%s6963_s1 + $0x478] sm:$0xff] }
 0x616   :  { %2948 = vperm.xlu0 %4413, %v2869_v54   ;;  %v3066_v54 = vld [vmem:[%s6962_s2 + $0x248] sm:$0xff] }
 0x617   :  { %v2873_v5 = vpop.f32.mrb[84].mxu0 }
 0x618   :  { %v2874_v11 = vadd.f32 %v3510_v43, %v2873_v5  ;;  %v3994_v35 = vpop.f32.mrb[85].mxu0 }
 0x619   :  { %v4266_v35 = vpack.c.bf16 %v3061_v10, %v3059_v55  ;;  %v3195_v55 = vld [vmem:[%s6963_s1 + $0x488] sm:$0xff] }
 0x61a   :  { %2953 = vperm.xlu1 %4414, %v2874_v11   ;;  %v2887_v11 = vld [vmem:[%s6963_s1 + $0x548] sm:$0x3] }
 0x61b   :  { %v2878_v32 = vpop.f32.mrb[86].mxu0 }
 0x61c   :  { %v2879_v33 = vadd.f32 %v3510_v43, %v2878_v32  ;;  %v3997_v48 = vpop.f32.mrb[87].mxu0  ;;  %v4268_v32 = vpack.c.bf16 %v3066_v54, %v3064_v34  ;;  %v3525_v34 = vld [vmem:[%s6963_s1 + $0x554] ss:$0 sm:$0xff] }
 0x61d   :  { %v3065_v48 = vld [vmem:[%s6962_s2 + $0x240] sm:$0xff] }
 0x61e   :  { %2958 = vperm.xlu0 %4413, %v2879_v33   ;;  %v3063_v33 = vld [vmem:[%s6962_s2 + $0x230] sm:$0xff] }
 0x61f   :  { %v2883_v23 = vpop.f32.mrb[88].mxu0 }
 0x620   :  { %v2884_v0 = vadd.f32 %v3510_v43, %v2883_v23  ;;  %v4000_v56 = vpop.f32.mrb[89].mxu0  ;;  %v3068_v23 = vld [vmem:[%s6962_s2 + $0x258] sm:$0xff] }
 0x621   :  { %v4270_v56 = vpack.c.bf16 %v3065_v48, %v3063_v33  ;;  %v3198_v48 = vld [vmem:[%s6963_s1 + $0x4a0] sm:$0xff] }
 0x622   :  { %2963 = vperm.xlu1 %4414, %v2884_v0   ;;  %v3070_v0 = vld [vmem:[%s6962_s2 + $0x268] sm:$0xff] }
 0x671   :  { %v2904_v50 = vpop.permute.xlu1 %2903 }
 0x672   :  { %v2966_v36 = vmul.f32 %v2904_v50, %v2888_v42  ;;  %v4272_v42 = vpack.c.bf16 %v3070_v0, %v3068_v23  ;;  %v3067_v50 = vld [vmem:[%s6962_s2 + $0x250] sm:$0xff]  ;;  %v3279_v0 = vld [vmem:[%s6963_s1 + $0x4f8] sm:$0xff] }
 0x673   :  { %v3278_v23 = vld [vmem:[%s6963_s1 + $0x4f0] sm:$0xff] }
 0x675   :  { %v2909_v62 = vpop.permute.xlu0 %2908 }
 0x676   :  { %v2967_v18 = vmul.f32 %v2909_v62, %v2889_v44  ;;  %v3069_v44 = vld [vmem:[%s6962_s2 + $0x260] sm:$0xff]  ;;  %v3072_v62 = vld [vmem:[%s6962_s2 + $0x278] sm:$0xff] }
 0x678   :  { %v4247_v3 = vpack.c.bf16 %v2967_v18, %v2966_v36  ;;  %v3074_v36 = vld [vmem:[%s6962_s2 + $0x288] sm:$0xff]  ;;  %v4274_v18 = vpack.c.bf16 %v3069_v44, %v3067_v50 }
 0x679   :  { %v2914_v60 = vpop.permute.xlu1 %2913  ;;  %v3281_v50 = vld [vmem:[%s6963_s1 + $0x508] sm:$0xff] }
 0x67a   :  { %4248 = vmatpush3.bf16.msra.mxu1 %v4247_v3  ;;  %v2968_v20 = vmul.f32 %v2914_v60, %v2890_v7  ;;  %v4276_v3 = vpack.c.bf16 %v3074_v36, %v3072_v62  ;;  %v3071_v7 = vld [vmem:[%s6962_s2 + $0x270] sm:$0xff]  ;;  %v3073_v60 = vld [vmem:[%s6962_s2 + $0x280] sm:$0xff]  ;;  %v3283_v36 = vld [vmem:[%s6963_s1 + $0x518] sm:$0xff] }
 0x67b   :  { %4249 = vmatprep.subr.bf16.mxu1 %v4615_v28  ;;  %v3282_v62 = vld [vmem:[%s6963_s1 + $0x510] sm:$0xff] }
 0x67d   :  { %v2919_v40 = vpop.permute.xlu0 %2918 }
 0x67e   :  { %v2969_v51 = vmul.f32 %v2919_v40, %v2891_v41  ;;  %v4278_v41 = vpack.c.bf16 %v3073_v60, %v3071_v7  ;;  %v3076_v40 = vld [vmem:[%s6962_s2 + $0x298] sm:$0x3] }
 0x680   :  { %v4250_v52 = vpack.c.bf16 %v2969_v51, %v2968_v20  ;;  %v3075_v20 = vld [vmem:[%s6962_s2 + $0x290] sm:$0x3] }
 0x681   :  { %v2924_v45 = vpop.permute.xlu1 %2923  ;;  %v3172_v51 = vld [vmem:[%s6963_s1 + $0x3d0] sm:$0xff] }
 0x682   :  { %4251 = vmatpush3.bf16.msra.mxu1 %v4250_v52  ;;  %v2970_v58 = vmul.f32 %v2924_v45, %v2892_v24  ;;  %v3173_v52 = vld [vmem:[%s6963_s1 + $0x3d8] sm:$0xff]  ;;  %v3174_v24 = vld [vmem:[%s6963_s1 + $0x3e0] sm:$0xff] }
 0x683   :  { %4252 = vmatprep.subr.bf16.mxu1 %v4615_v28  ;;  %v4281_v45 = vpack.c.bf16 %v3173_v52, %v3172_v51 }
 0x685   :  { %v2929_v8 = vpop.permute.xlu0 %2928  ;;  %4282 = vmatpush1.bf16.msra.mxu0 %v4281_v45  ;;  %v3285_v45 = vld [vmem:[%s6963_s1 + $0x528] sm:$0xff] }
 0x686   :  { %v2971_v63 = vmul.f32 %v2929_v8, %v2893_v9  ;;  %v3175_v9 = vld [vmem:[%s6963_s1 + $0x3e8] sm:$0xff]  ;;  %4283 = vmatprep.subr.bf16.mxu0 %v4615_v28 }
 0x687   :  { %v4284_v8 = vpack.c.bf16 %v3175_v9, %v3174_v24  ;;  %v3531_v9 = vld [vmem:[%s6963_s1 + $0x555] ss:$0 sm:$0xff] }
 0x688   :  { %v4253_v43 = vpack.c.bf16 %v2971_v63, %v2970_v58  ;;  %v3176_v58 = vld [vmem:[%s6963_s1 + $0x3f0] sm:$0xff]  ;;  %v3177_v63 = vld [vmem:[%s6963_s1 + $0x3f8] sm:$0xff] }
 0x689   :  { %v2934_v61 = vpop.permute.xlu1 %2933  ;;  %4285 = vmatpush1.bf16.msra.mxu0 %v4284_v8 }
 0x68a   :  { %4254 = vmatpush3.bf16.msra.mxu1 %v4253_v43  ;;  %v2972_v30 = vmul.f32 %v2934_v61, %v2894_v25  ;;  %v4287_v43 = vpack.c.bf16 %v3177_v63, %v3176_v58  ;;  %4286 = vmatprep.subr.bf16.mxu0 %v4615_v28  ;;  %v3178_v25 = vld [vmem:[%s6963_s1 + $0x400] sm:$0xff]  ;;  %v3179_v61 = vld [vmem:[%s6963_s1 + $0x408] sm:$0xff] }
 0x68b   :  { %4255 = vmatprep.subr.bf16.mxu1 %v4615_v28 }
 0x68d   :  { %v2939_v39 = vpop.permute.xlu0 %2938  ;;  %4288 = vmatpush1.bf16.msra.mxu0 %v4287_v43 }
 0x68e   :  { %v2973_v57 = vmul.f32 %v2939_v39, %v2895_v38  ;;  %v4290_v38 = vpack.c.bf16 %v3179_v61, %v3178_v25  ;;  %4289 = vmatprep.subr.bf16.mxu0 %v4615_v28  ;;  %v3180_v39 = vld [vmem:[%s6963_s1 + $0x410] sm:$0xff]  ;;  %v3369_v25 = vld [vmem:[%s6963_s1 + $0x540] sm:$0x3f] }
 0x68f   :  { %v3533_v61 = vld [vmem:[%s6963_s1 + $0x556] ss:$0 sm:$0xff] }
 0x690   :  { %v4256_v59 = vpack.c.bf16 %v2973_v57, %v2972_v30  ;;  %v3181_v30 = vld [vmem:[%s6963_s1 + $0x418] sm:$0xff] }
 0x691   :  { %v2944_v14 = vpop.permute.xlu1 %2943  ;;  %4291 = vmatpush1.bf16.msra.mxu0 %v4290_v38  ;;  %v4293_v57 = vpack.c.bf16 %v3181_v30, %v3180_v39 }
 0x692   :  { %4257 = vmatpush3.bf16.msra.mxu1 %v4256_v59  ;;  %v2974_v13 = vmul.f32 %v2944_v14, %v2896_v37  ;;  %4292 = vmatprep.subr.bf16.mxu0 %v4615_v28  ;;  %v3182_v59 = vld [vmem:[%s6963_s1 + $0x420] sm:$0xff]  ;;  %v3183_v37 = vld [vmem:[%s6963_s1 + $0x428] sm:$0xff] }
 0x693   :  { %4258 = vmatprep.subr.bf16.mxu1 %v4615_v28  ;;  %v4296_v14 = vpack.c.bf16 %v3183_v37, %v3182_v59 }
 0x695   :  { %v2949_v46 = vpop.permute.xlu0 %2948  ;;  %4294 = vmatpush1.bf16.msra.mxu0 %v4293_v57 }
 0x696   :  { %v2975_v31 = vmul.f32 %v2949_v46, %v2897_v53  ;;  %4295 = vmatprep.subr.bf16.mxu0 %v4615_v28  ;;  %v3184_v53 = vld [vmem:[%s6963_s1 + $0x430] sm:$0xff]  ;;  %v3185_v46 = vld [vmem:[%s6963_s1 + $0x438] sm:$0xff] }
 0x698   :  { %v4259_v21 = vpack.c.bf16 %v2975_v31, %v2974_v13  ;;  %v4299_v13 = vpack.c.bf16 %v3185_v46, %v3184_v53  ;;  %v3186_v31 = vld [vmem:[%s6963_s1 + $0x440] sm:$0xff] }
 0x699   :  { %v2954_v49 = vpop.permute.xlu1 %2953  ;;  %4297 = vmatpush1.bf16.msra.mxu0 %v4296_v14 }
 0x69a   :  { %4260 = vmatpush3.bf16.msra.mxu1 %v4259_v21  ;;  %v2976_v17 = vmul.f32 %v2954_v49, %v2898_v16  ;;  %4298 = vmatprep.subr.bf16.mxu0 %v4615_v28  ;;  %v3187_v21 = vld [vmem:[%s6963_s1 + $0x448] sm:$0xff]  ;;  %v3188_v49 = vld [vmem:[%s6963_s1 + $0x450] sm:$0xff] }
 0x69b   :  { %4261 = vmatprep.subr.bf16.mxu1 %v4615_v28  ;;  %v4302_v16 = vpack.c.bf16 %v3187_v21, %v3186_v31 }
 0x69d   :  { %v2959_v27 = vpop.permute.xlu0 %2958  ;;  %4300 = vmatpush1.bf16.msra.mxu0 %v4299_v13 }
 0x69e   :  { %v2977_v22 = vmul.f32 %v2959_v27, %v2899_v47  ;;  %4301 = vmatprep.subr.bf16.mxu0 %v4615_v28  ;;  %v3189_v47 = vld [vmem:[%s6963_s1 + $0x458] sm:$0xff] }
 0x69f   :  { %v4305_v27 = vpack.c.bf16 %v3189_v47, %v3188_v49 }
 0x6a0   :  { %v4262_v29 = vpack.c.bf16 %v2977_v22, %v2976_v17  ;;  %v3190_v17 = vld [vmem:[%s6963_s1 + $0x460] sm:$0xff]  ;;  %v3191_v22 = vld [vmem:[%s6963_s1 + $0x468] sm:$0xff] }
 0x6a1   :  { %v2964_v12 = vpop.permute.xlu1 %2963  ;;  %4303 = vmatpush1.bf16.msra.mxu0 %v4302_v16 }
 0x6a2   :  { %4263 = vmatpush3.bf16.msra.mxu1 %v4262_v29  ;;  %v2978_v5 = vmul.f32 %v2964_v12, %v2900_v2  ;;  %4304 = vmatprep.subr.bf16.mxu0 %v4615_v28  ;;  %v4308_v29 = vpack.c.bf16 %v3191_v22, %v3190_v17  ;;  %v4311_v2 = vpack.c.bf16 %v3193_v19, %v3192_v6  ;;  %v3194_v12 = vld [vmem:[%s6963_s1 + $0x480] sm:$0xff] }
 0x6a3   :  { %4025 = vmatprep.subr.mxu1 %v4610_v1  ;;  %v4314_v10 = vpack.c.bf16 %v3195_v55, %v3194_v12 }
 0x6a5   :  { %4306 = vmatpush1.bf16.msra.mxu0 %v4305_v27 }
 0x6a6   :  { %4026 = vmatpush3.msra.mxu1 %v2978_v5  ;;  %4307 = vmatprep.subr.bf16.mxu0 %v4615_v28 }
 0x6a7   :  { %4028 = vmatmul.mubr.msk.f32.vlgmr.msra.gmra.mrb[114].mxu1 %vm2984_vm14, %v2887_v11  ;;  %4265 = vmatprep.subr.bf16.mxu1 %v4264_v26 }
 0x6a8   :  { %4267 = vmatpush1.bf16.msra.mxu1 %v4266_v35  ;;  %3163 = vmatprep.mubr.f32.mxu1 %v4610_v1  ;;  %v3196_v35 = vld [vmem:[%s6963_s1 + $0x490] sm:$0xff] }
 0x6a9   :  { %4269 = vmatprep.subr.bf16.mxu1 %v4268_v32  ;;  %4309 = vmatpush1.bf16.msra.mxu0 %v4308_v29  ;;  %v3197_v32 = vld [vmem:[%s6963_s1 + $0x498] sm:$0xff] }
 0x6aa   :  { %4310 = vmatprep.subr.bf16.mxu0 %v4615_v28  ;;  %v4317_v33 = vpack.c.bf16 %v3197_v32, %v3196_v35 }
 0x6ac   :  { %4271 = vmatpush1.bf16.msra.mxu1 %v4270_v56  ;;  %v3280_v56 = vld [vmem:[%s6963_s1 + $0x500] sm:$0xff] }
 0x6ad   :  { %4273 = vmatprep.subr.bf16.mxu1 %v4272_v42  ;;  %4312 = vmatpush1.bf16.msra.mxu0 %v4311_v2  ;;  %v4320_v42 = vpack.c.bf16 %v3279_v0, %v3278_v23  ;;  %v4323_v44 = vpack.c.bf16 %v3281_v50, %v3280_v56 }
 0x6ae   :  { %4313 = vmatprep.subr.bf16.mxu0 %v4615_v28 }
 0x6b0   :  { %4275 = vmatpush1.bf16.msra.mxu1 %v4274_v18  ;;  %v4326_v18 = vpack.c.bf16 %v3283_v36, %v3282_v62 }
 0x6b1   :  { %4277 = vmatprep.subr.bf16.mxu1 %v4276_v3  ;;  %4315 = vmatpush1.bf16.msra.mxu0 %v4314_v10  ;;  %v3527_v3 = vld [vmem:[%s6962_s2 + $0x2a1] ss:$8 sm:$0x3] }
 0x6b2   :  { %4316 = vmatprep.subr.bf16.mxu0 %v4615_v28  ;;  %v3083_v7 = vrot.slane %v3527_v3, %v4870_v15  ;;  %v3087_v60 = vrot.slane %v3527_v3, %v4853_v4  ;;  %v3286_v4 = vld [vmem:[%s6963_s1 + $0x530] sm:$0x3] }
 0x6b4   :  { %4279 = vmatpush1.bf16.msra.mxu1 %v4278_v41 }
 0x6b5   :  { %3528 = vmatprep.subr.msk.mxu1 %vm2561_vm12, %v3076_v40  ;;  %4318 = vmatpush1.bf16.msra.mxu0 %v4317_v33 }
 0x6b6   :  { %3259 = vmatprep.subr.mxu0 %v4610_v1 }
 0x6b8   :  { %3529 = vmatpush1.msk.msra.mxu1 %vm2561_vm12, %v3075_v20 }
 0x6b9   :  { %4319 = vmatprep.subr.bf16.mxu1 %v4615_v28  ;;  %3260 = vmatpush1.msra.mxu0 %v3198_v48 }
 0x77a   :  { %v3054_v54 = vpop.f32.mrb[114].mxu1 }
 0x77b   :  { %v3055_v26 = vadd.f32 %v3525_v34, %v3054_v54  ;;  %v4029_v5 = vpop.f32.mrb[115].mxu1 }
 0x77d   :  { %v3058_v11 = vmax.f32 %v3055_v26, 0.0 }
 0x77f   :  { %3530 = vmatmul.mubr.msk.f32.vlgmr.msra.gmra.mrb[116].mxu1 %vm868_vm6, %v3058_v11 }
 0x780   :  { %4048 = vmatprep.mubr.msk.f32.mxu1 %vm4617_vm8, %v4610_v1  ;;  %4321 = vmatpush3.bf16.msra.mxu1 %v4320_v42 }
 0x781   :  { %4322 = vmatprep.subr.bf16.mxu1 %v4615_v28 }
 0x784   :  { %4324 = vmatpush3.bf16.msra.mxu1 %v4323_v44 }
 0x785   :  { %4325 = vmatprep.subr.bf16.mxu1 %v4615_v28 }
 0x788   :  { %4327 = vmatpush3.bf16.msra.mxu1 %v4326_v18 }
 0x789   :  { %4328 = vmatprep.subr.bf16.mxu1 %v4615_v28  ;;  %v3284_v28 = vld [vmem:[%s6963_s1 + $0x520] sm:$0xff] }
 0x78a   :  { %v4329_v15 = vpack.c.bf16 %v3285_v45, %v3284_v28 }
 0x78c   :  { %4330 = vmatpush3.bf16.msra.mxu1 %v4329_v15 }
 0x78d   :  { %4046 = vmatprep.subr.mxu1 %v4610_v1 }
 0x790   :  { %4047 = vmatpush3.msk.msra.mxu1 %vm2561_vm12, %v3286_v4 }
 0x791   :  { %4051 = vmatprep.subr.mxu1 %v4610_v1 }
 0x852   :  { %v3165_v41 = vpop.f32.mrb[116].mxu1 }
 0x853   :  { %v3166_v40 = vadd.f32 %v3165_v41, %v3083_v7  ;;  %v3167_v20 = vpop.f32.mrb[117].mxu1 }
 0x854   :  { %v3168_v51 = vadd.f32 %v3167_v20, %v3087_v60 }
 0x855   :  { %v3170_v24 = vmax.f32 %v3166_v40, 0.0 }
 0x856   :  { %v3171_v52 = vmax.f32 %v3168_v51, 0.0 }
 0x858   :  { %3532 = vmatprep.mubr.msk.f32.mxu0 %vm1500_vm9, %v3171_v52 }
 0x859   :  { %3272 = vmatmul.mubr.f32.vlgmr.msra.gmra.mrb[90].mxu0 %v3170_v24 }
 0x92c   :  { %v3273_v8 = vpop.f32.mrb[90].mxu0 }
 0x92d   :  { %v3274_v58 = vadd.f32 %v3531_v9, %v3273_v8  ;;  %v3275_v63 = vpop.f32.mrb[91].mxu0 }
 0x92f   :  { %v3277_v43 = vmax.f32 %v3274_v58, 0.0 }
 0x931   :  { %4049 = vmatmul.mubr.msk.f32.vlgmr.msra.gmra.mrb[118].mxu1 %vm868_vm6, %v3277_v43 }
 0x932   :  { %4053 = vmatprep.mubr.msk.f32.mxu1 %vm4617_vm8, %v4610_v1  ;;  %4052 = vmatpush3.msk.msra.mxu1 %vm791_vm3, %v3369_v25  ;;  %v3536_v1 = vld [vmem:[%s6963_s1 + $0x557] ss:$0 sm:$0xff] }
 0xa04   :  { %v3364_v38 = vpop.f32.mrb[118].mxu1 }
 0xa05   :  { %v3365_v39 = vadd.f32 %v3533_v61, %v3364_v38  ;;  %v4050_v30 = vpop.f32.mrb[119].mxu1 }
 0xa07   :  { %v3368_v57 = vmax.f32 %v3365_v39, 0.0 }
 0xa09   :  { %4054 = vmatmul.mubr.msk.f32.vlgmr.msra.gmra.mrb[120].mxu1 %vm2714_vm13, %v3368_v57 }
 0xadc   :  { %v3447_v59 = vpop.f32.mrb[120].mxu1 }
 0xadd   :  { %v3448_v37 = vadd.f32 %v3536_v1, %v3447_v59  ;;  %v4055_v14 = vpop.f32.mrb[121].mxu1 }
 0xadf   :  { %v3451_v53 = vmax.f32 %v3448_v37, 0.0 }
 0xae1   :  { %v3539_v46 = vmul.f32 -1.442695, %v3451_v53 }
 0xae3   :  { %4605 = vpow2.f32 %v3539_v46 }
 0xaed   :  { %v4606_v13 = vpop.eup %4605 }
 0xaee   :  { %v3455_v31 = vadd.f32 1.0, %v4606_v13 }
 0xaf0   :  { %4607 = vrcp.f32 %v3455_v31 }
 0xafa   :  { %v4608_v21 = vpop.eup %4607 }
 0xafb   :  { %3459 = vst.msk [vmem:[%s6964_s3] sm:$0x3] %vm3458_vm15, %v4608_v21 }

</bundles_post_ra>
